<compile_context>
chip_gen: v7x
topology: tpu7x:2x2x1
jax: 0.10.0
libtpu: 0.0.40
codegen_flags: <defaults>
</compile_context>

<pallas_src>
import functools
import math

import jax
import jax.numpy as jnp
from jax.experimental import pallas as pl
from jax.experimental.pallas import tpu as pltpu

_NEG_INF = -1e30
_REFS_PER_BRANCH = 19  # xc, pos, bias, wtok, 14 encoder tensors, whead


# ----------------------------------------------------------------------------
# Fused kernel: both branches (embedding + encoder stack + final LN + folded
# FlattenHead) for one tile of B*C elements, summed + head bias.
# ----------------------------------------------------------------------------
def _fused_kernel(*refs, e_layers, n_heads, d_model, pred_len, tile_bc,
                  seq_lens, scale):
    f32 = jnp.float32
    bf16 = jnp.bfloat16

    br1 = refs[0:_REFS_PER_BRANCH]
    br2 = refs[_REFS_PER_BRANCH:2 * _REFS_PER_BRANCH]
    head_b_ref = refs[2 * _REFS_PER_BRANCH]
    o_ref = refs[2 * _REFS_PER_BRANCH + 1]

    def layer_norm(v, g, b):
        mu = jnp.mean(v, axis=-1, keepdims=True)
        c = v - mu
        var = jnp.mean(c * c, axis=-1, keepdims=True)
        return c * jax.lax.rsqrt(var + 1e-5) * g + b

    def run_branch(br, S):
        (xc_ref, pos_ref, bias_ref, wtok_ref,
         wqkv_ref, bqkv_ref, wo_ref, bo_ref,
         ln1g_ref, ln1b_ref, w1_ref, b1_ref, w2_ref, b2_ref,
         ln2g_ref, ln2b_ref, nfg_ref, nfb_ref, whead_ref) = br
        dh = d_model // n_heads

        # Token embedding (circular conv1d k=3, no bias, expressed as a matmul
        # over the [x_{s-1}, x_s, x_{s+1}] tap concat) + positional embedding.
        x = jnp.dot(xc_ref[0], wtok_ref[...],
                    preferred_element_type=f32) + pos_ref[...]   # (N, d_model)
        bias = bias_ref[...]   # (N, N) block-diagonal mask over B*C rows

        for l in range(e_layers):
            # ---- multi-head self-attention, fused QKV projection ----
            qkv = jnp.dot(x.astype(bf16), wqkv_ref[l],
                          preferred_element_type=f32) + bqkv_ref[l]
            qs = (qkv[:, :d_model] * scale).astype(bf16)   # scale folded in q
            ks = qkv[:, d_model:2 * d_model].astype(bf16)
            vs = qkv[:, 2 * d_model:].astype(bf16)
            wo_l = wo_ref[l]
            attn = jnp.zeros(x.shape, f32)
            for h in range(n_heads):
                sl = slice(h * dh, (h + 1) * dh)
                sc = jnp.einsum("sd,td->st", qs[:, sl], ks[:, sl],
                                preferred_element_type=f32) + bias
                sc = sc - jnp.max(sc, axis=-1, keepdims=True)
                p = jnp.exp(sc)
                p = p * pl.reciprocal(jnp.sum(p, axis=-1, keepdims=True),
                                      approx=True)
                ctx = jnp.dot(p.astype(bf16), vs[:, sl],
                              preferred_element_type=f32)
                # O-projection absorbs the head concat.
                attn = attn + jnp.dot(ctx.astype(bf16), wo_l[sl, :],
                                      preferred_element_type=f32)
            x = layer_norm(x + attn + bo_ref[l], ln1g_ref[l], ln1b_ref[l])

            # ---- 1x1-conv FFN (GELU) ----
            h1 = jax.nn.gelu(
                jnp.dot(x.astype(bf16), w1_ref[l],
                        preferred_element_type=f32) + b1_ref[l],
                approximate=True)
            y = jnp.dot(h1.astype(bf16), w2_ref[l],
                        preferred_element_type=f32) + b2_ref[l]
            x = layer_norm(x + y, ln2g_ref[l], ln2b_ref[l])

        x = layer_norm(x, nfg_ref[...], nfb_ref[...])   # final encoder LN
        xb = x.astype(bf16)

        # Folded FlattenHead (repeat + flatten + Linear collapsed):
        # hp[b] = sum_s x[s*tile_bc + b, :] @ whead[s]   (rows are s-major)
        hp = jnp.zeros((tile_bc, pred_len), f32)
        for s in range(S):
            rows = xb[s * tile_bc:(s + 1) * tile_bc, :]
            hp = hp + jnp.dot(rows, whead_ref[s], preferred_element_type=f32)
        return hp

    hp1 = run_branch(br1, seq_lens[0])
    hp2 = run_branch(br2, seq_lens[1])
    o_ref[0] = hp1 + hp2 + head_b_ref[...]


# ----------------------------------------------------------------------------
# Wrapper: prepares per-branch slabs / masks / weights and makes ONE
# pallas_call covering both branches.
# ----------------------------------------------------------------------------
def tflg_heads_pallas(xc1, xc2, pe1, pe2, wtok1, wtok2, enc1, enc2,
                      wh1, wh2, head_b, *, n_heads, pred_len):
    BC, S1, _ = xc1.shape
    _, S2, _ = xc2.shape
    d_model = wtok1.shape[-1]
    e_layers = enc1["wqkv"].shape[0]
    bf16, f32 = jnp.bfloat16, jnp.float32

    # One fat step per TensorCore: 2 tiles when B*C is even (keeps both v7x
    # TCs busy); a single fat step otherwise (optimal for 1-TC v5e/v6e, where
    # the extra ~0.35us step on G=2 is negligible anyway).
    G = 2 if (BC % 2 == 0 and BC >= 2) else 1
    TB = BC // G

    def slab(xc, S):
        # (BC, S, 3P) -> (G, S*TB, 3P); within a tile rows are s-major,
        # element-minor (row = s*TB + b).
        P3 = xc.shape[-1]
        return (xc.reshape(G, TB, S, P3).transpose(0, 2, 1, 3)
                .reshape(G, S * TB, P3).astype(bf16))

    def bias_mat(S):
        # Additive block-diagonal mask: rows of different B*C elements within
        # the slab never attend to each other.
        n = S * TB
        r = jnp.arange(n) % TB
        return jnp.where(r[:, None] == r[None, :], 0.0, _NEG_INF).astype(f32)

    def branch_ins(xc, pe, S, wtok, enc, wh):
        return [
            slab(xc, S),                                   # (G, S*TB, 3P) bf16
            jnp.repeat(pe.astype(f32), TB, axis=0),        # (S*TB, d_model)
            bias_mat(S),                                   # (S*TB, S*TB)
            wtok.astype(bf16),
            enc["wqkv"].astype(bf16), enc["bqkv"],
            enc["wo"].astype(bf16), enc["bo"],
            enc["ln1_g"], enc["ln1_b"],
            enc["w1"].astype(bf16), enc["b1"],
            enc["w2"].astype(bf16), enc["b2"],
            enc["ln2_g"], enc["ln2_b"],
            enc["norm_g"], enc["norm_b"],
            wh.astype(bf16),                               # (S, d_model, pred)
        ]

    b1_ins = branch_ins(xc1, pe1, S1, wtok1, enc1, wh1)
    b2_ins = branch_ins(xc2, pe2, S2, wtok2, enc2, wh2)
    ins = b1_ins + b2_ins + [head_b.reshape(1, pred_len).astype(f32)]

    def pinned(a):  # whole array, same block every grid step (loaded once)
        return pl.BlockSpec(a.shape, lambda i, nd=a.ndim: (0,) * nd)

    def branch_specs(b_ins):
        xcs = b_ins[0]
        return ([pl.BlockSpec((1,) + xcs.shape[1:], lambda i: (i, 0, 0))]
                + [pinned(a) for a in b_ins[1:]])

    in_specs = branch_specs(b1_ins) + branch_specs(b2_ins) + [pinned(ins[-1])]

    kernel = functools.partial(
        _fused_kernel,
        e_layers=e_layers, n_heads=n_heads, d_model=d_model,
        pred_len=pred_len, tile_bc=TB, seq_lens=(S1, S2),
        scale=1.0 / math.sqrt(d_model // n_heads))

    # TODO(synk): at production sizes (large d_model/seq_len/pred_len), tile
    # the pinned weights / folded head over the grid instead of whole-array
    # VMEM blocks to stay under the v7x 64 MiB VMEM budget.
    out = pl.pallas_call(
        kernel,
        grid=(G,),
        out_shape=jax.ShapeDtypeStruct((G, TB, pred_len), f32),
        in_specs=in_specs,
        out_specs=pl.BlockSpec((1, TB, pred_len), lambda i: (i, 0, 0)),
        compiler_params=pltpu.CompilerParams(
            dimension_semantics=("parallel",)),
    )(*ins)
    return out.reshape(BC, pred_len)


# ----------------------------------------------------------------------------
# Model glue (parameter init, instance norm, head-weight folding).
# ----------------------------------------------------------------------------
def positional_embedding(d_model, length):
    position = jnp.arange(length, dtype=jnp.float32)[:, None]
    div_term = jnp.exp(
        jnp.arange(0, d_model, 2, dtype=jnp.float32) * -(math.log(10000.0) / d_model))
    pe = jnp.zeros((length, d_model), jnp.float32)
    pe = pe.at[:, 0::2].set(jnp.sin(position * div_term))
    pe = pe.at[:, 1::2].set(jnp.cos(position * div_term))
    return pe


def init_params(key, cfg):
    d_model, d_ff = cfg["d_model"], cfg["d_ff"]
    patch_len, seq_len = cfg["patch_len"], cfg["seq_len"]
    n_patches = seq_len // patch_len
    e_layers = cfg["e_layers"]
    keys = iter(jax.random.split(key, 64))

    def w(shape, scale=0.02):
        return (scale * jax.random.normal(next(keys), shape)).astype(jnp.float32)

    zeros = lambda s: jnp.zeros(s, jnp.float32)
    ones = lambda s: jnp.ones(s, jnp.float32)

    def make_encoder():
        return dict(
            wqkv=w((e_layers, d_model, 3 * d_model)),
            bqkv=zeros((e_layers, 1, 3 * d_model)),
            wo=w((e_layers, d_model, d_model)),
            bo=zeros((e_layers, 1, d_model)),
            ln1_g=ones((e_layers, 1, d_model)),
            ln1_b=zeros((e_layers, 1, d_model)),
            w1=w((e_layers, d_model, d_ff)),
            b1=zeros((e_layers, 1, d_ff)),
            w2=w((e_layers, d_ff, d_model)),
            b2=zeros((e_layers, 1, d_model)),
            ln2_g=ones((e_layers, 1, d_model)),
            ln2_b=zeros((e_layers, 1, d_model)),
            norm_g=ones((1, d_model)),
            norm_b=zeros((1, d_model)),
        )

    return dict(
        # circular conv1d (k=3, no bias) token embeddings as (3*c_in, d_model),
        # rows ordered [tap t-1, tap t, tap t+1]
        emb_inter_w=w((3 * patch_len, d_model)),
        emb_intra_w=w((3 * n_patches, d_model)),
        enc1=make_encoder(),
        enc2=make_encoder(),
        head_w=w((d_model * seq_len, cfg["pred_len"])),  # Linear(nf, pred).weight.T
        head_b=zeros((cfg["pred_len"],)),
    )


def model_forward(params, x_enc, x_mark_enc, x_dec, x_mark_dec, cfg):
    del x_mark_enc, x_dec, x_mark_dec  # unused by the reference forward
    B, L, C = x_enc.shape
    seq_len, patch_len = cfg["seq_len"], cfg["patch_len"]
    n_patches = seq_len // patch_len
    d_model, pred_len, n_heads = cfg["d_model"], cfg["pred_len"], cfg["n_heads"]

    # instance normalization (non-stationary trick, unbiased=False variance)
    x = x_enc.astype(jnp.float32)
    means = jnp.mean(x, axis=1, keepdims=True)
    x = x - means
    stdev = jnp.sqrt(jnp.var(x, axis=1, keepdims=True) + 1e-5)
    x = x / stdev

    xt = jnp.transpose(x, (0, 2, 1)).reshape(B * C, seq_len)   # (B*C, L)
    x_inter = xt.reshape(B * C, n_patches, patch_len)          # 'b m (n p)->(b m) n p'
    x_intra = xt.reshape(B * C, patch_len, n_patches)          # 'b m (p n)->(b m) p n'

    def circular3(v):  # [x_{s-1}, x_s, x_{s+1}] along features (circular, k=3)
        return jnp.concatenate(
            [jnp.roll(v, 1, axis=1), v, jnp.roll(v, -1, axis=1)], axis=-1)

    pe_inter = positional_embedding(d_model, n_patches)
    pe_intra = positional_embedding(d_model, patch_len)

    # Fold FlattenHead weight through the einops repeat (exact algebra):
    # flat index = d*seq_len + s; inter uses s//patch_len, intra s//n_patches
    # -> sum head-weight columns within each repeat group.
    W3 = params["head_w"].reshape(d_model, seq_len, pred_len)
    wh_inter = (W3.reshape(d_model, n_patches, patch_len, pred_len).sum(2)
                .transpose(1, 0, 2))            # (n_patches, d_model, pred_len)
    wh_intra = (W3.reshape(d_model, patch_len, n_patches, pred_len).sum(2)
                .transpose(1, 0, 2))            # (patch_len, d_model, pred_len)

    dec = tflg_heads_pallas(
        circular3(x_inter), circular3(x_intra), pe_inter, pe_intra,
        params["emb_inter_w"], params["emb_intra_w"],
        params["enc1"], params["enc2"],
        wh_inter, wh_intra, params["head_b"],
        n_heads=n_heads, pred_len=pred_len)                    # (B*C, pred_len)

    dec = dec.reshape(B, C, pred_len).transpose(0, 2, 1)       # (B, pred_len, C)
    dec = dec * stdev[:, 0, :][:, None, :] + means[:, 0, :][:, None, :]
    return dec[:, -pred_len:, :]


# ----------------------------------------------------------------------------
# Demo
# ----------------------------------------------------------------------------
if __name__ == "__main__":
    cfg = dict(
        task_name="long_term_forecast",
        seq_len=16,
        pred_len=8,
        enc_in=4,        # n_vars / channels
        d_model=32,
        n_heads=4,
        d_ff=64,
        e_layers=1,
        patch_len=4,     # seq_len divisible by patch_len
        dropout=0.0,
        activation="gelu",
        output_attention=False,
    )

    key = jax.random.PRNGKey(0)
    k_param, k_x, k_xm, k_xd, k_xmd = jax.random.split(key, 5)

    params = init_params(k_param, cfg)

    B, L, C = 2, cfg["seq_len"], cfg["enc_in"]
    x_enc = jax.random.normal(k_x, (B, L, C), dtype=jnp.float32)
    x_mark_enc = jax.random.normal(k_xm, (B, L, C), dtype=jnp.float32)
    x_dec = jax.random.normal(k_xd, (B, cfg["pred_len"], C), dtype=jnp.float32)
    x_mark_dec = jax.random.normal(k_xmd, (B, cfg["pred_len"], C), dtype=jnp.float32)

    fwd = jax.jit(functools.partial(model_forward, cfg=cfg))
    out = fwd(params, x_enc, x_mark_enc, x_dec, x_mark_dec)
    out = jax.block_until_ready(out)

    assert out.shape == (B, cfg["pred_len"], C), out.shape
    assert jnp.all(jnp.isfinite(out))
    print("KERNEL_OK")
</pallas_src>

<mosaic_0001>
module attributes {stable_mosaic.version = 11 : i64} {
  func.func @_fused_kernel(%arg0: i32, %arg1: memref<1x16x12xbf16, #tpu.memory_space<vmem>>, %arg2: memref<16x32xf32, #tpu.memory_space<vmem>>, %arg3: memref<16x16xf32, #tpu.memory_space<vmem>>, %arg4: memref<12x32xbf16, #tpu.memory_space<vmem>>, %arg5: memref<1x32x96xbf16, #tpu.memory_space<vmem>>, %arg6: memref<1x1x96xf32, #tpu.memory_space<vmem>>, %arg7: memref<1x32x32xbf16, #tpu.memory_space<vmem>>, %arg8: memref<1x1x32xf32, #tpu.memory_space<vmem>>, %arg9: memref<1x1x32xf32, #tpu.memory_space<vmem>>, %arg10: memref<1x1x32xf32, #tpu.memory_space<vmem>>, %arg11: memref<1x32x64xbf16, #tpu.memory_space<vmem>>, %arg12: memref<1x1x64xf32, #tpu.memory_space<vmem>>, %arg13: memref<1x64x32xbf16, #tpu.memory_space<vmem>>, %arg14: memref<1x1x32xf32, #tpu.memory_space<vmem>>, %arg15: memref<1x1x32xf32, #tpu.memory_space<vmem>>, %arg16: memref<1x1x32xf32, #tpu.memory_space<vmem>>, %arg17: memref<1x32xf32, #tpu.memory_space<vmem>>, %arg18: memref<1x32xf32, #tpu.memory_space<vmem>>, %arg19: memref<4x32x8xbf16, #tpu.memory_space<vmem>>, %arg20: memref<1x16x12xbf16, #tpu.memory_space<vmem>>, %arg21: memref<16x32xf32, #tpu.memory_space<vmem>>, %arg22: memref<16x16xf32, #tpu.memory_space<vmem>>, %arg23: memref<12x32xbf16, #tpu.memory_space<vmem>>, %arg24: memref<1x32x96xbf16, #tpu.memory_space<vmem>>, %arg25: memref<1x1x96xf32, #tpu.memory_space<vmem>>, %arg26: memref<1x32x32xbf16, #tpu.memory_space<vmem>>, %arg27: memref<1x1x32xf32, #tpu.memory_space<vmem>>, %arg28: memref<1x1x32xf32, #tpu.memory_space<vmem>>, %arg29: memref<1x1x32xf32, #tpu.memory_space<vmem>>, %arg30: memref<1x32x64xbf16, #tpu.memory_space<vmem>>, %arg31: memref<1x1x64xf32, #tpu.memory_space<vmem>>, %arg32: memref<1x64x32xbf16, #tpu.memory_space<vmem>>, %arg33: memref<1x1x32xf32, #tpu.memory_space<vmem>>, %arg34: memref<1x1x32xf32, #tpu.memory_space<vmem>>, %arg35: memref<1x1x32xf32, #tpu.memory_space<vmem>>, %arg36: memref<1x32xf32, #tpu.memory_space<vmem>>, %arg37: memref<1x32xf32, #tpu.memory_space<vmem>>, %arg38: memref<4x32x8xbf16, #tpu.memory_space<vmem>>, %arg39: memref<1x8xf32, #tpu.memory_space<vmem>>, %arg40: memref<1x4x8xf32, #tpu.memory_space<vmem>>) attributes {dimension_semantics = [#tpu.dimension_semantics<parallel>], iteration_bounds = array<i64: 2>, scalar_prefetch = 0 : i64, scratch_operands = 0 : i64, tpu.core_type = #tpu.core_type<tc>, window_params = [{transform_indices = @transform_0, window_bounds = array<i64: 1, 16, 12>}, {pipeline_mode = #tpu.pipeline_mode<synchronous>, transform_indices = @transform_1, window_bounds = array<i64: 16, 32>}, {pipeline_mode = #tpu.pipeline_mode<synchronous>, transform_indices = @transform_2, window_bounds = array<i64: 16, 16>}, {pipeline_mode = #tpu.pipeline_mode<synchronous>, transform_indices = @transform_3, window_bounds = array<i64: 12, 32>}, {pipeline_mode = #tpu.pipeline_mode<synchronous>, transform_indices = @transform_4, window_bounds = array<i64: 1, 32, 96>}, {pipeline_mode = #tpu.pipeline_mode<synchronous>, transform_indices = @transform_5, window_bounds = array<i64: 1, 1, 96>}, {pipeline_mode = #tpu.pipeline_mode<synchronous>, transform_indices = @transform_6, window_bounds = array<i64: 1, 32, 32>}, {pipeline_mode = #tpu.pipeline_mode<synchronous>, transform_indices = @transform_7, window_bounds = array<i64: 1, 1, 32>}, {pipeline_mode = #tpu.pipeline_mode<synchronous>, transform_indices = @transform_8, window_bounds = array<i64: 1, 1, 32>}, {pipeline_mode = #tpu.pipeline_mode<synchronous>, transform_indices = @transform_9, window_bounds = array<i64: 1, 1, 32>}, {pipeline_mode = #tpu.pipeline_mode<synchronous>, transform_indices = @transform_10, window_bounds = array<i64: 1, 32, 64>}, {pipeline_mode = #tpu.pipeline_mode<synchronous>, transform_indices = @transform_11, window_bounds = array<i64: 1, 1, 64>}, {pipeline_mode = #tpu.pipeline_mode<synchronous>, transform_indices = @transform_12, window_bounds = array<i64: 1, 64, 32>}, {pipeline_mode = #tpu.pipeline_mode<synchronous>, transform_indices = @transform_13, window_bounds = array<i64: 1, 1, 32>}, {pipeline_mode = #tpu.pipeline_mode<synchronous>, transform_indices = @transform_14, window_bounds = array<i64: 1, 1, 32>}, {pipeline_mode = #tpu.pipeline_mode<synchronous>, transform_indices = @transform_15, window_bounds = array<i64: 1, 1, 32>}, {pipeline_mode = #tpu.pipeline_mode<synchronous>, transform_indices = @transform_16, window_bounds = array<i64: 1, 32>}, {pipeline_mode = #tpu.pipeline_mode<synchronous>, transform_indices = @transform_17, window_bounds = array<i64: 1, 32>}, {pipeline_mode = #tpu.pipeline_mode<synchronous>, transform_indices = @transform_18, window_bounds = array<i64: 4, 32, 8>}, {transform_indices = @transform_19, window_bounds = array<i64: 1, 16, 12>}, {pipeline_mode = #tpu.pipeline_mode<synchronous>, transform_indices = @transform_20, window_bounds = array<i64: 16, 32>}, {pipeline_mode = #tpu.pipeline_mode<synchronous>, transform_indices = @transform_21, window_bounds = array<i64: 16, 16>}, {pipeline_mode = #tpu.pipeline_mode<synchronous>, transform_indices = @transform_22, window_bounds = array<i64: 12, 32>}, {pipeline_mode = #tpu.pipeline_mode<synchronous>, transform_indices = @transform_23, window_bounds = array<i64: 1, 32, 96>}, {pipeline_mode = #tpu.pipeline_mode<synchronous>, transform_indices = @transform_24, window_bounds = array<i64: 1, 1, 96>}, {pipeline_mode = #tpu.pipeline_mode<synchronous>, transform_indices = @transform_25, window_bounds = array<i64: 1, 32, 32>}, {pipeline_mode = #tpu.pipeline_mode<synchronous>, transform_indices = @transform_26, window_bounds = array<i64: 1, 1, 32>}, {pipeline_mode = #tpu.pipeline_mode<synchronous>, transform_indices = @transform_27, window_bounds = array<i64: 1, 1, 32>}, {pipeline_mode = #tpu.pipeline_mode<synchronous>, transform_indices = @transform_28, window_bounds = array<i64: 1, 1, 32>}, {pipeline_mode = #tpu.pipeline_mode<synchronous>, transform_indices = @transform_29, window_bounds = array<i64: 1, 32, 64>}, {pipeline_mode = #tpu.pipeline_mode<synchronous>, transform_indices = @transform_30, window_bounds = array<i64: 1, 1, 64>}, {pipeline_mode = #tpu.pipeline_mode<synchronous>, transform_indices = @transform_31, window_bounds = array<i64: 1, 64, 32>}, {pipeline_mode = #tpu.pipeline_mode<synchronous>, transform_indices = @transform_32, window_bounds = array<i64: 1, 1, 32>}, {pipeline_mode = #tpu.pipeline_mode<synchronous>, transform_indices = @transform_33, window_bounds = array<i64: 1, 1, 32>}, {pipeline_mode = #tpu.pipeline_mode<synchronous>, transform_indices = @transform_34, window_bounds = array<i64: 1, 1, 32>}, {pipeline_mode = #tpu.pipeline_mode<synchronous>, transform_indices = @transform_35, window_bounds = array<i64: 1, 32>}, {pipeline_mode = #tpu.pipeline_mode<synchronous>, transform_indices = @transform_36, window_bounds = array<i64: 1, 32>}, {pipeline_mode = #tpu.pipeline_mode<synchronous>, transform_indices = @transform_37, window_bounds = array<i64: 4, 32, 8>}, {pipeline_mode = #tpu.pipeline_mode<synchronous>, transform_indices = @transform_38, window_bounds = array<i64: 1, 8>}, {transform_indices = @transform_39, window_bounds = array<i64: 1, 4, 8>}]} {
    %c0 = arith.constant 0 : index
    %c0_0 = arith.constant 0 : index
    %c0_1 = arith.constant 0 : index
    %0 = vector.load %arg1[%c0, %c0_0, %c0_1] : memref<1x16x12xbf16, #tpu.memory_space<vmem>>, vector<1x16x12xbf16>
    %1 = vector.shape_cast %0 : vector<1x16x12xbf16> to vector<16x12xbf16>
    %c0_2 = arith.constant 0 : index
    %c0_3 = arith.constant 0 : index
    %2 = vector.load %arg4[%c0_2, %c0_3] : memref<12x32xbf16, #tpu.memory_space<vmem>>, vector<12x32xbf16>
    %cst = arith.constant dense<0.000000e+00> : vector<16x32xf32>
    %3 = tpu.matmul %1, %2, %cst {dimension_numbers = #tpu.dot_dimension_numbers<[1], [0], [0], [1], [0, 0, 1, 1], [], []>} : vector<16x12xbf16>, vector<12x32xbf16>, vector<16x32xf32> -> vector<16x32xf32>
    %c0_4 = arith.constant 0 : index
    %c0_5 = arith.constant 0 : index
    %4 = vector.load %arg2[%c0_4, %c0_5] : memref<16x32xf32, #tpu.memory_space<vmem>>, vector<16x32xf32>
    %5 = arith.addf %3, %4 : vector<16x32xf32>
    %c0_6 = arith.constant 0 : index
    %c0_7 = arith.constant 0 : index
    %6 = vector.load %arg3[%c0_6, %c0_7] : memref<16x16xf32, #tpu.memory_space<vmem>>, vector<16x16xf32>
    %7 = arith.truncf %5 : vector<16x32xf32> to vector<16x32xbf16>
    %c0_8 = arith.constant 0 : index
    %c0_9 = arith.constant 0 : index
    %c0_10 = arith.constant 0 : index
    %8 = vector.load %arg5[%c0_8, %c0_9, %c0_10] : memref<1x32x96xbf16, #tpu.memory_space<vmem>>, vector<1x32x96xbf16>
    %9 = vector.shape_cast %8 : vector<1x32x96xbf16> to vector<32x96xbf16>
    %cst_11 = arith.constant dense<0.000000e+00> : vector<16x96xf32>
    %10 = tpu.matmul %7, %9, %cst_11 {dimension_numbers = #tpu.dot_dimension_numbers<[1], [0], [0], [1], [0, 0, 1, 1], [], []>} : vector<16x32xbf16>, vector<32x96xbf16>, vector<16x96xf32> -> vector<16x96xf32>
    %c0_12 = arith.constant 0 : index
    %c0_13 = arith.constant 0 : index
    %c0_14 = arith.constant 0 : index
    %11 = vector.load %arg6[%c0_12, %c0_13, %c0_14] : memref<1x1x96xf32, #tpu.memory_space<vmem>>, vector<1x1x96xf32>
    %12 = vector.shape_cast %11 : vector<1x1x96xf32> to vector<1x96xf32>
    %13 = vector.broadcast %12 : vector<1x96xf32> to vector<16x96xf32>
    %14 = arith.addf %10, %13 : vector<16x96xf32>
    %15 = vector.extract_strided_slice %14 {offsets = [0, 0], sizes = [16, 32], strides = [1, 1]} : vector<16x96xf32> to vector<16x32xf32>
    %cst_15 = arith.constant 0.353553385 : f32
    %16 = vector.broadcast %cst_15 : f32 to vector<16x32xf32>
    %17 = arith.mulf %15, %16 : vector<16x32xf32>
    %18 = arith.truncf %17 : vector<16x32xf32> to vector<16x32xbf16>
    %19 = vector.extract_strided_slice %14 {offsets = [0, 32], sizes = [16, 32], strides = [1, 1]} : vector<16x96xf32> to vector<16x32xf32>
    %20 = arith.truncf %19 : vector<16x32xf32> to vector<16x32xbf16>
    %21 = vector.extract_strided_slice %14 {offsets = [0, 64], sizes = [16, 32], strides = [1, 1]} : vector<16x96xf32> to vector<16x32xf32>
    %22 = arith.truncf %21 : vector<16x32xf32> to vector<16x32xbf16>
    %c0_16 = arith.constant 0 : index
    %c0_17 = arith.constant 0 : index
    %c0_18 = arith.constant 0 : index
    %23 = vector.load %arg7[%c0_16, %c0_17, %c0_18] : memref<1x32x32xbf16, #tpu.memory_space<vmem>>, vector<1x32x32xbf16>
    %24 = vector.shape_cast %23 : vector<1x32x32xbf16> to vector<32x32xbf16>
    %cst_19 = arith.constant 0.000000e+00 : f32
    %25 = vector.broadcast %cst_19 : f32 to vector<16x32xf32>
    %26 = vector.extract_strided_slice %18 {offsets = [0, 0], sizes = [16, 8], strides = [1, 1]} : vector<16x32xbf16> to vector<16x8xbf16>
    %27 = vector.extract_strided_slice %20 {offsets = [0, 0], sizes = [16, 8], strides = [1, 1]} : vector<16x32xbf16> to vector<16x8xbf16>
    "tpu.trace_start"() <{level = 10 : i32, message = "sd,td->st"}> : () -> ()
    %cst_20 = arith.constant dense<0.000000e+00> : vector<16x16xf32>
    %28 = tpu.matmul %26, %27, %cst_20 {dimension_numbers = #tpu.dot_dimension_numbers<[1], [1], [0], [0], [0, 0, 1, 0], [], []>} : vector<16x8xbf16>, vector<16x8xbf16>, vector<16x16xf32> -> vector<16x16xf32>
    "tpu.trace_stop"() : () -> ()
    %29 = arith.addf %28, %6 : vector<16x16xf32>
    %cst_21 = arith.constant dense<0xFF800000> : vector<16xf32>
    %30 = vector.multi_reduction <maximumf>, %29, %cst_21 [1] : vector<16x16xf32> to vector<16xf32>
    %31 = vector.shape_cast %30 : vector<16xf32> to vector<16x1xf32>
    %32 = vector.broadcast %31 : vector<16x1xf32> to vector<16x16xf32>
    %33 = arith.subf %29, %32 : vector<16x16xf32>
    %34 = math.exp %33 : vector<16x16xf32>
    %cst_22 = arith.constant dense<0.000000e+00> : vector<16xf32>
    %35 = vector.multi_reduction <add>, %34, %cst_22 [1] : vector<16x16xf32> to vector<16xf32>
    %36 = vector.shape_cast %35 : vector<16xf32> to vector<16x1xf32>
    %37 = tpu.reciprocal %36 {approx = true} : vector<16x1xf32> -> vector<16x1xf32>
    %38 = vector.broadcast %37 : vector<16x1xf32> to vector<16x16xf32>
    %39 = arith.mulf %34, %38 : vector<16x16xf32>
    %40 = arith.truncf %39 : vector<16x16xf32> to vector<16x16xbf16>
    %41 = vector.extract_strided_slice %22 {offsets = [0, 0], sizes = [16, 8], strides = [1, 1]} : vector<16x32xbf16> to vector<16x8xbf16>
    %cst_23 = arith.constant dense<0.000000e+00> : vector<16x8xf32>
    %42 = tpu.matmul %40, %41, %cst_23 {dimension_numbers = #tpu.dot_dimension_numbers<[1], [0], [0], [1], [0, 0, 1, 1], [], []>} : vector<16x16xbf16>, vector<16x8xbf16>, vector<16x8xf32> -> vector<16x8xf32>
    %43 = arith.truncf %42 : vector<16x8xf32> to vector<16x8xbf16>
    %44 = vector.extract_strided_slice %24 {offsets = [0, 0], sizes = [8, 32], strides = [1, 1]} : vector<32x32xbf16> to vector<8x32xbf16>
    %cst_24 = arith.constant dense<0.000000e+00> : vector<16x32xf32>
    %45 = tpu.matmul %43, %44, %cst_24 {dimension_numbers = #tpu.dot_dimension_numbers<[1], [0], [0], [1], [0, 0, 1, 1], [], []>} : vector<16x8xbf16>, vector<8x32xbf16>, vector<16x32xf32> -> vector<16x32xf32>
    %46 = arith.addf %25, %45 : vector<16x32xf32>
    %47 = vector.extract_strided_slice %18 {offsets = [0, 8], sizes = [16, 8], strides = [1, 1]} : vector<16x32xbf16> to vector<16x8xbf16>
    %48 = vector.extract_strided_slice %20 {offsets = [0, 8], sizes = [16, 8], strides = [1, 1]} : vector<16x32xbf16> to vector<16x8xbf16>
    "tpu.trace_start"() <{level = 10 : i32, message = "sd,td->st"}> : () -> ()
    %cst_25 = arith.constant dense<0.000000e+00> : vector<16x16xf32>
    %49 = tpu.matmul %47, %48, %cst_25 {dimension_numbers = #tpu.dot_dimension_numbers<[1], [1], [0], [0], [0, 0, 1, 0], [], []>} : vector<16x8xbf16>, vector<16x8xbf16>, vector<16x16xf32> -> vector<16x16xf32>
    "tpu.trace_stop"() : () -> ()
    %50 = arith.addf %49, %6 : vector<16x16xf32>
    %cst_26 = arith.constant dense<0xFF800000> : vector<16xf32>
    %51 = vector.multi_reduction <maximumf>, %50, %cst_26 [1] : vector<16x16xf32> to vector<16xf32>
    %52 = vector.shape_cast %51 : vector<16xf32> to vector<16x1xf32>
    %53 = vector.broadcast %52 : vector<16x1xf32> to vector<16x16xf32>
    %54 = arith.subf %50, %53 : vector<16x16xf32>
    %55 = math.exp %54 : vector<16x16xf32>
    %cst_27 = arith.constant dense<0.000000e+00> : vector<16xf32>
    %56 = vector.multi_reduction <add>, %55, %cst_27 [1] : vector<16x16xf32> to vector<16xf32>
    %57 = vector.shape_cast %56 : vector<16xf32> to vector<16x1xf32>
    %58 = tpu.reciprocal %57 {approx = true} : vector<16x1xf32> -> vector<16x1xf32>
    %59 = vector.broadcast %58 : vector<16x1xf32> to vector<16x16xf32>
    %60 = arith.mulf %55, %59 : vector<16x16xf32>
    %61 = arith.truncf %60 : vector<16x16xf32> to vector<16x16xbf16>
    %62 = vector.extract_strided_slice %22 {offsets = [0, 8], sizes = [16, 8], strides = [1, 1]} : vector<16x32xbf16> to vector<16x8xbf16>
    %cst_28 = arith.constant dense<0.000000e+00> : vector<16x8xf32>
    %63 = tpu.matmul %61, %62, %cst_28 {dimension_numbers = #tpu.dot_dimension_numbers<[1], [0], [0], [1], [0, 0, 1, 1], [], []>} : vector<16x16xbf16>, vector<16x8xbf16>, vector<16x8xf32> -> vector<16x8xf32>
    %64 = arith.truncf %63 : vector<16x8xf32> to vector<16x8xbf16>
    %65 = vector.extract_strided_slice %24 {offsets = [8, 0], sizes = [8, 32], strides = [1, 1]} : vector<32x32xbf16> to vector<8x32xbf16>
    %cst_29 = arith.constant dense<0.000000e+00> : vector<16x32xf32>
    %66 = tpu.matmul %64, %65, %cst_29 {dimension_numbers = #tpu.dot_dimension_numbers<[1], [0], [0], [1], [0, 0, 1, 1], [], []>} : vector<16x8xbf16>, vector<8x32xbf16>, vector<16x32xf32> -> vector<16x32xf32>
    %67 = arith.addf %46, %66 : vector<16x32xf32>
    %68 = vector.extract_strided_slice %18 {offsets = [0, 16], sizes = [16, 8], strides = [1, 1]} : vector<16x32xbf16> to vector<16x8xbf16>
    %69 = vector.extract_strided_slice %20 {offsets = [0, 16], sizes = [16, 8], strides = [1, 1]} : vector<16x32xbf16> to vector<16x8xbf16>
    "tpu.trace_start"() <{level = 10 : i32, message = "sd,td->st"}> : () -> ()
    %cst_30 = arith.constant dense<0.000000e+00> : vector<16x16xf32>
    %70 = tpu.matmul %68, %69, %cst_30 {dimension_numbers = #tpu.dot_dimension_numbers<[1], [1], [0], [0], [0, 0, 1, 0], [], []>} : vector<16x8xbf16>, vector<16x8xbf16>, vector<16x16xf32> -> vector<16x16xf32>
    "tpu.trace_stop"() : () -> ()
    %71 = arith.addf %70, %6 : vector<16x16xf32>
    %cst_31 = arith.constant dense<0xFF800000> : vector<16xf32>
    %72 = vector.multi_reduction <maximumf>, %71, %cst_31 [1] : vector<16x16xf32> to vector<16xf32>
    %73 = vector.shape_cast %72 : vector<16xf32> to vector<16x1xf32>
    %74 = vector.broadcast %73 : vector<16x1xf32> to vector<16x16xf32>
    %75 = arith.subf %71, %74 : vector<16x16xf32>
    %76 = math.exp %75 : vector<16x16xf32>
    %cst_32 = arith.constant dense<0.000000e+00> : vector<16xf32>
    %77 = vector.multi_reduction <add>, %76, %cst_32 [1] : vector<16x16xf32> to vector<16xf32>
    %78 = vector.shape_cast %77 : vector<16xf32> to vector<16x1xf32>
    %79 = tpu.reciprocal %78 {approx = true} : vector<16x1xf32> -> vector<16x1xf32>
    %80 = vector.broadcast %79 : vector<16x1xf32> to vector<16x16xf32>
    %81 = arith.mulf %76, %80 : vector<16x16xf32>
    %82 = arith.truncf %81 : vector<16x16xf32> to vector<16x16xbf16>
    %83 = vector.extract_strided_slice %22 {offsets = [0, 16], sizes = [16, 8], strides = [1, 1]} : vector<16x32xbf16> to vector<16x8xbf16>
    %cst_33 = arith.constant dense<0.000000e+00> : vector<16x8xf32>
    %84 = tpu.matmul %82, %83, %cst_33 {dimension_numbers = #tpu.dot_dimension_numbers<[1], [0], [0], [1], [0, 0, 1, 1], [], []>} : vector<16x16xbf16>, vector<16x8xbf16>, vector<16x8xf32> -> vector<16x8xf32>
    %85 = arith.truncf %84 : vector<16x8xf32> to vector<16x8xbf16>
    %86 = vector.extract_strided_slice %24 {offsets = [16, 0], sizes = [8, 32], strides = [1, 1]} : vector<32x32xbf16> to vector<8x32xbf16>
    %cst_34 = arith.constant dense<0.000000e+00> : vector<16x32xf32>
    %87 = tpu.matmul %85, %86, %cst_34 {dimension_numbers = #tpu.dot_dimension_numbers<[1], [0], [0], [1], [0, 0, 1, 1], [], []>} : vector<16x8xbf16>, vector<8x32xbf16>, vector<16x32xf32> -> vector<16x32xf32>
    %88 = arith.addf %67, %87 : vector<16x32xf32>
    %89 = vector.extract_strided_slice %18 {offsets = [0, 24], sizes = [16, 8], strides = [1, 1]} : vector<16x32xbf16> to vector<16x8xbf16>
    %90 = vector.extract_strided_slice %20 {offsets = [0, 24], sizes = [16, 8], strides = [1, 1]} : vector<16x32xbf16> to vector<16x8xbf16>
    "tpu.trace_start"() <{level = 10 : i32, message = "sd,td->st"}> : () -> ()
    %cst_35 = arith.constant dense<0.000000e+00> : vector<16x16xf32>
    %91 = tpu.matmul %89, %90, %cst_35 {dimension_numbers = #tpu.dot_dimension_numbers<[1], [1], [0], [0], [0, 0, 1, 0], [], []>} : vector<16x8xbf16>, vector<16x8xbf16>, vector<16x16xf32> -> vector<16x16xf32>
    "tpu.trace_stop"() : () -> ()
    %92 = arith.addf %91, %6 : vector<16x16xf32>
    %cst_36 = arith.constant dense<0xFF800000> : vector<16xf32>
    %93 = vector.multi_reduction <maximumf>, %92, %cst_36 [1] : vector<16x16xf32> to vector<16xf32>
    %94 = vector.shape_cast %93 : vector<16xf32> to vector<16x1xf32>
    %95 = vector.broadcast %94 : vector<16x1xf32> to vector<16x16xf32>
    %96 = arith.subf %92, %95 : vector<16x16xf32>
    %97 = math.exp %96 : vector<16x16xf32>
    %cst_37 = arith.constant dense<0.000000e+00> : vector<16xf32>
    %98 = vector.multi_reduction <add>, %97, %cst_37 [1] : vector<16x16xf32> to vector<16xf32>
    %99 = vector.shape_cast %98 : vector<16xf32> to vector<16x1xf32>
    %100 = tpu.reciprocal %99 {approx = true} : vector<16x1xf32> -> vector<16x1xf32>
    %101 = vector.broadcast %100 : vector<16x1xf32> to vector<16x16xf32>
    %102 = arith.mulf %97, %101 : vector<16x16xf32>
    %103 = arith.truncf %102 : vector<16x16xf32> to vector<16x16xbf16>
    %104 = vector.extract_strided_slice %22 {offsets = [0, 24], sizes = [16, 8], strides = [1, 1]} : vector<16x32xbf16> to vector<16x8xbf16>
    %cst_38 = arith.constant dense<0.000000e+00> : vector<16x8xf32>
    %105 = tpu.matmul %103, %104, %cst_38 {dimension_numbers = #tpu.dot_dimension_numbers<[1], [0], [0], [1], [0, 0, 1, 1], [], []>} : vector<16x16xbf16>, vector<16x8xbf16>, vector<16x8xf32> -> vector<16x8xf32>
    %106 = arith.truncf %105 : vector<16x8xf32> to vector<16x8xbf16>
    %107 = vector.extract_strided_slice %24 {offsets = [24, 0], sizes = [8, 32], strides = [1, 1]} : vector<32x32xbf16> to vector<8x32xbf16>
    %cst_39 = arith.constant dense<0.000000e+00> : vector<16x32xf32>
    %108 = tpu.matmul %106, %107, %cst_39 {dimension_numbers = #tpu.dot_dimension_numbers<[1], [0], [0], [1], [0, 0, 1, 1], [], []>} : vector<16x8xbf16>, vector<8x32xbf16>, vector<16x32xf32> -> vector<16x32xf32>
    %109 = arith.addf %88, %108 : vector<16x32xf32>
    %110 = arith.addf %5, %109 : vector<16x32xf32>
    %c0_40 = arith.constant 0 : index
    %c0_41 = arith.constant 0 : index
    %c0_42 = arith.constant 0 : index
    %111 = vector.load %arg8[%c0_40, %c0_41, %c0_42] : memref<1x1x32xf32, #tpu.memory_space<vmem>>, vector<1x1x32xf32>
    %112 = vector.shape_cast %111 : vector<1x1x32xf32> to vector<1x32xf32>
    %113 = vector.broadcast %112 : vector<1x32xf32> to vector<16x32xf32>
    %114 = arith.addf %110, %113 : vector<16x32xf32>
    %c0_43 = arith.constant 0 : index
    %c0_44 = arith.constant 0 : index
    %c0_45 = arith.constant 0 : index
    %115 = vector.load %arg9[%c0_43, %c0_44, %c0_45] : memref<1x1x32xf32, #tpu.memory_space<vmem>>, vector<1x1x32xf32>
    %116 = vector.shape_cast %115 : vector<1x1x32xf32> to vector<1x32xf32>
    %c0_46 = arith.constant 0 : index
    %c0_47 = arith.constant 0 : index
    %c0_48 = arith.constant 0 : index
    %117 = vector.load %arg10[%c0_46, %c0_47, %c0_48] : memref<1x1x32xf32, #tpu.memory_space<vmem>>, vector<1x1x32xf32>
    %118 = vector.shape_cast %117 : vector<1x1x32xf32> to vector<1x32xf32>
    %cst_49 = arith.constant dense<0.000000e+00> : vector<16xf32>
    %119 = vector.multi_reduction <add>, %114, %cst_49 [1] : vector<16x32xf32> to vector<16xf32>
    %120 = vector.shape_cast %119 : vector<16xf32> to vector<16x1xf32>
    %cst_50 = arith.constant 3.200000e+01 : f32
    %121 = vector.broadcast %cst_50 : f32 to vector<16x1xf32>
    %122 = arith.divf %120, %121 : vector<16x1xf32>
    %123 = vector.broadcast %122 : vector<16x1xf32> to vector<16x32xf32>
    %124 = arith.subf %114, %123 : vector<16x32xf32>
    %125 = arith.mulf %124, %124 : vector<16x32xf32>
    %cst_51 = arith.constant dense<0.000000e+00> : vector<16xf32>
    %126 = vector.multi_reduction <add>, %125, %cst_51 [1] : vector<16x32xf32> to vector<16xf32>
    %127 = vector.shape_cast %126 : vector<16xf32> to vector<16x1xf32>
    %cst_52 = arith.constant 3.200000e+01 : f32
    %128 = vector.broadcast %cst_52 : f32 to vector<16x1xf32>
    %129 = arith.divf %127, %128 : vector<16x1xf32>
    %cst_53 = arith.constant 9.99999974E-6 : f32
    %130 = vector.broadcast %cst_53 : f32 to vector<16x1xf32>
    %131 = arith.addf %129, %130 : vector<16x1xf32>
    %132 = math.rsqrt %131 : vector<16x1xf32>
    %133 = vector.broadcast %132 : vector<16x1xf32> to vector<16x32xf32>
    %134 = arith.mulf %124, %133 : vector<16x32xf32>
    %135 = vector.broadcast %116 : vector<1x32xf32> to vector<16x32xf32>
    %136 = arith.mulf %134, %135 : vector<16x32xf32>
    %137 = vector.broadcast %118 : vector<1x32xf32> to vector<16x32xf32>
    %138 = arith.addf %136, %137 : vector<16x32xf32>
    %139 = arith.truncf %138 : vector<16x32xf32> to vector<16x32xbf16>
    %c0_54 = arith.constant 0 : index
    %c0_55 = arith.constant 0 : index
    %c0_56 = arith.constant 0 : index
    %140 = vector.load %arg11[%c0_54, %c0_55, %c0_56] : memref<1x32x64xbf16, #tpu.memory_space<vmem>>, vector<1x32x64xbf16>
    %141 = vector.shape_cast %140 : vector<1x32x64xbf16> to vector<32x64xbf16>
    %cst_57 = arith.constant dense<0.000000e+00> : vector<16x64xf32>
    %142 = tpu.matmul %139, %141, %cst_57 {dimension_numbers = #tpu.dot_dimension_numbers<[1], [0], [0], [1], [0, 0, 1, 1], [], []>} : vector<16x32xbf16>, vector<32x64xbf16>, vector<16x64xf32> -> vector<16x64xf32>
    %c0_58 = arith.constant 0 : index
    %c0_59 = arith.constant 0 : index
    %c0_60 = arith.constant 0 : index
    %143 = vector.load %arg12[%c0_58, %c0_59, %c0_60] : memref<1x1x64xf32, #tpu.memory_space<vmem>>, vector<1x1x64xf32>
    %144 = vector.shape_cast %143 : vector<1x1x64xf32> to vector<1x64xf32>
    %145 = vector.broadcast %144 : vector<1x64xf32> to vector<16x64xf32>
    %146 = arith.addf %142, %145 : vector<16x64xf32>
    %147 = arith.mulf %146, %146 : vector<16x64xf32>
    %148 = arith.mulf %146, %147 : vector<16x64xf32>
    %cst_61 = arith.constant 4.471500e-02 : f32
    %149 = vector.broadcast %cst_61 : f32 to vector<16x64xf32>
    %150 = arith.mulf %149, %148 : vector<16x64xf32>
    %151 = arith.addf %146, %150 : vector<16x64xf32>
    %cst_62 = arith.constant 0.797884583 : f32
    %152 = vector.broadcast %cst_62 : f32 to vector<16x64xf32>
    %153 = arith.mulf %152, %151 : vector<16x64xf32>
    %154 = math.tanh %153 : vector<16x64xf32>
    %cst_63 = arith.constant 1.000000e+00 : f32
    %155 = vector.broadcast %cst_63 : f32 to vector<16x64xf32>
    %156 = arith.addf %155, %154 : vector<16x64xf32>
    %cst_64 = arith.constant 5.000000e-01 : f32
    %157 = vector.broadcast %cst_64 : f32 to vector<16x64xf32>
    %158 = arith.mulf %157, %156 : vector<16x64xf32>
    %159 = arith.mulf %146, %158 : vector<16x64xf32>
    %160 = arith.truncf %159 : vector<16x64xf32> to vector<16x64xbf16>
    %c0_65 = arith.constant 0 : index
    %c0_66 = arith.constant 0 : index
    %c0_67 = arith.constant 0 : index
    %161 = vector.load %arg13[%c0_65, %c0_66, %c0_67] : memref<1x64x32xbf16, #tpu.memory_space<vmem>>, vector<1x64x32xbf16>
    %162 = vector.shape_cast %161 : vector<1x64x32xbf16> to vector<64x32xbf16>
    %cst_68 = arith.constant dense<0.000000e+00> : vector<16x32xf32>
    %163 = tpu.matmul %160, %162, %cst_68 {dimension_numbers = #tpu.dot_dimension_numbers<[1], [0], [0], [1], [0, 0, 1, 1], [], []>} : vector<16x64xbf16>, vector<64x32xbf16>, vector<16x32xf32> -> vector<16x32xf32>
    %c0_69 = arith.constant 0 : index
    %c0_70 = arith.constant 0 : index
    %c0_71 = arith.constant 0 : index
    %164 = vector.load %arg14[%c0_69, %c0_70, %c0_71] : memref<1x1x32xf32, #tpu.memory_space<vmem>>, vector<1x1x32xf32>
    %165 = vector.shape_cast %164 : vector<1x1x32xf32> to vector<1x32xf32>
    %166 = vector.broadcast %165 : vector<1x32xf32> to vector<16x32xf32>
    %167 = arith.addf %163, %166 : vector<16x32xf32>
    %168 = arith.addf %138, %167 : vector<16x32xf32>
    %c0_72 = arith.constant 0 : index
    %c0_73 = arith.constant 0 : index
    %c0_74 = arith.constant 0 : index
    %169 = vector.load %arg15[%c0_72, %c0_73, %c0_74] : memref<1x1x32xf32, #tpu.memory_space<vmem>>, vector<1x1x32xf32>
    %170 = vector.shape_cast %169 : vector<1x1x32xf32> to vector<1x32xf32>
    %c0_75 = arith.constant 0 : index
    %c0_76 = arith.constant 0 : index
    %c0_77 = arith.constant 0 : index
    %171 = vector.load %arg16[%c0_75, %c0_76, %c0_77] : memref<1x1x32xf32, #tpu.memory_space<vmem>>, vector<1x1x32xf32>
    %172 = vector.shape_cast %171 : vector<1x1x32xf32> to vector<1x32xf32>
    %cst_78 = arith.constant dense<0.000000e+00> : vector<16xf32>
    %173 = vector.multi_reduction <add>, %168, %cst_78 [1] : vector<16x32xf32> to vector<16xf32>
    %174 = vector.shape_cast %173 : vector<16xf32> to vector<16x1xf32>
    %cst_79 = arith.constant 3.200000e+01 : f32
    %175 = vector.broadcast %cst_79 : f32 to vector<16x1xf32>
    %176 = arith.divf %174, %175 : vector<16x1xf32>
    %177 = vector.broadcast %176 : vector<16x1xf32> to vector<16x32xf32>
    %178 = arith.subf %168, %177 : vector<16x32xf32>
    %179 = arith.mulf %178, %178 : vector<16x32xf32>
    %cst_80 = arith.constant dense<0.000000e+00> : vector<16xf32>
    %180 = vector.multi_reduction <add>, %179, %cst_80 [1] : vector<16x32xf32> to vector<16xf32>
    %181 = vector.shape_cast %180 : vector<16xf32> to vector<16x1xf32>
    %cst_81 = arith.constant 3.200000e+01 : f32
    %182 = vector.broadcast %cst_81 : f32 to vector<16x1xf32>
    %183 = arith.divf %181, %182 : vector<16x1xf32>
    %cst_82 = arith.constant 9.99999974E-6 : f32
    %184 = vector.broadcast %cst_82 : f32 to vector<16x1xf32>
    %185 = arith.addf %183, %184 : vector<16x1xf32>
    %186 = math.rsqrt %185 : vector<16x1xf32>
    %187 = vector.broadcast %186 : vector<16x1xf32> to vector<16x32xf32>
    %188 = arith.mulf %178, %187 : vector<16x32xf32>
    %189 = vector.broadcast %170 : vector<1x32xf32> to vector<16x32xf32>
    %190 = arith.mulf %188, %189 : vector<16x32xf32>
    %191 = vector.broadcast %172 : vector<1x32xf32> to vector<16x32xf32>
    %192 = arith.addf %190, %191 : vector<16x32xf32>
    %c0_83 = arith.constant 0 : index
    %c0_84 = arith.constant 0 : index
    %193 = vector.load %arg17[%c0_83, %c0_84] : memref<1x32xf32, #tpu.memory_space<vmem>>, vector<1x32xf32>
    %c0_85 = arith.constant 0 : index
    %c0_86 = arith.constant 0 : index
    %194 = vector.load %arg18[%c0_85, %c0_86] : memref<1x32xf32, #tpu.memory_space<vmem>>, vector<1x32xf32>
    %cst_87 = arith.constant dense<0.000000e+00> : vector<16xf32>
    %195 = vector.multi_reduction <add>, %192, %cst_87 [1] : vector<16x32xf32> to vector<16xf32>
    %196 = vector.shape_cast %195 : vector<16xf32> to vector<16x1xf32>
    %cst_88 = arith.constant 3.200000e+01 : f32
    %197 = vector.broadcast %cst_88 : f32 to vector<16x1xf32>
    %198 = arith.divf %196, %197 : vector<16x1xf32>
    %199 = vector.broadcast %198 : vector<16x1xf32> to vector<16x32xf32>
    %200 = arith.subf %192, %199 : vector<16x32xf32>
    %201 = arith.mulf %200, %200 : vector<16x32xf32>
    %cst_89 = arith.constant dense<0.000000e+00> : vector<16xf32>
    %202 = vector.multi_reduction <add>, %201, %cst_89 [1] : vector<16x32xf32> to vector<16xf32>
    %203 = vector.shape_cast %202 : vector<16xf32> to vector<16x1xf32>
    %cst_90 = arith.constant 3.200000e+01 : f32
    %204 = vector.broadcast %cst_90 : f32 to vector<16x1xf32>
    %205 = arith.divf %203, %204 : vector<16x1xf32>
    %cst_91 = arith.constant 9.99999974E-6 : f32
    %206 = vector.broadcast %cst_91 : f32 to vector<16x1xf32>
    %207 = arith.addf %205, %206 : vector<16x1xf32>
    %208 = math.rsqrt %207 : vector<16x1xf32>
    %209 = vector.broadcast %208 : vector<16x1xf32> to vector<16x32xf32>
    %210 = arith.mulf %200, %209 : vector<16x32xf32>
    %211 = vector.broadcast %193 : vector<1x32xf32> to vector<16x32xf32>
    %212 = arith.mulf %210, %211 : vector<16x32xf32>
    %213 = vector.broadcast %194 : vector<1x32xf32> to vector<16x32xf32>
    %214 = arith.addf %212, %213 : vector<16x32xf32>
    %215 = arith.truncf %214 : vector<16x32xf32> to vector<16x32xbf16>
    %cst_92 = arith.constant 0.000000e+00 : f32
    %216 = vector.broadcast %cst_92 : f32 to vector<4x8xf32>
    %217 = vector.extract_strided_slice %215 {offsets = [0, 0], sizes = [4, 32], strides = [1, 1]} : vector<16x32xbf16> to vector<4x32xbf16>
    %c0_93 = arith.constant 0 : index
    %c0_94 = arith.constant 0 : index
    %c0_95 = arith.constant 0 : index
    %218 = vector.load %arg19[%c0_93, %c0_94, %c0_95] : memref<4x32x8xbf16, #tpu.memory_space<vmem>>, vector<1x32x8xbf16>
    %219 = vector.shape_cast %218 : vector<1x32x8xbf16> to vector<32x8xbf16>
    %cst_96 = arith.constant dense<0.000000e+00> : vector<4x8xf32>
    %220 = tpu.matmul %217, %219, %cst_96 {dimension_numbers = #tpu.dot_dimension_numbers<[1], [0], [0], [1], [0, 0, 1, 1], [], []>} : vector<4x32xbf16>, vector<32x8xbf16>, vector<4x8xf32> -> vector<4x8xf32>
    %221 = arith.addf %216, %220 : vector<4x8xf32>
    %222 = vector.extract_strided_slice %215 {offsets = [4, 0], sizes = [4, 32], strides = [1, 1]} : vector<16x32xbf16> to vector<4x32xbf16>
    %c1 = arith.constant 1 : index
    %c0_97 = arith.constant 0 : index
    %c0_98 = arith.constant 0 : index
    %223 = vector.load %arg19[%c1, %c0_97, %c0_98] : memref<4x32x8xbf16, #tpu.memory_space<vmem>>, vector<1x32x8xbf16>
    %224 = vector.shape_cast %223 : vector<1x32x8xbf16> to vector<32x8xbf16>
    %cst_99 = arith.constant dense<0.000000e+00> : vector<4x8xf32>
    %225 = tpu.matmul %222, %224, %cst_99 {dimension_numbers = #tpu.dot_dimension_numbers<[1], [0], [0], [1], [0, 0, 1, 1], [], []>} : vector<4x32xbf16>, vector<32x8xbf16>, vector<4x8xf32> -> vector<4x8xf32>
    %226 = arith.addf %221, %225 : vector<4x8xf32>
    %227 = vector.extract_strided_slice %215 {offsets = [8, 0], sizes = [4, 32], strides = [1, 1]} : vector<16x32xbf16> to vector<4x32xbf16>
    %c2 = arith.constant 2 : index
    %c0_100 = arith.constant 0 : index
    %c0_101 = arith.constant 0 : index
    %228 = vector.load %arg19[%c2, %c0_100, %c0_101] : memref<4x32x8xbf16, #tpu.memory_space<vmem>>, vector<1x32x8xbf16>
    %229 = vector.shape_cast %228 : vector<1x32x8xbf16> to vector<32x8xbf16>
    %cst_102 = arith.constant dense<0.000000e+00> : vector<4x8xf32>
    %230 = tpu.matmul %227, %229, %cst_102 {dimension_numbers = #tpu.dot_dimension_numbers<[1], [0], [0], [1], [0, 0, 1, 1], [], []>} : vector<4x32xbf16>, vector<32x8xbf16>, vector<4x8xf32> -> vector<4x8xf32>
    %231 = arith.addf %226, %230 : vector<4x8xf32>
    %232 = vector.extract_strided_slice %215 {offsets = [12, 0], sizes = [4, 32], strides = [1, 1]} : vector<16x32xbf16> to vector<4x32xbf16>
    %c3 = arith.constant 3 : index
    %c0_103 = arith.constant 0 : index
    %c0_104 = arith.constant 0 : index
    %233 = vector.load %arg19[%c3, %c0_103, %c0_104] : memref<4x32x8xbf16, #tpu.memory_space<vmem>>, vector<1x32x8xbf16>
    %234 = vector.shape_cast %233 : vector<1x32x8xbf16> to vector<32x8xbf16>
    %cst_105 = arith.constant dense<0.000000e+00> : vector<4x8xf32>
    %235 = tpu.matmul %232, %234, %cst_105 {dimension_numbers = #tpu.dot_dimension_numbers<[1], [0], [0], [1], [0, 0, 1, 1], [], []>} : vector<4x32xbf16>, vector<32x8xbf16>, vector<4x8xf32> -> vector<4x8xf32>
    %236 = arith.addf %231, %235 : vector<4x8xf32>
    %c0_106 = arith.constant 0 : index
    %c0_107 = arith.constant 0 : index
    %c0_108 = arith.constant 0 : index
    %237 = vector.load %arg20[%c0_106, %c0_107, %c0_108] : memref<1x16x12xbf16, #tpu.memory_space<vmem>>, vector<1x16x12xbf16>
    %238 = vector.shape_cast %237 : vector<1x16x12xbf16> to vector<16x12xbf16>
    %c0_109 = arith.constant 0 : index
    %c0_110 = arith.constant 0 : index
    %239 = vector.load %arg23[%c0_109, %c0_110] : memref<12x32xbf16, #tpu.memory_space<vmem>>, vector<12x32xbf16>
    %cst_111 = arith.constant dense<0.000000e+00> : vector<16x32xf32>
    %240 = tpu.matmul %238, %239, %cst_111 {dimension_numbers = #tpu.dot_dimension_numbers<[1], [0], [0], [1], [0, 0, 1, 1], [], []>} : vector<16x12xbf16>, vector<12x32xbf16>, vector<16x32xf32> -> vector<16x32xf32>
    %c0_112 = arith.constant 0 : index
    %c0_113 = arith.constant 0 : index
    %241 = vector.load %arg21[%c0_112, %c0_113] : memref<16x32xf32, #tpu.memory_space<vmem>>, vector<16x32xf32>
    %242 = arith.addf %240, %241 : vector<16x32xf32>
    %c0_114 = arith.constant 0 : index
    %c0_115 = arith.constant 0 : index
    %243 = vector.load %arg22[%c0_114, %c0_115] : memref<16x16xf32, #tpu.memory_space<vmem>>, vector<16x16xf32>
    %244 = arith.truncf %242 : vector<16x32xf32> to vector<16x32xbf16>
    %c0_116 = arith.constant 0 : index
    %c0_117 = arith.constant 0 : index
    %c0_118 = arith.constant 0 : index
    %245 = vector.load %arg24[%c0_116, %c0_117, %c0_118] : memref<1x32x96xbf16, #tpu.memory_space<vmem>>, vector<1x32x96xbf16>
    %246 = vector.shape_cast %245 : vector<1x32x96xbf16> to vector<32x96xbf16>
    %cst_119 = arith.constant dense<0.000000e+00> : vector<16x96xf32>
    %247 = tpu.matmul %244, %246, %cst_119 {dimension_numbers = #tpu.dot_dimension_numbers<[1], [0], [0], [1], [0, 0, 1, 1], [], []>} : vector<16x32xbf16>, vector<32x96xbf16>, vector<16x96xf32> -> vector<16x96xf32>
    %c0_120 = arith.constant 0 : index
    %c0_121 = arith.constant 0 : index
    %c0_122 = arith.constant 0 : index
    %248 = vector.load %arg25[%c0_120, %c0_121, %c0_122] : memref<1x1x96xf32, #tpu.memory_space<vmem>>, vector<1x1x96xf32>
    %249 = vector.shape_cast %248 : vector<1x1x96xf32> to vector<1x96xf32>
    %250 = vector.broadcast %249 : vector<1x96xf32> to vector<16x96xf32>
    %251 = arith.addf %247, %250 : vector<16x96xf32>
    %252 = vector.extract_strided_slice %251 {offsets = [0, 0], sizes = [16, 32], strides = [1, 1]} : vector<16x96xf32> to vector<16x32xf32>
    %cst_123 = arith.constant 0.353553385 : f32
    %253 = vector.broadcast %cst_123 : f32 to vector<16x32xf32>
    %254 = arith.mulf %252, %253 : vector<16x32xf32>
    %255 = arith.truncf %254 : vector<16x32xf32> to vector<16x32xbf16>
    %256 = vector.extract_strided_slice %251 {offsets = [0, 32], sizes = [16, 32], strides = [1, 1]} : vector<16x96xf32> to vector<16x32xf32>
    %257 = arith.truncf %256 : vector<16x32xf32> to vector<16x32xbf16>
    %258 = vector.extract_strided_slice %251 {offsets = [0, 64], sizes = [16, 32], strides = [1, 1]} : vector<16x96xf32> to vector<16x32xf32>
    %259 = arith.truncf %258 : vector<16x32xf32> to vector<16x32xbf16>
    %c0_124 = arith.constant 0 : index
    %c0_125 = arith.constant 0 : index
    %c0_126 = arith.constant 0 : index
    %260 = vector.load %arg26[%c0_124, %c0_125, %c0_126] : memref<1x32x32xbf16, #tpu.memory_space<vmem>>, vector<1x32x32xbf16>
    %261 = vector.shape_cast %260 : vector<1x32x32xbf16> to vector<32x32xbf16>
    %cst_127 = arith.constant 0.000000e+00 : f32
    %262 = vector.broadcast %cst_127 : f32 to vector<16x32xf32>
    %263 = vector.extract_strided_slice %255 {offsets = [0, 0], sizes = [16, 8], strides = [1, 1]} : vector<16x32xbf16> to vector<16x8xbf16>
    %264 = vector.extract_strided_slice %257 {offsets = [0, 0], sizes = [16, 8], strides = [1, 1]} : vector<16x32xbf16> to vector<16x8xbf16>
    "tpu.trace_start"() <{level = 10 : i32, message = "sd,td->st"}> : () -> ()
    %cst_128 = arith.constant dense<0.000000e+00> : vector<16x16xf32>
    %265 = tpu.matmul %263, %264, %cst_128 {dimension_numbers = #tpu.dot_dimension_numbers<[1], [1], [0], [0], [0, 0, 1, 0], [], []>} : vector<16x8xbf16>, vector<16x8xbf16>, vector<16x16xf32> -> vector<16x16xf32>
    "tpu.trace_stop"() : () -> ()
    %266 = arith.addf %265, %243 : vector<16x16xf32>
    %cst_129 = arith.constant dense<0xFF800000> : vector<16xf32>
    %267 = vector.multi_reduction <maximumf>, %266, %cst_129 [1] : vector<16x16xf32> to vector<16xf32>
    %268 = vector.shape_cast %267 : vector<16xf32> to vector<16x1xf32>
    %269 = vector.broadcast %268 : vector<16x1xf32> to vector<16x16xf32>
    %270 = arith.subf %266, %269 : vector<16x16xf32>
    %271 = math.exp %270 : vector<16x16xf32>
    %cst_130 = arith.constant dense<0.000000e+00> : vector<16xf32>
    %272 = vector.multi_reduction <add>, %271, %cst_130 [1] : vector<16x16xf32> to vector<16xf32>
    %273 = vector.shape_cast %272 : vector<16xf32> to vector<16x1xf32>
    %274 = tpu.reciprocal %273 {approx = true} : vector<16x1xf32> -> vector<16x1xf32>
    %275 = vector.broadcast %274 : vector<16x1xf32> to vector<16x16xf32>
    %276 = arith.mulf %271, %275 : vector<16x16xf32>
    %277 = arith.truncf %276 : vector<16x16xf32> to vector<16x16xbf16>
    %278 = vector.extract_strided_slice %259 {offsets = [0, 0], sizes = [16, 8], strides = [1, 1]} : vector<16x32xbf16> to vector<16x8xbf16>
    %cst_131 = arith.constant dense<0.000000e+00> : vector<16x8xf32>
    %279 = tpu.matmul %277, %278, %cst_131 {dimension_numbers = #tpu.dot_dimension_numbers<[1], [0], [0], [1], [0, 0, 1, 1], [], []>} : vector<16x16xbf16>, vector<16x8xbf16>, vector<16x8xf32> -> vector<16x8xf32>
    %280 = arith.truncf %279 : vector<16x8xf32> to vector<16x8xbf16>
    %281 = vector.extract_strided_slice %261 {offsets = [0, 0], sizes = [8, 32], strides = [1, 1]} : vector<32x32xbf16> to vector<8x32xbf16>
    %cst_132 = arith.constant dense<0.000000e+00> : vector<16x32xf32>
    %282 = tpu.matmul %280, %281, %cst_132 {dimension_numbers = #tpu.dot_dimension_numbers<[1], [0], [0], [1], [0, 0, 1, 1], [], []>} : vector<16x8xbf16>, vector<8x32xbf16>, vector<16x32xf32> -> vector<16x32xf32>
    %283 = arith.addf %262, %282 : vector<16x32xf32>
    %284 = vector.extract_strided_slice %255 {offsets = [0, 8], sizes = [16, 8], strides = [1, 1]} : vector<16x32xbf16> to vector<16x8xbf16>
    %285 = vector.extract_strided_slice %257 {offsets = [0, 8], sizes = [16, 8], strides = [1, 1]} : vector<16x32xbf16> to vector<16x8xbf16>
    "tpu.trace_start"() <{level = 10 : i32, message = "sd,td->st"}> : () -> ()
    %cst_133 = arith.constant dense<0.000000e+00> : vector<16x16xf32>
    %286 = tpu.matmul %284, %285, %cst_133 {dimension_numbers = #tpu.dot_dimension_numbers<[1], [1], [0], [0], [0, 0, 1, 0], [], []>} : vector<16x8xbf16>, vector<16x8xbf16>, vector<16x16xf32> -> vector<16x16xf32>
    "tpu.trace_stop"() : () -> ()
    %287 = arith.addf %286, %243 : vector<16x16xf32>
    %cst_134 = arith.constant dense<0xFF800000> : vector<16xf32>
    %288 = vector.multi_reduction <maximumf>, %287, %cst_134 [1] : vector<16x16xf32> to vector<16xf32>
    %289 = vector.shape_cast %288 : vector<16xf32> to vector<16x1xf32>
    %290 = vector.broadcast %289 : vector<16x1xf32> to vector<16x16xf32>
    %291 = arith.subf %287, %290 : vector<16x16xf32>
    %292 = math.exp %291 : vector<16x16xf32>
    %cst_135 = arith.constant dense<0.000000e+00> : vector<16xf32>
    %293 = vector.multi_reduction <add>, %292, %cst_135 [1] : vector<16x16xf32> to vector<16xf32>
    %294 = vector.shape_cast %293 : vector<16xf32> to vector<16x1xf32>
    %295 = tpu.reciprocal %294 {approx = true} : vector<16x1xf32> -> vector<16x1xf32>
    %296 = vector.broadcast %295 : vector<16x1xf32> to vector<16x16xf32>
    %297 = arith.mulf %292, %296 : vector<16x16xf32>
    %298 = arith.truncf %297 : vector<16x16xf32> to vector<16x16xbf16>
    %299 = vector.extract_strided_slice %259 {offsets = [0, 8], sizes = [16, 8], strides = [1, 1]} : vector<16x32xbf16> to vector<16x8xbf16>
    %cst_136 = arith.constant dense<0.000000e+00> : vector<16x8xf32>
    %300 = tpu.matmul %298, %299, %cst_136 {dimension_numbers = #tpu.dot_dimension_numbers<[1], [0], [0], [1], [0, 0, 1, 1], [], []>} : vector<16x16xbf16>, vector<16x8xbf16>, vector<16x8xf32> -> vector<16x8xf32>
    %301 = arith.truncf %300 : vector<16x8xf32> to vector<16x8xbf16>
    %302 = vector.extract_strided_slice %261 {offsets = [8, 0], sizes = [8, 32], strides = [1, 1]} : vector<32x32xbf16> to vector<8x32xbf16>
    %cst_137 = arith.constant dense<0.000000e+00> : vector<16x32xf32>
    %303 = tpu.matmul %301, %302, %cst_137 {dimension_numbers = #tpu.dot_dimension_numbers<[1], [0], [0], [1], [0, 0, 1, 1], [], []>} : vector<16x8xbf16>, vector<8x32xbf16>, vector<16x32xf32> -> vector<16x32xf32>
    %304 = arith.addf %283, %303 : vector<16x32xf32>
    %305 = vector.extract_strided_slice %255 {offsets = [0, 16], sizes = [16, 8], strides = [1, 1]} : vector<16x32xbf16> to vector<16x8xbf16>
    %306 = vector.extract_strided_slice %257 {offsets = [0, 16], sizes = [16, 8], strides = [1, 1]} : vector<16x32xbf16> to vector<16x8xbf16>
    "tpu.trace_start"() <{level = 10 : i32, message = "sd,td->st"}> : () -> ()
    %cst_138 = arith.constant dense<0.000000e+00> : vector<16x16xf32>
    %307 = tpu.matmul %305, %306, %cst_138 {dimension_numbers = #tpu.dot_dimension_numbers<[1], [1], [0], [0], [0, 0, 1, 0], [], []>} : vector<16x8xbf16>, vector<16x8xbf16>, vector<16x16xf32> -> vector<16x16xf32>
    "tpu.trace_stop"() : () -> ()
    %308 = arith.addf %307, %243 : vector<16x16xf32>
    %cst_139 = arith.constant dense<0xFF800000> : vector<16xf32>
    %309 = vector.multi_reduction <maximumf>, %308, %cst_139 [1] : vector<16x16xf32> to vector<16xf32>
    %310 = vector.shape_cast %309 : vector<16xf32> to vector<16x1xf32>
    %311 = vector.broadcast %310 : vector<16x1xf32> to vector<16x16xf32>
    %312 = arith.subf %308, %311 : vector<16x16xf32>
    %313 = math.exp %312 : vector<16x16xf32>
    %cst_140 = arith.constant dense<0.000000e+00> : vector<16xf32>
    %314 = vector.multi_reduction <add>, %313, %cst_140 [1] : vector<16x16xf32> to vector<16xf32>
    %315 = vector.shape_cast %314 : vector<16xf32> to vector<16x1xf32>
    %316 = tpu.reciprocal %315 {approx = true} : vector<16x1xf32> -> vector<16x1xf32>
    %317 = vector.broadcast %316 : vector<16x1xf32> to vector<16x16xf32>
    %318 = arith.mulf %313, %317 : vector<16x16xf32>
    %319 = arith.truncf %318 : vector<16x16xf32> to vector<16x16xbf16>
    %320 = vector.extract_strided_slice %259 {offsets = [0, 16], sizes = [16, 8], strides = [1, 1]} : vector<16x32xbf16> to vector<16x8xbf16>
    %cst_141 = arith.constant dense<0.000000e+00> : vector<16x8xf32>
    %321 = tpu.matmul %319, %320, %cst_141 {dimension_numbers = #tpu.dot_dimension_numbers<[1], [0], [0], [1], [0, 0, 1, 1], [], []>} : vector<16x16xbf16>, vector<16x8xbf16>, vector<16x8xf32> -> vector<16x8xf32>
    %322 = arith.truncf %321 : vector<16x8xf32> to vector<16x8xbf16>
    %323 = vector.extract_strided_slice %261 {offsets = [16, 0], sizes = [8, 32], strides = [1, 1]} : vector<32x32xbf16> to vector<8x32xbf16>
    %cst_142 = arith.constant dense<0.000000e+00> : vector<16x32xf32>
    %324 = tpu.matmul %322, %323, %cst_142 {dimension_numbers = #tpu.dot_dimension_numbers<[1], [0], [0], [1], [0, 0, 1, 1], [], []>} : vector<16x8xbf16>, vector<8x32xbf16>, vector<16x32xf32> -> vector<16x32xf32>
    %325 = arith.addf %304, %324 : vector<16x32xf32>
    %326 = vector.extract_strided_slice %255 {offsets = [0, 24], sizes = [16, 8], strides = [1, 1]} : vector<16x32xbf16> to vector<16x8xbf16>
    %327 = vector.extract_strided_slice %257 {offsets = [0, 24], sizes = [16, 8], strides = [1, 1]} : vector<16x32xbf16> to vector<16x8xbf16>
    "tpu.trace_start"() <{level = 10 : i32, message = "sd,td->st"}> : () -> ()
    %cst_143 = arith.constant dense<0.000000e+00> : vector<16x16xf32>
    %328 = tpu.matmul %326, %327, %cst_143 {dimension_numbers = #tpu.dot_dimension_numbers<[1], [1], [0], [0], [0, 0, 1, 0], [], []>} : vector<16x8xbf16>, vector<16x8xbf16>, vector<16x16xf32> -> vector<16x16xf32>
    "tpu.trace_stop"() : () -> ()
    %329 = arith.addf %328, %243 : vector<16x16xf32>
    %cst_144 = arith.constant dense<0xFF800000> : vector<16xf32>
    %330 = vector.multi_reduction <maximumf>, %329, %cst_144 [1] : vector<16x16xf32> to vector<16xf32>
    %331 = vector.shape_cast %330 : vector<16xf32> to vector<16x1xf32>
    %332 = vector.broadcast %331 : vector<16x1xf32> to vector<16x16xf32>
    %333 = arith.subf %329, %332 : vector<16x16xf32>
    %334 = math.exp %333 : vector<16x16xf32>
    %cst_145 = arith.constant dense<0.000000e+00> : vector<16xf32>
    %335 = vector.multi_reduction <add>, %334, %cst_145 [1] : vector<16x16xf32> to vector<16xf32>
    %336 = vector.shape_cast %335 : vector<16xf32> to vector<16x1xf32>
    %337 = tpu.reciprocal %336 {approx = true} : vector<16x1xf32> -> vector<16x1xf32>
    %338 = vector.broadcast %337 : vector<16x1xf32> to vector<16x16xf32>
    %339 = arith.mulf %334, %338 : vector<16x16xf32>
    %340 = arith.truncf %339 : vector<16x16xf32> to vector<16x16xbf16>
    %341 = vector.extract_strided_slice %259 {offsets = [0, 24], sizes = [16, 8], strides = [1, 1]} : vector<16x32xbf16> to vector<16x8xbf16>
    %cst_146 = arith.constant dense<0.000000e+00> : vector<16x8xf32>
    %342 = tpu.matmul %340, %341, %cst_146 {dimension_numbers = #tpu.dot_dimension_numbers<[1], [0], [0], [1], [0, 0, 1, 1], [], []>} : vector<16x16xbf16>, vector<16x8xbf16>, vector<16x8xf32> -> vector<16x8xf32>
    %343 = arith.truncf %342 : vector<16x8xf32> to vector<16x8xbf16>
    %344 = vector.extract_strided_slice %261 {offsets = [24, 0], sizes = [8, 32], strides = [1, 1]} : vector<32x32xbf16> to vector<8x32xbf16>
    %cst_147 = arith.constant dense<0.000000e+00> : vector<16x32xf32>
    %345 = tpu.matmul %343, %344, %cst_147 {dimension_numbers = #tpu.dot_dimension_numbers<[1], [0], [0], [1], [0, 0, 1, 1], [], []>} : vector<16x8xbf16>, vector<8x32xbf16>, vector<16x32xf32> -> vector<16x32xf32>
    %346 = arith.addf %325, %345 : vector<16x32xf32>
    %347 = arith.addf %242, %346 : vector<16x32xf32>
    %c0_148 = arith.constant 0 : index
    %c0_149 = arith.constant 0 : index
    %c0_150 = arith.constant 0 : index
    %348 = vector.load %arg27[%c0_148, %c0_149, %c0_150] : memref<1x1x32xf32, #tpu.memory_space<vmem>>, vector<1x1x32xf32>
    %349 = vector.shape_cast %348 : vector<1x1x32xf32> to vector<1x32xf32>
    %350 = vector.broadcast %349 : vector<1x32xf32> to vector<16x32xf32>
    %351 = arith.addf %347, %350 : vector<16x32xf32>
    %c0_151 = arith.constant 0 : index
    %c0_152 = arith.constant 0 : index
    %c0_153 = arith.constant 0 : index
    %352 = vector.load %arg28[%c0_151, %c0_152, %c0_153] : memref<1x1x32xf32, #tpu.memory_space<vmem>>, vector<1x1x32xf32>
    %353 = vector.shape_cast %352 : vector<1x1x32xf32> to vector<1x32xf32>
    %c0_154 = arith.constant 0 : index
    %c0_155 = arith.constant 0 : index
    %c0_156 = arith.constant 0 : index
    %354 = vector.load %arg29[%c0_154, %c0_155, %c0_156] : memref<1x1x32xf32, #tpu.memory_space<vmem>>, vector<1x1x32xf32>
    %355 = vector.shape_cast %354 : vector<1x1x32xf32> to vector<1x32xf32>
    %cst_157 = arith.constant dense<0.000000e+00> : vector<16xf32>
    %356 = vector.multi_reduction <add>, %351, %cst_157 [1] : vector<16x32xf32> to vector<16xf32>
    %357 = vector.shape_cast %356 : vector<16xf32> to vector<16x1xf32>
    %cst_158 = arith.constant 3.200000e+01 : f32
    %358 = vector.broadcast %cst_158 : f32 to vector<16x1xf32>
    %359 = arith.divf %357, %358 : vector<16x1xf32>
    %360 = vector.broadcast %359 : vector<16x1xf32> to vector<16x32xf32>
    %361 = arith.subf %351, %360 : vector<16x32xf32>
    %362 = arith.mulf %361, %361 : vector<16x32xf32>
    %cst_159 = arith.constant dense<0.000000e+00> : vector<16xf32>
    %363 = vector.multi_reduction <add>, %362, %cst_159 [1] : vector<16x32xf32> to vector<16xf32>
    %364 = vector.shape_cast %363 : vector<16xf32> to vector<16x1xf32>
    %cst_160 = arith.constant 3.200000e+01 : f32
    %365 = vector.broadcast %cst_160 : f32 to vector<16x1xf32>
    %366 = arith.divf %364, %365 : vector<16x1xf32>
    %cst_161 = arith.constant 9.99999974E-6 : f32
    %367 = vector.broadcast %cst_161 : f32 to vector<16x1xf32>
    %368 = arith.addf %366, %367 : vector<16x1xf32>
    %369 = math.rsqrt %368 : vector<16x1xf32>
    %370 = vector.broadcast %369 : vector<16x1xf32> to vector<16x32xf32>
    %371 = arith.mulf %361, %370 : vector<16x32xf32>
    %372 = vector.broadcast %353 : vector<1x32xf32> to vector<16x32xf32>
    %373 = arith.mulf %371, %372 : vector<16x32xf32>
    %374 = vector.broadcast %355 : vector<1x32xf32> to vector<16x32xf32>
    %375 = arith.addf %373, %374 : vector<16x32xf32>
    %376 = arith.truncf %375 : vector<16x32xf32> to vector<16x32xbf16>
    %c0_162 = arith.constant 0 : index
    %c0_163 = arith.constant 0 : index
    %c0_164 = arith.constant 0 : index
    %377 = vector.load %arg30[%c0_162, %c0_163, %c0_164] : memref<1x32x64xbf16, #tpu.memory_space<vmem>>, vector<1x32x64xbf16>
    %378 = vector.shape_cast %377 : vector<1x32x64xbf16> to vector<32x64xbf16>
    %cst_165 = arith.constant dense<0.000000e+00> : vector<16x64xf32>
    %379 = tpu.matmul %376, %378, %cst_165 {dimension_numbers = #tpu.dot_dimension_numbers<[1], [0], [0], [1], [0, 0, 1, 1], [], []>} : vector<16x32xbf16>, vector<32x64xbf16>, vector<16x64xf32> -> vector<16x64xf32>
    %c0_166 = arith.constant 0 : index
    %c0_167 = arith.constant 0 : index
    %c0_168 = arith.constant 0 : index
    %380 = vector.load %arg31[%c0_166, %c0_167, %c0_168] : memref<1x1x64xf32, #tpu.memory_space<vmem>>, vector<1x1x64xf32>
    %381 = vector.shape_cast %380 : vector<1x1x64xf32> to vector<1x64xf32>
    %382 = vector.broadcast %381 : vector<1x64xf32> to vector<16x64xf32>
    %383 = arith.addf %379, %382 : vector<16x64xf32>
    %384 = arith.mulf %383, %383 : vector<16x64xf32>
    %385 = arith.mulf %383, %384 : vector<16x64xf32>
    %cst_169 = arith.constant 4.471500e-02 : f32
    %386 = vector.broadcast %cst_169 : f32 to vector<16x64xf32>
    %387 = arith.mulf %386, %385 : vector<16x64xf32>
    %388 = arith.addf %383, %387 : vector<16x64xf32>
    %cst_170 = arith.constant 0.797884583 : f32
    %389 = vector.broadcast %cst_170 : f32 to vector<16x64xf32>
    %390 = arith.mulf %389, %388 : vector<16x64xf32>
    %391 = math.tanh %390 : vector<16x64xf32>
    %cst_171 = arith.constant 1.000000e+00 : f32
    %392 = vector.broadcast %cst_171 : f32 to vector<16x64xf32>
    %393 = arith.addf %392, %391 : vector<16x64xf32>
    %cst_172 = arith.constant 5.000000e-01 : f32
    %394 = vector.broadcast %cst_172 : f32 to vector<16x64xf32>
    %395 = arith.mulf %394, %393 : vector<16x64xf32>
    %396 = arith.mulf %383, %395 : vector<16x64xf32>
    %397 = arith.truncf %396 : vector<16x64xf32> to vector<16x64xbf16>
    %c0_173 = arith.constant 0 : index
    %c0_174 = arith.constant 0 : index
    %c0_175 = arith.constant 0 : index
    %398 = vector.load %arg32[%c0_173, %c0_174, %c0_175] : memref<1x64x32xbf16, #tpu.memory_space<vmem>>, vector<1x64x32xbf16>
    %399 = vector.shape_cast %398 : vector<1x64x32xbf16> to vector<64x32xbf16>
    %cst_176 = arith.constant dense<0.000000e+00> : vector<16x32xf32>
    %400 = tpu.matmul %397, %399, %cst_176 {dimension_numbers = #tpu.dot_dimension_numbers<[1], [0], [0], [1], [0, 0, 1, 1], [], []>} : vector<16x64xbf16>, vector<64x32xbf16>, vector<16x32xf32> -> vector<16x32xf32>
    %c0_177 = arith.constant 0 : index
    %c0_178 = arith.constant 0 : index
    %c0_179 = arith.constant 0 : index
    %401 = vector.load %arg33[%c0_177, %c0_178, %c0_179] : memref<1x1x32xf32, #tpu.memory_space<vmem>>, vector<1x1x32xf32>
    %402 = vector.shape_cast %401 : vector<1x1x32xf32> to vector<1x32xf32>
    %403 = vector.broadcast %402 : vector<1x32xf32> to vector<16x32xf32>
    %404 = arith.addf %400, %403 : vector<16x32xf32>
    %405 = arith.addf %375, %404 : vector<16x32xf32>
    %c0_180 = arith.constant 0 : index
    %c0_181 = arith.constant 0 : index
    %c0_182 = arith.constant 0 : index
    %406 = vector.load %arg34[%c0_180, %c0_181, %c0_182] : memref<1x1x32xf32, #tpu.memory_space<vmem>>, vector<1x1x32xf32>
    %407 = vector.shape_cast %406 : vector<1x1x32xf32> to vector<1x32xf32>
    %c0_183 = arith.constant 0 : index
    %c0_184 = arith.constant 0 : index
    %c0_185 = arith.constant 0 : index
    %408 = vector.load %arg35[%c0_183, %c0_184, %c0_185] : memref<1x1x32xf32, #tpu.memory_space<vmem>>, vector<1x1x32xf32>
    %409 = vector.shape_cast %408 : vector<1x1x32xf32> to vector<1x32xf32>
    %cst_186 = arith.constant dense<0.000000e+00> : vector<16xf32>
    %410 = vector.multi_reduction <add>, %405, %cst_186 [1] : vector<16x32xf32> to vector<16xf32>
    %411 = vector.shape_cast %410 : vector<16xf32> to vector<16x1xf32>
    %cst_187 = arith.constant 3.200000e+01 : f32
    %412 = vector.broadcast %cst_187 : f32 to vector<16x1xf32>
    %413 = arith.divf %411, %412 : vector<16x1xf32>
    %414 = vector.broadcast %413 : vector<16x1xf32> to vector<16x32xf32>
    %415 = arith.subf %405, %414 : vector<16x32xf32>
    %416 = arith.mulf %415, %415 : vector<16x32xf32>
    %cst_188 = arith.constant dense<0.000000e+00> : vector<16xf32>
    %417 = vector.multi_reduction <add>, %416, %cst_188 [1] : vector<16x32xf32> to vector<16xf32>
    %418 = vector.shape_cast %417 : vector<16xf32> to vector<16x1xf32>
    %cst_189 = arith.constant 3.200000e+01 : f32
    %419 = vector.broadcast %cst_189 : f32 to vector<16x1xf32>
    %420 = arith.divf %418, %419 : vector<16x1xf32>
    %cst_190 = arith.constant 9.99999974E-6 : f32
    %421 = vector.broadcast %cst_190 : f32 to vector<16x1xf32>
    %422 = arith.addf %420, %421 : vector<16x1xf32>
    %423 = math.rsqrt %422 : vector<16x1xf32>
    %424 = vector.broadcast %423 : vector<16x1xf32> to vector<16x32xf32>
    %425 = arith.mulf %415, %424 : vector<16x32xf32>
    %426 = vector.broadcast %407 : vector<1x32xf32> to vector<16x32xf32>
    %427 = arith.mulf %425, %426 : vector<16x32xf32>
    %428 = vector.broadcast %409 : vector<1x32xf32> to vector<16x32xf32>
    %429 = arith.addf %427, %428 : vector<16x32xf32>
    %c0_191 = arith.constant 0 : index
    %c0_192 = arith.constant 0 : index
    %430 = vector.load %arg36[%c0_191, %c0_192] : memref<1x32xf32, #tpu.memory_space<vmem>>, vector<1x32xf32>
    %c0_193 = arith.constant 0 : index
    %c0_194 = arith.constant 0 : index
    %431 = vector.load %arg37[%c0_193, %c0_194] : memref<1x32xf32, #tpu.memory_space<vmem>>, vector<1x32xf32>
    %cst_195 = arith.constant dense<0.000000e+00> : vector<16xf32>
    %432 = vector.multi_reduction <add>, %429, %cst_195 [1] : vector<16x32xf32> to vector<16xf32>
    %433 = vector.shape_cast %432 : vector<16xf32> to vector<16x1xf32>
    %cst_196 = arith.constant 3.200000e+01 : f32
    %434 = vector.broadcast %cst_196 : f32 to vector<16x1xf32>
    %435 = arith.divf %433, %434 : vector<16x1xf32>
    %436 = vector.broadcast %435 : vector<16x1xf32> to vector<16x32xf32>
    %437 = arith.subf %429, %436 : vector<16x32xf32>
    %438 = arith.mulf %437, %437 : vector<16x32xf32>
    %cst_197 = arith.constant dense<0.000000e+00> : vector<16xf32>
    %439 = vector.multi_reduction <add>, %438, %cst_197 [1] : vector<16x32xf32> to vector<16xf32>
    %440 = vector.shape_cast %439 : vector<16xf32> to vector<16x1xf32>
    %cst_198 = arith.constant 3.200000e+01 : f32
    %441 = vector.broadcast %cst_198 : f32 to vector<16x1xf32>
    %442 = arith.divf %440, %441 : vector<16x1xf32>
    %cst_199 = arith.constant 9.99999974E-6 : f32
    %443 = vector.broadcast %cst_199 : f32 to vector<16x1xf32>
    %444 = arith.addf %442, %443 : vector<16x1xf32>
    %445 = math.rsqrt %444 : vector<16x1xf32>
    %446 = vector.broadcast %445 : vector<16x1xf32> to vector<16x32xf32>
    %447 = arith.mulf %437, %446 : vector<16x32xf32>
    %448 = vector.broadcast %430 : vector<1x32xf32> to vector<16x32xf32>
    %449 = arith.mulf %447, %448 : vector<16x32xf32>
    %450 = vector.broadcast %431 : vector<1x32xf32> to vector<16x32xf32>
    %451 = arith.addf %449, %450 : vector<16x32xf32>
    %452 = arith.truncf %451 : vector<16x32xf32> to vector<16x32xbf16>
    %cst_200 = arith.constant 0.000000e+00 : f32
    %453 = vector.broadcast %cst_200 : f32 to vector<4x8xf32>
    %454 = vector.extract_strided_slice %452 {offsets = [0, 0], sizes = [4, 32], strides = [1, 1]} : vector<16x32xbf16> to vector<4x32xbf16>
    %c0_201 = arith.constant 0 : index
    %c0_202 = arith.constant 0 : index
    %c0_203 = arith.constant 0 : index
    %455 = vector.load %arg38[%c0_201, %c0_202, %c0_203] : memref<4x32x8xbf16, #tpu.memory_space<vmem>>, vector<1x32x8xbf16>
    %456 = vector.shape_cast %455 : vector<1x32x8xbf16> to vector<32x8xbf16>
    %cst_204 = arith.constant dense<0.000000e+00> : vector<4x8xf32>
    %457 = tpu.matmul %454, %456, %cst_204 {dimension_numbers = #tpu.dot_dimension_numbers<[1], [0], [0], [1], [0, 0, 1, 1], [], []>} : vector<4x32xbf16>, vector<32x8xbf16>, vector<4x8xf32> -> vector<4x8xf32>
    %458 = arith.addf %453, %457 : vector<4x8xf32>
    %459 = vector.extract_strided_slice %452 {offsets = [4, 0], sizes = [4, 32], strides = [1, 1]} : vector<16x32xbf16> to vector<4x32xbf16>
    %c1_205 = arith.constant 1 : index
    %c0_206 = arith.constant 0 : index
    %c0_207 = arith.constant 0 : index
    %460 = vector.load %arg38[%c1_205, %c0_206, %c0_207] : memref<4x32x8xbf16, #tpu.memory_space<vmem>>, vector<1x32x8xbf16>
    %461 = vector.shape_cast %460 : vector<1x32x8xbf16> to vector<32x8xbf16>
    %cst_208 = arith.constant dense<0.000000e+00> : vector<4x8xf32>
    %462 = tpu.matmul %459, %461, %cst_208 {dimension_numbers = #tpu.dot_dimension_numbers<[1], [0], [0], [1], [0, 0, 1, 1], [], []>} : vector<4x32xbf16>, vector<32x8xbf16>, vector<4x8xf32> -> vector<4x8xf32>
    %463 = arith.addf %458, %462 : vector<4x8xf32>
    %464 = vector.extract_strided_slice %452 {offsets = [8, 0], sizes = [4, 32], strides = [1, 1]} : vector<16x32xbf16> to vector<4x32xbf16>
    %c2_209 = arith.constant 2 : index
    %c0_210 = arith.constant 0 : index
    %c0_211 = arith.constant 0 : index
    %465 = vector.load %arg38[%c2_209, %c0_210, %c0_211] : memref<4x32x8xbf16, #tpu.memory_space<vmem>>, vector<1x32x8xbf16>
    %466 = vector.shape_cast %465 : vector<1x32x8xbf16> to vector<32x8xbf16>
    %cst_212 = arith.constant dense<0.000000e+00> : vector<4x8xf32>
    %467 = tpu.matmul %464, %466, %cst_212 {dimension_numbers = #tpu.dot_dimension_numbers<[1], [0], [0], [1], [0, 0, 1, 1], [], []>} : vector<4x32xbf16>, vector<32x8xbf16>, vector<4x8xf32> -> vector<4x8xf32>
    %468 = arith.addf %463, %467 : vector<4x8xf32>
    %469 = vector.extract_strided_slice %452 {offsets = [12, 0], sizes = [4, 32], strides = [1, 1]} : vector<16x32xbf16> to vector<4x32xbf16>
    %c3_213 = arith.constant 3 : index
    %c0_214 = arith.constant 0 : index
    %c0_215 = arith.constant 0 : index
    %470 = vector.load %arg38[%c3_213, %c0_214, %c0_215] : memref<4x32x8xbf16, #tpu.memory_space<vmem>>, vector<1x32x8xbf16>
    %471 = vector.shape_cast %470 : vector<1x32x8xbf16> to vector<32x8xbf16>
    %cst_216 = arith.constant dense<0.000000e+00> : vector<4x8xf32>
    %472 = tpu.matmul %469, %471, %cst_216 {dimension_numbers = #tpu.dot_dimension_numbers<[1], [0], [0], [1], [0, 0, 1, 1], [], []>} : vector<4x32xbf16>, vector<32x8xbf16>, vector<4x8xf32> -> vector<4x8xf32>
    %473 = arith.addf %468, %472 : vector<4x8xf32>
    %474 = arith.addf %236, %473 : vector<4x8xf32>
    %c0_217 = arith.constant 0 : index
    %c0_218 = arith.constant 0 : index
    %475 = vector.load %arg39[%c0_217, %c0_218] : memref<1x8xf32, #tpu.memory_space<vmem>>, vector<1x8xf32>
    %476 = vector.broadcast %475 : vector<1x8xf32> to vector<4x8xf32>
    %477 = arith.addf %474, %476 : vector<4x8xf32>
    %c0_219 = arith.constant 0 : index
    %c0_220 = arith.constant 0 : index
    %c0_221 = arith.constant 0 : index
    %478 = vector.load %arg40[%c0_219, %c0_220, %c0_221] : memref<1x4x8xf32, #tpu.memory_space<vmem>>, vector<1x4x8xf32>
    %479 = vector.shape_cast %478 : vector<1x4x8xf32> to vector<4x8xf32>
    %480 = vector.shape_cast %477 : vector<4x8xf32> to vector<1x4x8xf32>
    tpu.vector_store %arg40[%c0_219, %c0_220, %c0_221], %480 {strides = array<i32>} : memref<1x4x8xf32, #tpu.memory_space<vmem>>, vector<1x4x8xf32>,
    return
  }
  func.func @transform_0(%arg0: i32) -> (i32, i32, i32) {
    %c0_i32 = arith.constant 0 : i32
    %c0_i32_0 = arith.constant 0 : i32
    %c0_i32_1 = arith.constant 0 : i32
    return %arg0, %c0_i32, %c0_i32_0 : i32, i32, i32
  }
  func.func @transform_1(%arg0: i32) -> (i32, i32) {
    %c0_i32 = arith.constant 0 : i32
    %c0_i32_0 = arith.constant 0 : i32
    %c0_i32_1 = arith.constant 0 : i32
    return %c0_i32, %c0_i32_0 : i32, i32
  }
  func.func @transform_2(%arg0: i32) -> (i32, i32) {
    %c0_i32 = arith.constant 0 : i32
    %c0_i32_0 = arith.constant 0 : i32
    %c0_i32_1 = arith.constant 0 : i32
    return %c0_i32, %c0_i32_0 : i32, i32
  }
  func.func @transform_3(%arg0: i32) -> (i32, i32) {
    %c0_i32 = arith.constant 0 : i32
    %c0_i32_0 = arith.constant 0 : i32
    %c0_i32_1 = arith.constant 0 : i32
    return %c0_i32, %c0_i32_0 : i32, i32
  }
  func.func @transform_4(%arg0: i32) -> (i32, i32, i32) {
    %c0_i32 = arith.constant 0 : i32
    %c0_i32_0 = arith.constant 0 : i32
    %c0_i32_1 = arith.constant 0 : i32
    %c0_i32_2 = arith.constant 0 : i32
    return %c0_i32, %c0_i32_0, %c0_i32_1 : i32, i32, i32
  }
  func.func @transform_5(%arg0: i32) -> (i32, i32, i32) {
    %c0_i32 = arith.constant 0 : i32
    %c0_i32_0 = arith.constant 0 : i32
    %c0_i32_1 = arith.constant 0 : i32
    %c0_i32_2 = arith.constant 0 : i32
    return %c0_i32, %c0_i32_0, %c0_i32_1 : i32, i32, i32
  }
  func.func @transform_6(%arg0: i32) -> (i32, i32, i32) {
    %c0_i32 = arith.constant 0 : i32
    %c0_i32_0 = arith.constant 0 : i32
    %c0_i32_1 = arith.constant 0 : i32
    %c0_i32_2 = arith.constant 0 : i32
    return %c0_i32, %c0_i32_0, %c0_i32_1 : i32, i32, i32
  }
  func.func @transform_7(%arg0: i32) -> (i32, i32, i32) {
    %c0_i32 = arith.constant 0 : i32
    %c0_i32_0 = arith.constant 0 : i32
    %c0_i32_1 = arith.constant 0 : i32
    %c0_i32_2 = arith.constant 0 : i32
    return %c0_i32, %c0_i32_0, %c0_i32_1 : i32, i32, i32
  }
  func.func @transform_8(%arg0: i32) -> (i32, i32, i32) {
    %c0_i32 = arith.constant 0 : i32
    %c0_i32_0 = arith.constant 0 : i32
    %c0_i32_1 = arith.constant 0 : i32
    %c0_i32_2 = arith.constant 0 : i32
    return %c0_i32, %c0_i32_0, %c0_i32_1 : i32, i32, i32
  }
  func.func @transform_9(%arg0: i32) -> (i32, i32, i32) {
    %c0_i32 = arith.constant 0 : i32
    %c0_i32_0 = arith.constant 0 : i32
    %c0_i32_1 = arith.constant 0 : i32
    %c0_i32_2 = arith.constant 0 : i32
    return %c0_i32, %c0_i32_0, %c0_i32_1 : i32, i32, i32
  }
  func.func @transform_10(%arg0: i32) -> (i32, i32, i32) {
    %c0_i32 = arith.constant 0 : i32
    %c0_i32_0 = arith.constant 0 : i32
    %c0_i32_1 = arith.constant 0 : i32
    %c0_i32_2 = arith.constant 0 : i32
    return %c0_i32, %c0_i32_0, %c0_i32_1 : i32, i32, i32
  }
  func.func @transform_11(%arg0: i32) -> (i32, i32, i32) {
    %c0_i32 = arith.constant 0 : i32
    %c0_i32_0 = arith.constant 0 : i32
    %c0_i32_1 = arith.constant 0 : i32
    %c0_i32_2 = arith.constant 0 : i32
    return %c0_i32, %c0_i32_0, %c0_i32_1 : i32, i32, i32
  }
  func.func @transform_12(%arg0: i32) -> (i32, i32, i32) {
    %c0_i32 = arith.constant 0 : i32
    %c0_i32_0 = arith.constant 0 : i32
    %c0_i32_1 = arith.constant 0 : i32
    %c0_i32_2 = arith.constant 0 : i32
    return %c0_i32, %c0_i32_0, %c0_i32_1 : i32, i32, i32
  }
  func.func @transform_13(%arg0: i32) -> (i32, i32, i32) {
    %c0_i32 = arith.constant 0 : i32
    %c0_i32_0 = arith.constant 0 : i32
    %c0_i32_1 = arith.constant 0 : i32
    %c0_i32_2 = arith.constant 0 : i32
    return %c0_i32, %c0_i32_0, %c0_i32_1 : i32, i32, i32
  }
  func.func @transform_14(%arg0: i32) -> (i32, i32, i32) {
    %c0_i32 = arith.constant 0 : i32
    %c0_i32_0 = arith.constant 0 : i32
    %c0_i32_1 = arith.constant 0 : i32
    %c0_i32_2 = arith.constant 0 : i32
    return %c0_i32, %c0_i32_0, %c0_i32_1 : i32, i32, i32
  }
  func.func @transform_15(%arg0: i32) -> (i32, i32, i32) {
    %c0_i32 = arith.constant 0 : i32
    %c0_i32_0 = arith.constant 0 : i32
    %c0_i32_1 = arith.constant 0 : i32
    %c0_i32_2 = arith.constant 0 : i32
    return %c0_i32, %c0_i32_0, %c0_i32_1 : i32, i32, i32
  }
  func.func @transform_16(%arg0: i32) -> (i32, i32) {
    %c0_i32 = arith.constant 0 : i32
    %c0_i32_0 = arith.constant 0 : i32
    %c0_i32_1 = arith.constant 0 : i32
    return %c0_i32, %c0_i32_0 : i32, i32
  }
  func.func @transform_17(%arg0: i32) -> (i32, i32) {
    %c0_i32 = arith.constant 0 : i32
    %c0_i32_0 = arith.constant 0 : i32
    %c0_i32_1 = arith.constant 0 : i32
    return %c0_i32, %c0_i32_0 : i32, i32
  }
  func.func @transform_18(%arg0: i32) -> (i32, i32, i32) {
    %c0_i32 = arith.constant 0 : i32
    %c0_i32_0 = arith.constant 0 : i32
    %c0_i32_1 = arith.constant 0 : i32
    %c0_i32_2 = arith.constant 0 : i32
    return %c0_i32, %c0_i32_0, %c0_i32_1 : i32, i32, i32
  }
  func.func @transform_19(%arg0: i32) -> (i32, i32, i32) {
    %c0_i32 = arith.constant 0 : i32
    %c0_i32_0 = arith.constant 0 : i32
    %c0_i32_1 = arith.constant 0 : i32
    return %arg0, %c0_i32, %c0_i32_0 : i32, i32, i32
  }
  func.func @transform_20(%arg0: i32) -> (i32, i32) {
    %c0_i32 = arith.constant 0 : i32
    %c0_i32_0 = arith.constant 0 : i32
    %c0_i32_1 = arith.constant 0 : i32
    return %c0_i32, %c0_i32_0 : i32, i32
  }
  func.func @transform_21(%arg0: i32) -> (i32, i32) {
    %c0_i32 = arith.constant 0 : i32
    %c0_i32_0 = arith.constant 0 : i32
    %c0_i32_1 = arith.constant 0 : i32
    return %c0_i32, %c0_i32_0 : i32, i32
  }
  func.func @transform_22(%arg0: i32) -> (i32, i32) {
    %c0_i32 = arith.constant 0 : i32
    %c0_i32_0 = arith.constant 0 : i32
    %c0_i32_1 = arith.constant 0 : i32
    return %c0_i32, %c0_i32_0 : i32, i32
  }
  func.func @transform_23(%arg0: i32) -> (i32, i32, i32) {
    %c0_i32 = arith.constant 0 : i32
    %c0_i32_0 = arith.constant 0 : i32
    %c0_i32_1 = arith.constant 0 : i32
    %c0_i32_2 = arith.constant 0 : i32
    return %c0_i32, %c0_i32_0, %c0_i32_1 : i32, i32, i32
  }
  func.func @transform_24(%arg0: i32) -> (i32, i32, i32) {
    %c0_i32 = arith.constant 0 : i32
    %c0_i32_0 = arith.constant 0 : i32
    %c0_i32_1 = arith.constant 0 : i32
    %c0_i32_2 = arith.constant 0 : i32
    return %c0_i32, %c0_i32_0, %c0_i32_1 : i32, i32, i32
  }
  func.func @transform_25(%arg0: i32) -> (i32, i32, i32) {
    %c0_i32 = arith.constant 0 : i32
    %c0_i32_0 = arith.constant 0 : i32
    %c0_i32_1 = arith.constant 0 : i32
    %c0_i32_2 = arith.constant 0 : i32
    return %c0_i32, %c0_i32_0, %c0_i32_1 : i32, i32, i32
  }
  func.func @transform_26(%arg0: i32) -> (i32, i32, i32) {
    %c0_i32 = arith.constant 0 : i32
    %c0_i32_0 = arith.constant 0 : i32
    %c0_i32_1 = arith.constant 0 : i32
    %c0_i32_2 = arith.constant 0 : i32
    return %c0_i32, %c0_i32_0, %c0_i32_1 : i32, i32, i32
  }
  func.func @transform_27(%arg0: i32) -> (i32, i32, i32) {
    %c0_i32 = arith.constant 0 : i32
    %c0_i32_0 = arith.constant 0 : i32
    %c0_i32_1 = arith.constant 0 : i32
    %c0_i32_2 = arith.constant 0 : i32
    return %c0_i32, %c0_i32_0, %c0_i32_1 : i32, i32, i32
  }
  func.func @transform_28(%arg0: i32) -> (i32, i32, i32) {
    %c0_i32 = arith.constant 0 : i32
    %c0_i32_0 = arith.constant 0 : i32
    %c0_i32_1 = arith.constant 0 : i32
    %c0_i32_2 = arith.constant 0 : i32
    return %c0_i32, %c0_i32_0, %c0_i32_1 : i32, i32, i32
  }
  func.func @transform_29(%arg0: i32) -> (i32, i32, i32) {
    %c0_i32 = arith.constant 0 : i32
    %c0_i32_0 = arith.constant 0 : i32
    %c0_i32_1 = arith.constant 0 : i32
    %c0_i32_2 = arith.constant 0 : i32
    return %c0_i32, %c0_i32_0, %c0_i32_1 : i32, i32, i32
  }
  func.func @transform_30(%arg0: i32) -> (i32, i32, i32) {
    %c0_i32 = arith.constant 0 : i32
    %c0_i32_0 = arith.constant 0 : i32
    %c0_i32_1 = arith.constant 0 : i32
    %c0_i32_2 = arith.constant 0 : i32
    return %c0_i32, %c0_i32_0, %c0_i32_1 : i32, i32, i32
  }
  func.func @transform_31(%arg0: i32) -> (i32, i32, i32) {
    %c0_i32 = arith.constant 0 : i32
    %c0_i32_0 = arith.constant 0 : i32
    %c0_i32_1 = arith.constant 0 : i32
    %c0_i32_2 = arith.constant 0 : i32
    return %c0_i32, %c0_i32_0, %c0_i32_1 : i32, i32, i32
  }
  func.func @transform_32(%arg0: i32) -> (i32, i32, i32) {
    %c0_i32 = arith.constant 0 : i32
    %c0_i32_0 = arith.constant 0 : i32
    %c0_i32_1 = arith.constant 0 : i32
    %c0_i32_2 = arith.constant 0 : i32
    return %c0_i32, %c0_i32_0, %c0_i32_1 : i32, i32, i32
  }
  func.func @transform_33(%arg0: i32) -> (i32, i32, i32) {
    %c0_i32 = arith.constant 0 : i32
    %c0_i32_0 = arith.constant 0 : i32
    %c0_i32_1 = arith.constant 0 : i32
    %c0_i32_2 = arith.constant 0 : i32
    return %c0_i32, %c0_i32_0, %c0_i32_1 : i32, i32, i32
  }
  func.func @transform_34(%arg0: i32) -> (i32, i32, i32) {
    %c0_i32 = arith.constant 0 : i32
    %c0_i32_0 = arith.constant 0 : i32
    %c0_i32_1 = arith.constant 0 : i32
    %c0_i32_2 = arith.constant 0 : i32
    return %c0_i32, %c0_i32_0, %c0_i32_1 : i32, i32, i32
  }
  func.func @transform_35(%arg0: i32) -> (i32, i32) {
    %c0_i32 = arith.constant 0 : i32
    %c0_i32_0 = arith.constant 0 : i32
    %c0_i32_1 = arith.constant 0 : i32
    return %c0_i32, %c0_i32_0 : i32, i32
  }
  func.func @transform_36(%arg0: i32) -> (i32, i32) {
    %c0_i32 = arith.constant 0 : i32
    %c0_i32_0 = arith.constant 0 : i32
    %c0_i32_1 = arith.constant 0 : i32
    return %c0_i32, %c0_i32_0 : i32, i32
  }
  func.func @transform_37(%arg0: i32) -> (i32, i32, i32) {
    %c0_i32 = arith.constant 0 : i32
    %c0_i32_0 = arith.constant 0 : i32
    %c0_i32_1 = arith.constant 0 : i32
    %c0_i32_2 = arith.constant 0 : i32
    return %c0_i32, %c0_i32_0, %c0_i32_1 : i32, i32, i32
  }
  func.func @transform_38(%arg0: i32) -> (i32, i32) {
    %c0_i32 = arith.constant 0 : i32
    %c0_i32_0 = arith.constant 0 : i32
    %c0_i32_1 = arith.constant 0 : i32
    return %c0_i32, %c0_i32_0 : i32, i32
  }
  func.func @transform_39(%arg0: i32) -> (i32, i32, i32) {
    %c0_i32 = arith.constant 0 : i32
    %c0_i32_0 = arith.constant 0 : i32
    %c0_i32_1 = arith.constant 0 : i32
    return %arg0, %c0_i32, %c0_i32_0 : i32, i32, i32
  }
}

</mosaic_0001>

<bundles_post_ra>
// kernel: model_forward.1
= control target key start
LH: loop header
LB: loop body
LE: loop exit
PB: predicated region body
PF: predicated region fallthrough
CT: control target
= control target key end

     0   :  { %s4798_s6 = smov 1   ;;  %s4799_s10 = smov 2   ;;  %s5508_s0 = inlined_call_operand.smem [shape: u32[40], index: -1, kind: input, shape index: {}] }
   0x1   :  { %s4858_s5 = sld [smem:[%s5508_s0]]   ;;  %s4800_s14 = smov 3  }
   0x2   :  { %s4863_s9 = sld [smem:[%s5508_s0 + %s4798_s6]]   ;;  %s4801_s18 = smov 4  }
   0x3   :  { %s4868_s13 = sld [smem:[%s5508_s0 + %s4799_s10]]   ;;  %s4802_s22 = smov 5  }
   0x4   :  { %s4873_s17 = sld [smem:[%s5508_s0 + %s4800_s14]]   ;;  %s4803_s26 = smov 6  }
   0x5   :  { %s4878_s21 = sld [smem:[%s5508_s0 + %s4801_s18]]   ;;  %s4804_s30 = smov 7  }
   0x6   :  { %s4883_s25 = sld [smem:[%s5508_s0 + %s4802_s22]]   ;;  %s4805_s4 = smov 8  }
   0x7   :  { %s4888_s29 = sld [smem:[%s5508_s0 + %s4803_s26]]   ;;  %s4806_s10 = smov 9  }
   0x8   :  { %s4893_s3 = sld [smem:[%s5508_s0 + %s4804_s30]]   ;;  %s4807_s15 = smov 10  }
   0x9   :  { %s4898_s8 = sld [smem:[%s5508_s0 + %s4805_s4]]   ;;  %s4808_s20 = smov 11  }
   0xa   :  { %s4903_s14 = sld [smem:[%s5508_s0 + %s4806_s10]]   ;;  %s4809_s26 = smov 12  }
   0xb   :  { %s4908_s19 = sld [smem:[%s5508_s0 + %s4807_s15]]   ;;  %s4810_s1 = smov 13  }
   0xc   :  { %s4913_s24 = sld [smem:[%s5508_s0 + %s4808_s20]]   ;;  %s4811_s7 = smov 14  }
   0xd   :  { %s4918_s30 = sld [smem:[%s5508_s0 + %s4809_s26]]   ;;  %s4812_s15 = smov 15  }
   0xe   :  { %s4923_s6 = sld [smem:[%s5508_s0 + %s4810_s1]]   ;;  %s4813_s22 = smov 16  }
   0xf   :  { %s4928_s12 = sld [smem:[%s5508_s0 + %s4811_s7]]   ;;  %s4814_s28 = smov 17  }
  0x10   :  { %s4933_s20 = sld [smem:[%s5508_s0 + %s4812_s15]]   ;;  %s4815_s7 = smov 18  }
  0x11   :  { %s4938_s27 = sld [smem:[%s5508_s0 + %s4813_s22]]   ;;  %s4816_s15 = smov 19  }
  0x12   :  { %s4943_s4 = sld [smem:[%s5508_s0 + %s4814_s28]]   ;;  %s4817_s22 = smov 20  }
  0x13   :  { %s4818_s28 = smov 21  }
  0x14   :  { %5521 = sst [smem:[#allocation2_spill]] %s4923_s6 }
  0x15   :  { %5522 = sst [smem:[#allocation3_spill]] %s4928_s12 }
  0x16   :  { %5523 = sst [smem:[#allocation4_spill]] %s4933_s20 }
  0x17   :  { %5524 = sst [smem:[#allocation5_spill]] %s4938_s27 }
  0x18   :  { %5525 = sst [smem:[#allocation6_spill]] %s4943_s4 }
  0x19   :  { %s4948_s12 = sld [smem:[%s5508_s0 + %s4815_s7]]   ;;  %s4819_s7 = smov 22  }
  0x1a   :  { %s4953_s20 = sld [smem:[%s5508_s0 + %s4816_s15]]   ;;  %s4820_s15 = smov 23  }
  0x1b   :  { %s4958_s27 = sld [smem:[%s5508_s0 + %s4817_s22]]   ;;  %s4821_s22 = smov 24  }
  0x1c   :  { %s4963_s4 = sld [smem:[%s5508_s0 + %s4818_s28]]   ;;  %s4822_s28 = smov 25  }
  0x1d   :  { %s4973_s6 = sld [smem:[%s5508_s0 + %s4820_s15]]   ;;  %s4824_s15 = smov 27  }
  0x1f   :  { %5526 = sst [smem:[#allocation7_spill]] %s4948_s12 }
  0x20   :  { %s4968_s12 = sld [smem:[%s5508_s0 + %s4819_s7]]   ;;  %s4823_s7 = smov 26  }
  0x21   :  { %5527 = sst [smem:[#allocation8_spill]] %s4958_s27 }
  0x22   :  { %5528 = sst [smem:[#allocation9_spill]] %s4963_s4 }
  0x23   :  { %5530 = sst [smem:[#allocation11_spill]] %s4973_s6 }
  0x24   :  { %s4978_s27 = sld [smem:[%s5508_s0 + %s4821_s22]]   ;;  %s4825_s22 = smov 28  }
  0x25   :  { %s4983_s4 = sld [smem:[%s5508_s0 + %s4822_s28]]   ;;  %s4826_s28 = smov 29  }
  0x26   :  { %5529 = sst [smem:[#allocation10_spill]] %s4968_s12 }
  0x27   :  { %s4988_s12 = sld [smem:[%s5508_s0 + %s4823_s7]]   ;;  %s4827_s7 = smov 30  }
  0x28   :  { %s4993_s6 = sld [smem:[%s5508_s0 + %s4824_s15]]   ;;  %s4828_s15 = smov 31  }
  0x2a   :  { %5531 = sst [smem:[#allocation12_spill]] %s4978_s27 }
  0x2b   :  { %5532 = sst [smem:[#allocation13_spill]] %s4983_s4 }
  0x2c   :  { %s4998_s27 = sld [smem:[%s5508_s0 + %s4825_s22]]   ;;  %s4829_s22 = smov 32  }
  0x2d   :  { %5533 = sst [smem:[#allocation14_spill]] %s4988_s12 }
  0x2e   :  { %5534 = sst [smem:[#allocation15_spill]] %s4993_s6 }
  0x2f   :  { %s5003_s4 = sld [smem:[%s5508_s0 + %s4826_s28]]   ;;  %s4830_s28 = smov 33  }
  0x30   :  { %s5008_s12 = sld [smem:[%s5508_s0 + %s4827_s7]]   ;;  %s4831_s7 = smov 34  }
  0x31   :  { %s5013_s6 = sld [smem:[%s5508_s0 + %s4828_s15]]   ;;  %s4832_s15 = smov 35  }
  0x32   :  { %5535 = sst [smem:[#allocation16_spill]] %s4998_s27 }
  0x33   :  { %s5018_s27 = sld [smem:[%s5508_s0 + %s4829_s22]]   ;;  %s4833_s22 = smov 36  }
  0x35   :  { %5536 = sst [smem:[#allocation17_spill]] %s5003_s4 }
  0x36   :  { %5537 = sst [smem:[#allocation18_spill]] %s5008_s12 }
  0x37   :  { %5538 = sst [smem:[#allocation19_spill]] %s5013_s6 }
  0x38   :  { %s5023_s4 = sld [smem:[%s5508_s0 + %s4830_s28]]   ;;  %s4834_s28 = smov 37  }
  0x39   :  { %5539 = sst [smem:[#allocation20_spill]] %s5018_s27 }
  0x3a   :  { %s5028_s12 = sld [smem:[%s5508_s0 + %s4831_s7]]   ;;  %s4835_s7 = smov 38  }
  0x3b   :  { %s5033_s6 = sld [smem:[%s5508_s0 + %s4832_s15]]   ;;  %s4836_s15 = smov 39  }
  0x3c   :  { %s5038_s27 = sld [smem:[%s5508_s0 + %s4833_s22]]   ;;  %s5055_s22 = smov 0  }
  0x3e   :  { %5540 = sst [smem:[#allocation21_spill]] %s5023_s4 }
  0x3f   :  { %s5043_s4 = sld [smem:[%s5508_s0 + %s4834_s28]]  }
  0x40   :  { %5541 = sst [smem:[#allocation22_spill]] %s5028_s12 }
  0x41   :  { %5542 = sst [smem:[#allocation23_spill]] %s5033_s6 }
  0x42   :  { %s5048_s12 = sld [smem:[%s5508_s0 + %s4835_s7]]  }
  0x43   :  { %s5053_s6 = sld [smem:[%s5508_s0 + %s4836_s15]]  }
  0x44 LB: > { %s4089_s23 = sadd.s32 4294967295, %s4796_s22   ;;  %p4093_p0 = scmp.ge.s32.totalorder %s4796_s22, 1  ;;  %s4796_s22 = sphi %s5055_s22, %s89_s22  }
  0x45   : > { %p1087_p1 = scmp.lt.s32.totalorder %s4796_s22, 3 }
  0x47   : > { %p1088_p2 = pnand %p4093_p0, %p1087_p1 }
  0x48   : > { %vm1222_vm0 = vcmask (!%p1088_p2), 1045504   ;;  %v4837_v0 = vmov (!%p1088_p2), 0.0   ;;  %v4658_v1 = vld [vmem:[%s4873_s17] sm:$0x3f] (!%p1088_p2)   ;;  %p1187_p3 = scmp.lt.s32.totalorder (!%p1088_p2), %s4089_s23, 1  ;;  %vm4838_vm1 = vmmov (!%p1088_p2), 0  }
  0x49   : > { %1091 = sbr.rel (%p1088_p2) target bundleno = 8817 (0x2271), region = 176  ;;  %4322 = vmatprep.subr.bf16.mxu0 (!%p1088_p2), %v4837_v0  ;;  %4328 = vmatprep.subr.bf16.mxu1 (!%p1088_p2), %v4837_v0  ;;  %v1224_v2 = vsel (!%p1088_p2), %vm1222_vm0, %v4658_v1, 0  ;;  %vm1218_vm2 = vcmask (!%p1088_p2), 97280   ;;  %v4661_v4 = vld [vmem:[%s4878_s21] sm:$0xff] (!%p1088_p2)   ;;  %v4662_v5 = vld [vmem:[%s4878_s21 + $0x8] sm:$0xff] (!%p1088_p2)   ;;  %vm1293_vm3 = vcmask (!%p1088_p2), 261120  }
  0x4a   : > { %4324 = vmatprep.mubr.msk.bf16.mxu0 (!%p1088_p2), %vm4838_vm1, %v4837_v0  ;;  %4332 = vmatprep.mubr.msk.bf16.mxu1 (!%p1088_p2), %vm4838_vm1, %v4837_v0  ;;  %v1206_v6 = vld [vmem:[%s4863_s9] sm:$0xff] (!%p1088_p2)  ;;  %v1207_v8 = vld [vmem:[%s4863_s9 + $0x8] sm:$0xff] (!%p1088_p2)  ;;  %s4839_s1 = smov (!%p1088_p2), 96   ;;  %s4840_s2 = smov (!%p1088_p2), 120   ;;  %vm1349_vm4 = vcmask (!%p1088_p2), 64512   ;;  %vm1397_vm5 = vcmask (!%p1088_p2), 130048  }
  0x4b   : > { %4323 = vmatpush3.bf16.msra.mxu0 (!%p1088_p2), %v1224_v2  ;;  %4329 = vmatpush3.bf16.msra.mxu1 (!%p1088_p2), %v4661_v4  ;;  %v4102_v15 = vld [vmem:[%s4883_s25] ss:$0 sm:$0xff] (!%p1088_p2)  ;;  %s4841_s7 = smov (!%p1088_p2), 88   ;;  %v5123_v33 = vld [vmem:[%s4868_s13 + $0x8] sm:$0xff] (!%p1088_p2)  ;;  %s4842_s10 = smov (!%p1088_p2), 56   ;;  %vm1595_vm6 = vcmask (!%p1088_p2), 1043456  }
  0x4c   : > { %4336 = vmatprep.subr.bf16.mxu0 (!%p1088_p2), %v4837_v0  ;;  %4330 = vmatprep.subr.bf16.mxu1 (!%p1088_p2), %v4837_v0  ;;  %v5120_v31 = vld [vmem:[%s4868_s13] sm:$0xff] (!%p1088_p2)  ;;  %s4843_s11 = smov (!%p1088_p2), 64   ;;  %s4844_s15 = smov (!%p1088_p2), 80   ;;  %vm2211_vm7 = vcmask (!%p1088_p2), 523264   ;;  %vm3983_vm8 = vcmask (!%p1088_p2), 60416  }
  0x4d   : > { %s5520_s16 = smov (!%p1088_p2), 112   ;;  %s5519_s18 = smov (!%p1088_p2), 72  }
  0x4f   : > { %4331 = vmatpush3.bf16.msra.mxu1 (!%p1088_p2), %v4662_v5 }
  0x50   : > { %s5571_s23 = smov (!%p1187_p3, %s4089_s23), 1  ;;  %4342 = vmatprep.subr.bf16.mxu1 %v4837_v0 }
  0x51   : > { %s4222_s0 = sshll.u32 %s5571_s23, 3 }
  0x52   : > { %s1191_s26 = scalar_lea.vmem %s4858_s5, %s4222_s0  ;;  %s5077_s28 = scalar_lea.vmem %s4953_s20, %s4222_s0 }
  0x53   : > { %v4660_v3 = vld [vmem:[%s1191_s26] sm:$0xff]   ;;  %s5518_s0 = smov 48   ;;  %s5516_s26 = smov 104  }
  0x54   : > { %4325 = vmatmul.mubr.msk.bf16.vlgmr.msra.gmra.mrb[0].mxu0 %vm1218_vm2, %v4660_v3 }
  0x55   : > { %4338 = vmatprep.mubr.msk.bf16.mxu0 %vm4838_vm1, %v4837_v0 }
 0x127   : > { %v1260_v7 = vpop.f32.mrb[0].mxu0 }
 0x128   : > { %v4326_v9 = vpop.f32.mrb[1].mxu0  ;;  %v5088_v11 = vadd.f32 %v1260_v7, %v1206_v6 }
 0x129   : > { %v1263_v10 = vpop.f32.mrb[2].mxu0 }
 0x12a   : > { %v5090_v12 = vadd.f32 %v1263_v10, %v1207_v8  ;;  %v4327_v13 = vpop.f32.mrb[3].mxu0 }
 0x12c   : > { %v1269_v14 = vpack.c.bf16 %v5090_v12, %v5088_v11 }
 0x12e   : > { %4333 = vmatmul.mubr.msk.bf16.vlgmr.msra.gmra.mrb[0].mxu1 %vm1293_vm3, %v1269_v14 }
 0x12f   : > { %4344 = vmatprep.mubr.msk.bf16.mxu1 %vm4838_vm1, %v4837_v0 }
 0x201   : > { %v1331_v16 = vpop.f32.mrb[0].mxu1 }
 0x202   : > { %v1332_v17 = vadd.f32 %v4102_v15, %v1331_v16  ;;  %v4334_v18 = vpop.f32.mrb[1].mxu1 }
 0x203   : > { %v1334_v19 = vpop.f32.mrb[2].mxu1 }
 0x204   : > { %v1335_v20 = vadd.f32 %v4102_v15, %v1334_v19  ;;  %v4335_v21 = vpop.f32.mrb[3].mxu1  ;;  %v1338_v22 = vmul.f32 0.35355338, %v1332_v17 }
 0x206   : > { %v1339_v23 = vmul.f32 0.35355338, %v1335_v20  ;;  %v5098_v24 = vpack.c.bf16 %v1335_v20, %v1332_v17 }
 0x208   : > { %v5100_v25 = vpack.c.bf16 %v1339_v23, %v1338_v22  ;;  %1347 = vrot.lane.b32.xlu0 %v5098_v24, %s4839_s1 }
 0x20a   : > { %1470 = vrot.lane.b32.xlu1 %v5100_v25, %s4840_s2 }
 0x20c   : > { %1472 = vrot.lane.b32.xlu0 %v5098_v24, %s4841_s7 }
 0x27a   : > { %v1348_v26 = vpop.permute.xlu0 %1347 }
 0x27b   : > { %v1354_v27 = vsel %vm1349_vm4, %v1348_v26, 0  ;;  %v1342_v26 = vld [vmem:[%s4888_s29] sm:$0xf] }
 0x27c   : > { %4337 = vmatpush3.bf16.xpose.msra.mxu0 %v1354_v27  ;;  %v1471_v30 = vpop.permute.xlu1 %1470  ;;  %v1644_v27 = vsel %vm1595_vm6, %v1342_v26, 0 }
 0x27d   : > { %4348 = vmatprep.subr.bf16.mxu0 %v4837_v0 }
 0x27e   : > { %v1473_v28 = vpop.permute.xlu0 %1472 }
 0x27f   : > { %v1478_v29 = vsel %vm1349_vm4, %v1473_v28, 0  ;;  %v1343_v28 = vld [vmem:[%s4888_s29 + $0x4] sm:$0xf] }
 0x283   : > { %4339 = vmatmul.mubr.msk.bf16.vlgmr.msra.gmra.mrb[4].mxu0 %vm1349_vm4, %v5100_v25 }
 0x284   : > { %4349 = vmatpush3.bf16.xpose.msra.mxu0 %v1478_v29  ;;  %4350 = vmatprep.mubr.msk.bf16.mxu0 %vm4838_vm1, %v4837_v0  ;;  %v1597_v29 = vsel %vm1595_vm6, %v1343_v28, 0 }
 0x285   : > { %4360 = vmatprep.subr.bf16.mxu0 %v4837_v0 }
 0x28b   : > { %4351 = vmatmul.mubr.msk.bf16.vlgmr.msra.gmra.mrb[8].mxu0 %vm1349_vm4, %v1471_v30 }
 0x28c   : > { %4362 = vmatprep.mubr.msk.bf16.mxu0 %vm4838_vm1, %v4837_v0  ;;  %4361 = vmatpush3.bf16.msra.mxu0 %v1597_v29 }
 0x28d   : > { %4372 = vmatprep.subr.bf16.mxu0 %v4837_v0 }
 0x356   : > { %v1390_v32 = vpop.f32.mrb[4].mxu0 }
 0x357   : > { %v1391_v34 = vadd.f32 %v1390_v32, %v5120_v31  ;;  %v4340_v35 = vpop.f32.mrb[5].mxu0 }
 0x358   : > { %v1393_v36 = vpop.f32.mrb[6].mxu0 }
 0x359   : > { %v1394_v37 = vadd.f32 %v1393_v36, %v5123_v33  ;;  %v4341_v38 = vpop.f32.mrb[7].mxu0  ;;  %v1398_v39 = vsel %vm1397_vm5, %v1391_v34, -inf }
 0x35a   : > { %1399 = vmax.xlane.f32.xlu1 %v1398_v39 }
 0x35b   : > { %v1401_v40 = vsel %vm1397_vm5, %v1394_v37, -inf }
 0x35c   : > { %1402 = vmax.xlane.f32.xlu0 %v1401_v40 }
 0x35e   : > { %v1514_v41 = vpop.f32.mrb[8].mxu0 }
 0x35f   : > { %v1515_v42 = vadd.f32 %v1514_v41, %v5120_v31  ;;  %v4352_v43 = vpop.f32.mrb[9].mxu0 }
 0x360   : > { %v1517_v44 = vpop.f32.mrb[10].mxu0 }
 0x361   : > { %v1518_v45 = vadd.f32 %v1517_v44, %v5123_v33  ;;  %v4353_v46 = vpop.f32.mrb[11].mxu0  ;;  %v1521_v47 = vsel %vm1397_vm5, %v1515_v42, -inf }
 0x362   : > { %1522 = vmax.xlane.f32.xlu0 %v1521_v47 }
 0x363   : > { %v1524_v48 = vsel %vm1397_vm5, %v1518_v45, -inf }
 0x364   : > { %1525 = vmax.xlane.f32.xlu1 %v1524_v48 }
 0x3e7   : > { %v1400_v49 = vpop.xlane.xlu1 %1399 }
 0x3e8   : > { %v1404_v50 = vsub.f32 %v1391_v34, %v1400_v49 }
 0x3e9   : > { %v1403_v51 = vpop.xlane.xlu0 %1402 }
 0x3ea   : > { %v1406_v52 = vmul.f32 1.442695, %v1404_v50  ;;  %v1405_v53 = vsub.f32 %v1394_v37, %v1403_v51 }
 0x3ec   : > { %4694 = vpow2.f32 %v1406_v52  ;;  %v1408_v54 = vmul.f32 1.442695, %v1405_v53 }
 0x3ee   : > { %4696 = vpow2.f32 %v1408_v54 }
 0x3ef   : > { %v1523_v55 = vpop.xlane.xlu0 %1522 }
 0x3f0   : > { %v1527_v56 = vsub.f32 %v1515_v42, %v1523_v55 }
 0x3f1   : > { %v1526_v57 = vpop.xlane.xlu1 %1525 }
 0x3f2   : > { %v1529_v58 = vmul.f32 1.442695, %v1527_v56  ;;  %v1528_v59 = vsub.f32 %v1518_v45, %v1526_v57 }
 0x3f4   : > { %4698 = vpow2.f32 %v1529_v58  ;;  %v1531_v60 = vmul.f32 1.442695, %v1528_v59 }
 0x3f6   : > { %v4695_v61 = vpop.eup %4694  ;;  %4700 = vpow2.f32 %v1531_v60 }
 0x3f7   : > { %v1410_v62 = vsel %vm1397_vm5, %v4695_v61, 0.0 }
 0x3f8   : > { %v4697_v63 = vpop.eup %4696  ;;  %1411 = vadd.xlane.f32.xlu0 %v1410_v62 }
 0x3f9   : > { %v1413_v1 = vsel %vm1397_vm5, %v4697_v63, 0.0 }
 0x3fa   : > { %1414 = vadd.xlane.f32.xlu1 %v1413_v1 }
 0x3fe   : > { %v4699_v2 = vpop.eup %4698 }
 0x3ff   : > { %v1533_v3 = vsel %vm1397_vm5, %v4699_v2, 0.0 }
 0x400   : > { %v4701_v4 = vpop.eup %4700  ;;  %1534 = vadd.xlane.f32.xlu0 %v1533_v3 }
 0x401   : > { %v1536_v5 = vsel %vm1397_vm5, %v4701_v4, 0.0 }
 0x402   : > { %1537 = vadd.xlane.f32.xlu1 %v1536_v5 }
 0x413   : > { %1544 = vrot.lane.b32.xlu1 %v5098_v24, %s4842_s10 }
 0x416   : > { %1421 = vrot.lane.b32.xlu0 %v5098_v24, %s4843_s11 }
 0x417   : > { %1689 = vrot.lane.b32.xlu1 %v5098_v24, %s4844_s15 }
 0x41a   : > { %1687 = vrot.lane.b32.xlu0 %v5100_v25, %s5520_s16  ;;  %s5549_s16 = sld [smem:[#allocation10_spill]] }
 0x485   : > { %v1412_v6 = vpop.xlane.xlu0 %1411 }
 0x486   : > { %4702 = vrcp.f32 %v1412_v6 }
 0x487   : > { %v1415_v7 = vpop.xlane.xlu1 %1414 }
 0x488   : > { %4704 = vrcp.f32 %v1415_v7 }
 0x48d   : > { %v1535_v8 = vpop.xlane.xlu0 %1534 }
 0x48e   : > { %4706 = vrcp.f32 %v1535_v8 }
 0x48f   : > { %v1538_v9 = vpop.xlane.xlu1 %1537 }
 0x490   : > { %v4703_v10 = vpop.eup %4702  ;;  %4708 = vrcp.f32 %v1538_v9 }
 0x491   : > { %v1422_v13 = vpop.permute.xlu0 %1421  ;;  %v1418_v15 = vmul.f32 %v4703_v10, %v4695_v61 }
 0x492   : > { %v4705_v14 = vpop.eup %4704  ;;  %4343 = vmatpush3.bf16.msra.mxu1 %v1422_v13 }
 0x493   : > { %v1419_v16 = vmul.f32 %v4705_v14, %v4697_v63  ;;  %4354 = vmatprep.subr.bf16.mxu1 %v4837_v0  ;;  %v1545_v18 = vpop.permute.xlu1 %1544 }
 0x495   : > { %v1420_v17 = vpack.c.bf16 %v1419_v16, %v1418_v15  ;;  %v1688_v44 = vpop.permute.xlu0 %1687 }
 0x497   : > { %4345 = vmatmul.mubr.msk.bf16.vlgmr.msra.gmra.mrb[4].mxu1 %vm1397_vm5, %v1420_v17  ;;  %v1690_v39 = vpop.permute.xlu1 %1689 }
 0x498   : > { %v4707_v19 = vpop.eup %4706  ;;  %4355 = vmatpush3.bf16.msra.mxu1 %v1545_v18  ;;  %4356 = vmatprep.mubr.msk.bf16.mxu1 %vm4838_vm1, %v4837_v0  ;;  %v1695_v43 = vsel %vm1349_vm4, %v1690_v39, 0 }
 0x499   : > { %4366 = vmatprep.subr.bf16.mxu1 %v4837_v0  ;;  %v1541_v21 = vmul.f32 %v4707_v19, %v4699_v2 }
 0x49a   : > { %v4709_v20 = vpop.eup %4708 }
 0x49b   : > { %v1542_v22 = vmul.f32 %v4709_v20, %v4701_v4 }
 0x49d   : > { %v1543_v23 = vpack.c.bf16 %v1542_v22, %v1541_v21  ;;  %v1344_v22 = vld [vmem:[%s4888_s29 + $0x8] sm:$0xf] }
 0x49f   : > { %4357 = vmatmul.mubr.msk.bf16.vlgmr.msra.gmra.mrb[8].mxu1 %vm1397_vm5, %v1543_v23  ;;  %v1813_v23 = vsel %vm1595_vm6, %v1344_v22, 0 }
 0x4a0   : > { %4368 = vmatprep.mubr.msk.bf16.mxu1 %vm4838_vm1, %v4837_v0  ;;  %4367 = vmatpush3.bf16.msra.mxu1 %v1644_v27 }
 0x4a1   : > { %4378 = vmatprep.subr.bf16.mxu1 %v4837_v0 }
 0x56a   : > { %v1461_v30 = vpop.f32.mrb[4].mxu1 }
 0x56b   : > { %v4346_v32 = vpop.f32.mrb[5].mxu1 }
 0x56c   : > { %v1464_v34 = vpop.f32.mrb[6].mxu1 }
 0x56d   : > { %v1468_v35 = vpack.c.bf16 %v1464_v34, %v1461_v30  ;;  %v4347_v36 = vpop.f32.mrb[7].mxu1 }
 0x56f   : > { %4369 = vmatmul.mubr.msk.bf16.vlgmr.msra.gmra.mrb[12].mxu1 %vm1349_vm4, %v1468_v35 }
 0x570   : > { %4380 = vmatprep.mubr.msk.bf16.mxu1 %vm4838_vm1, %v4837_v0 }
 0x572   : > { %v1584_v37 = vpop.f32.mrb[8].mxu1 }
 0x573   : > { %v4358_v38 = vpop.f32.mrb[9].mxu1 }
 0x574   : > { %v1587_v40 = vpop.f32.mrb[10].mxu1 }
 0x575   : > { %v1591_v41 = vpack.c.bf16 %v1587_v40, %v1584_v37  ;;  %v4359_v42 = vpop.f32.mrb[11].mxu1 }
 0x577   : > { %4363 = vmatmul.mubr.msk.bf16.vlgmr.msra.gmra.mrb[12].mxu0 %vm1349_vm4, %v1591_v41 }
 0x578   : > { %4373 = vmatpush3.bf16.xpose.msra.mxu0 %v1695_v43  ;;  %4374 = vmatprep.mubr.msk.bf16.mxu0 %vm4838_vm1, %v4837_v0 }
 0x579   : > { %4384 = vmatprep.subr.bf16.mxu0 %v4837_v0 }
 0x57f   : > { %4375 = vmatmul.mubr.msk.bf16.vlgmr.msra.gmra.mrb[16].mxu0 %vm1349_vm4, %v1688_v44 }
 0x580   : > { %4386 = vmatprep.mubr.msk.bf16.mxu0 %vm4838_vm1, %v4837_v0  ;;  %4385 = vmatpush3.bf16.msra.mxu0 %v1813_v23 }
 0x581   : > { %4396 = vmatprep.subr.bf16.mxu0 %v4837_v0 }
 0x642   : > { %v1680_v45 = vpop.f32.mrb[12].mxu1 }
 0x643   : > { %v4370_v46 = vpop.f32.mrb[13].mxu1 }
 0x644   : > { %v1683_v47 = vpop.f32.mrb[14].mxu1 }
 0x645   : > { %v4371_v48 = vpop.f32.mrb[15].mxu1 }
 0x64a   : > { %v1633_v49 = vpop.f32.mrb[12].mxu0 }
 0x64b   : > { %v5170_v50 = vadd.f32 %v1680_v45, %v1633_v49  ;;  %v4364_v51 = vpop.f32.mrb[13].mxu0 }
 0x64c   : > { %v1636_v52 = vpop.f32.mrb[14].mxu0 }
 0x64d   : > { %v5172_v53 = vadd.f32 %v1683_v47, %v1636_v52  ;;  %v4365_v54 = vpop.f32.mrb[15].mxu0 }
 0x652   : > { %v1731_v55 = vpop.f32.mrb[16].mxu0 }
 0x653   : > { %v1732_v56 = vadd.f32 %v1731_v55, %v5120_v31  ;;  %v4376_v57 = vpop.f32.mrb[17].mxu0 }
 0x654   : > { %v1734_v58 = vpop.f32.mrb[18].mxu0 }
 0x655   : > { %v1735_v59 = vadd.f32 %v1734_v58, %v5123_v33  ;;  %v4377_v60 = vpop.f32.mrb[19].mxu0  ;;  %v1738_v61 = vsel %vm1397_vm5, %v1732_v56, -inf }
 0x656   : > { %1739 = vmax.xlane.f32.xlu1 %v1738_v61 }
 0x657   : > { %v1741_v62 = vsel %vm1397_vm5, %v1735_v59, -inf }
 0x658   : > { %1742 = vmax.xlane.f32.xlu0 %v1741_v62 }
 0x6e3   : > { %v1740_v63 = vpop.xlane.xlu1 %1739 }
 0x6e4   : > { %v1744_v1 = vsub.f32 %v1732_v56, %v1740_v63 }
 0x6e5   : > { %v1743_v2 = vpop.xlane.xlu0 %1742 }
 0x6e6   : > { %v1746_v3 = vmul.f32 1.442695, %v1744_v1  ;;  %v1745_v4 = vsub.f32 %v1735_v59, %v1743_v2 }
 0x6e8   : > { %4710 = vpow2.f32 %v1746_v3  ;;  %v1748_v5 = vmul.f32 1.442695, %v1745_v4 }
 0x6ea   : > { %4712 = vpow2.f32 %v1748_v5 }
 0x6f2   : > { %v4711_v6 = vpop.eup %4710 }
 0x6f3   : > { %v1750_v7 = vsel %vm1397_vm5, %v4711_v6, 0.0 }
 0x6f4   : > { %v4713_v8 = vpop.eup %4712  ;;  %1751 = vadd.xlane.f32.xlu0 %v1750_v7 }
 0x6f5   : > { %v1753_v9 = vsel %vm1397_vm5, %v4713_v8, 0.0 }
 0x6f6   : > { %1754 = vadd.xlane.f32.xlu1 %v1753_v9 }
 0x707   : > { %1860 = vrot.lane.b32.xlu1 %v5098_v24, %s5519_s18  ;;  %s5546_s18 = sld [smem:[#allocation7_spill]] }
 0x70a   : > { %1761 = vrot.lane.b32.xlu0 %v5098_v24, %s5518_s0  ;;  %s5545_s0 = sld [smem:[#allocation4_spill]] }
 0x70b   : > { %1858 = vrot.lane.b32.xlu1 %v5100_v25, %s5516_s26  ;;  %s5517_s26 = smov 40  }
 0x781   : > { %v1752_v10 = vpop.xlane.xlu0 %1751 }
 0x782   : > { %4714 = vrcp.f32 %v1752_v10  ;;  %v4118_v10 = vld [vmem:[%s4893_s3] ss:$0 sm:$0xff] }
 0x783   : > { %v1755_v13 = vpop.xlane.xlu1 %1754 }
 0x784   : > { %4716 = vrcp.f32 %v1755_v13 }
 0x785   : > { %v1762_v14 = vpop.permute.xlu0 %1761 }
 0x786   : > { %4379 = vmatpush3.bf16.msra.mxu1 %v1762_v14 }
 0x787   : > { %4390 = vmatprep.subr.bf16.mxu1 %v4837_v0  ;;  %v1861_v19 = vpop.permute.xlu1 %1860 }
 0x788   : > { %v1866_v21 = vsel %vm1349_vm4, %v1861_v19, 0 }
 0x78b   : > { %v1859_v25 = vpop.permute.xlu1 %1858 }
 0x78c   : > { %v4715_v15 = vpop.eup %4714 }
 0x78d   : > { %v1758_v17 = vmul.f32 %v4715_v15, %v4711_v6 }
 0x78e   : > { %v4717_v16 = vpop.eup %4716 }
 0x78f   : > { %v1759_v18 = vmul.f32 %v4717_v16, %v4713_v8 }
 0x791   : > { %v1760_v20 = vpack.c.bf16 %v1759_v18, %v1758_v17 }
 0x793   : > { %4381 = vmatmul.mubr.msk.bf16.vlgmr.msra.gmra.mrb[16].mxu1 %vm1397_vm5, %v1760_v20 }
 0x794   : > { %4391 = vmatpush3.bf16.xpose.msra.mxu1 %v1866_v21  ;;  %4392 = vmatprep.mubr.msk.bf16.mxu1 %vm4838_vm1, %v4837_v0 }
 0x795   : > { %4402 = vmatprep.subr.bf16.mxu1 %v4837_v0 }
 0x79b   : > { %4393 = vmatmul.mubr.msk.bf16.vlgmr.msra.gmra.mrb[20].mxu1 %vm1349_vm4, %v1859_v25 }
 0x79c   : > { %4404 = vmatprep.mubr.msk.bf16.mxu1 %vm4838_vm1, %v4837_v0 }
 0x866   : > { %v1801_v26 = vpop.f32.mrb[16].mxu1 }
 0x867   : > { %v4382_v27 = vpop.f32.mrb[17].mxu1 }
 0x868   : > { %v1804_v28 = vpop.f32.mrb[18].mxu1 }
 0x869   : > { %v1808_v29 = vpack.c.bf16 %v1804_v28, %v1801_v26  ;;  %v4383_v30 = vpop.f32.mrb[19].mxu1 }
 0x86a   : > { %v4663_v30 = vld [vmem:[%s4908_s19] sm:$0xff]  }
 0x86b   : > { %4387 = vmatmul.mubr.msk.bf16.vlgmr.msra.gmra.mrb[20].mxu0 %vm1349_vm4, %v1808_v29 }
 0x86c   : > { %4398 = vmatprep.mubr.msk.bf16.mxu0 %vm4838_vm1, %v4837_v0 }
 0x86e   : > { %v1902_v32 = vpop.f32.mrb[20].mxu1 }
 0x86f   : > { %v1903_v34 = vadd.f32 %v1902_v32, %v5120_v31  ;;  %v4394_v35 = vpop.f32.mrb[21].mxu1  ;;  %v4664_v32 = vld [vmem:[%s4908_s19 + $0x8] sm:$0xff]  }
 0x870   : > { %v1905_v36 = vpop.f32.mrb[22].mxu1 }
 0x871   : > { %v1906_v37 = vadd.f32 %v1905_v36, %v5123_v33  ;;  %v4395_v38 = vpop.f32.mrb[23].mxu1  ;;  %v1909_v39 = vsel %vm1397_vm5, %v1903_v34, -inf }
 0x872   : > { %1910 = vmax.xlane.f32.xlu0 %v1909_v39 }
 0x873   : > { %v1912_v40 = vsel %vm1397_vm5, %v1906_v37, -inf }
 0x874   : > { %1913 = vmax.xlane.f32.xlu1 %v1912_v40 }
 0x885   : > { %1932 = vrot.lane.b32.xlu1 %v5098_v24, %s5517_s26  ;;  %s5543_s26 = sld [smem:[#allocation2_spill]] }
 0x8ff   : > { %v1911_v41 = vpop.xlane.xlu0 %1910 }
 0x900   : > { %v1915_v42 = vsub.f32 %v1903_v34, %v1911_v41 }
 0x901   : > { %v1914_v43 = vpop.xlane.xlu1 %1913 }
 0x902   : > { %v1917_v44 = vmul.f32 1.442695, %v1915_v42  ;;  %v1916_v31 = vsub.f32 %v1906_v37, %v1914_v43  ;;  %v4119_v42 = vld [vmem:[%s4898_s8] ss:$0 sm:$0xff] }
 0x904   : > { %4718 = vpow2.f32 %v1917_v44  ;;  %v1919_v45 = vmul.f32 1.442695, %v1916_v31 }
 0x905   : > { %v1933_v46 = vpop.permute.xlu1 %1932 }
 0x906   : > { %4720 = vpow2.f32 %v1919_v45  ;;  %4397 = vmatpush3.bf16.msra.mxu0 %v1933_v46  ;;  %v4120_v45 = vld [vmem:[%s4903_s14] ss:$0 sm:$0xff] }
 0x907   : > { %4408 = vmatprep.subr.bf16.mxu0 %v4837_v0 }
 0x90e   : > { %v4719_v33 = vpop.eup %4718 }
 0x90f   : > { %v1921_v47 = vsel %vm1397_vm5, %v4719_v33, 0.0 }
 0x910   : > { %v4721_v48 = vpop.eup %4720  ;;  %1922 = vadd.xlane.f32.xlu0 %v1921_v47 }
 0x911   : > { %v1924_v49 = vsel %vm1397_vm5, %v4721_v48, 0.0 }
 0x914   : > { %1925 = vadd.xlane.f32.xlu0 %v1924_v49  ;;  %v4665_v49 = vld [vmem:[%s4918_s30] sm:$0xff]  }
 0x93e   : > { %v1849_v24 = vpop.f32.mrb[20].mxu0 }
 0x93f   : > { %v1856_v51 = vadd.f32 %v1849_v24, %v5170_v50  ;;  %v4388_v52 = vpop.f32.mrb[21].mxu0  ;;  %v1345_v50 = vld [vmem:[%s4888_s29 + $0xc] sm:$0xf] }
 0x940   : > { %v1852_v54 = vpop.f32.mrb[22].mxu0  ;;  %v1984_v1 = vsel %vm1595_vm6, %v1345_v50, 0  ;;  %v4666_v24 = vld [vmem:[%s4918_s30 + $0x8] sm:$0xff]   ;;  %v4668_v52 = vld [vmem:[%s4918_s30 + $0x18] sm:$0xff]  }
 0x941   : > { %v1857_v55 = vadd.f32 %v1852_v54, %v5172_v53  ;;  %v4389_v56 = vpop.f32.mrb[23].mxu0  ;;  %4403 = vmatpush3.bf16.msra.mxu1 %v1984_v1  ;;  %v4121_v54 = vld [vmem:[%s4913_s24] ss:$0 sm:$0xff] }
 0x942   : > { %4416 = vmatprep.subr.bf16.mxu1 %v4837_v0 }
 0x99d   : > { %v1923_v57 = vpop.xlane.xlu0 %1922 }
 0x99e   : > { %4722 = vrcp.f32 %v1923_v57 }
 0x9a1   : > { %v1926_v58 = vpop.xlane.xlu0 %1925 }
 0x9a2   : > { %4724 = vrcp.f32 %v1926_v58 }
 0x9a8   : > { %v4723_v59 = vpop.eup %4722 }
 0x9a9   : > { %v1929_v61 = vmul.f32 %v4723_v59, %v4719_v33 }
 0x9ac   : > { %v4725_v60 = vpop.eup %4724 }
 0x9ad   : > { %v1930_v62 = vmul.f32 %v4725_v60, %v4721_v48 }
 0x9af   : > { %v1931_v63 = vpack.c.bf16 %v1930_v62, %v1929_v61 }
 0x9b1   : > { %4399 = vmatmul.mubr.msk.bf16.vlgmr.msra.gmra.mrb[24].mxu0 %vm1397_vm5, %v1931_v63 }
 0x9b2   : > { %4412 = vmatprep.mubr.msk.bf16.mxu0 %vm4838_vm1, %v4837_v0  ;;  %4409 = vmatpush3.bf16.msra.mxu0 %v4663_v30 }
 0x9b3   : > { %4410 = vmatprep.subr.bf16.mxu0 %v4837_v0 }
 0x9b6   : > { %4411 = vmatpush3.bf16.msra.mxu0 %v4664_v32 }
 0x9b7   : > { %4428 = vmatprep.subr.bf16.mxu0 %v4837_v0 }
 0xa84   : > { %v1972_v53 = vpop.f32.mrb[24].mxu0 }
 0xa85   : > { %v4400_v2 = vpop.f32.mrb[25].mxu0 }
 0xa86   : > { %v1975_v3 = vpop.f32.mrb[26].mxu0 }
 0xa87   : > { %v1979_v4 = vpack.c.bf16 %v1975_v3, %v1972_v53  ;;  %v4401_v5 = vpop.f32.mrb[27].mxu0 }
 0xa89   : > { %4405 = vmatmul.mubr.msk.bf16.vlgmr.msra.gmra.mrb[24].mxu1 %vm1349_vm4, %v1979_v4 }
 0xa8a   : > { %4424 = vmatprep.mubr.msk.bf16.mxu1 %vm4838_vm1, %v4837_v0  ;;  %4417 = vmatpush3.bf16.msra.mxu1 %v4665_v49 }
 0xa8b   : > { %4418 = vmatprep.subr.bf16.mxu1 %v4837_v0 }
 0xa8e   : > { %4419 = vmatpush3.bf16.msra.mxu1 %v4666_v24 }
 0xa8f   : > { %4420 = vmatprep.subr.bf16.mxu1 %v4837_v0 }
 0xb5c   : > { %v2020_v6 = vpop.f32.mrb[24].mxu1 }
 0xb5d   : > { %v2027_v7 = vadd.f32 %v2020_v6, %v1856_v51  ;;  %v4406_v8 = vpop.f32.mrb[25].mxu1  ;;  %v4667_v51 = vld [vmem:[%s4918_s30 + $0x10] sm:$0xff]  }
 0xb5e   : > { %v2023_v9 = vpop.f32.mrb[26].mxu1  ;;  %4421 = vmatpush3.bf16.msra.mxu1 %v4667_v51 }
 0xb5f   : > { %v2029_v13 = vadd.f32 %v2027_v7, %v5088_v11  ;;  %v2028_v14 = vadd.f32 %v2023_v9, %v1857_v55  ;;  %v4407_v15 = vpop.f32.mrb[27].mxu1  ;;  %4422 = vmatprep.subr.bf16.mxu1 %v4837_v0 }
 0xb61   : > { %v2030_v16 = vadd.f32 %v2028_v14, %v5090_v12  ;;  %v2038_v17 = vadd.f32 %v4118_v10, %v2029_v13 }
 0xb62   : > { %4423 = vmatpush3.bf16.msra.mxu1 %v4668_v52 }
 0xb63   : > { %v2042_v18 = vsel %vm1293_vm3, %v2038_v17, 0.0  ;;  %v2039_v19 = vadd.f32 %v4118_v10, %v2030_v16  ;;  %4444 = vmatprep.subr.bf16.mxu1 %v4837_v0 }
 0xb64   : > { %2043 = vadd.xlane.f32.xlu0 %v2042_v18 }
 0xb65   : > { %v2045_v20 = vsel %vm1293_vm3, %v2039_v19, 0.0 }
 0xb68   : > { %2046 = vadd.xlane.f32.xlu0 %v2045_v20 }
 0xbf1   : > { %v2044_v21 = vpop.xlane.xlu0 %2043 }
 0xbf2   : > { %v2049_v25 = vmul.f32 0.03125, %v2044_v21 }
 0xbf4   : > { %v2051_v22 = vsub.f32 %v2038_v17, %v2049_v25  ;;  %v4125_v17 = vld [vmem:[%s5543_s26] ss:$0 sm:$0xff]  ;;  %s5544_s26 = sld [smem:[#allocation3_spill]] }
 0xbf5   : > { %v2047_v23 = vpop.xlane.xlu0 %2046 }
 0xbf6   : > { %v2050_v26 = vmul.f32 0.03125, %v2047_v23  ;;  %v2053_v11 = vmul.f32 %v2051_v22, %v2051_v22 }
 0xbf8   : > { %v2052_v27 = vsub.f32 %v2039_v19, %v2050_v26  ;;  %v2055_v28 = vsel %vm1293_vm3, %v2053_v11, 0.0 }
 0xbf9   : > { %2056 = vadd.xlane.f32.xlu0 %v2055_v28 }
 0xbfa   : > { %v2054_v12 = vmul.f32 %v2052_v27, %v2052_v27 }
 0xbfc   : > { %v2058_v29 = vsel %vm1293_vm3, %v2054_v12, 0.0 }
 0xbfd   : > { %2059 = vadd.xlane.f32.xlu0 %v2058_v29 }
 0xc86   : > { %v2057_v34 = vpop.xlane.xlu0 %2056 }
 0xc87   : > { %v2061_v35 = vmul.f32 0.03125, %v2057_v34 }
 0xc89   : > { %v2063_v36 = vadd.f32 1e-05, %v2061_v35 }
 0xc8a   : > { %v2060_v37 = vpop.xlane.xlu0 %2059 }
 0xc8b   : > { %4726 = vrsqrt.f32 %v2063_v36  ;;  %v2062_v38 = vmul.f32 0.03125, %v2060_v37 }
 0xc8d   : > { %v2064_v39 = vadd.f32 1e-05, %v2062_v38 }
 0xc8f   : > { %4728 = vrsqrt.f32 %v2064_v39 }
 0xc95   : > { %v4727_v40 = vpop.eup %4726 }
 0xc96   : > { %v2067_v41 = vmul.f32 %v4727_v40, %v2051_v22 }
 0xc98   : > { %v2075_v44 = vmul.f32 %v4119_v42, %v2067_v41 }
 0xc99   : > { %v4729_v43 = vpop.eup %4728 }
 0xc9a   : > { %v2068_v31 = vmul.f32 %v4729_v43, %v2052_v27  ;;  %v2083_v33 = vadd.f32 %v4120_v45, %v2075_v44 }
 0xc9c   : > { %v2076_v46 = vmul.f32 %v4119_v42, %v2068_v31 }
 0xc9e   : > { %v2084_v47 = vadd.f32 %v4120_v45, %v2076_v46  ;;  %v4131_v45 = vld [vmem:[%s5544_s26] ss:$0 sm:$0xff]  ;;  %s5548_s26 = sld [smem:[#allocation6_spill]] }
 0xca0   : > { %v2085_v48 = vpack.c.bf16 %v2084_v47, %v2083_v33 }
 0xca2   : > { %4413 = vmatmul.mubr.msk.bf16.vlgmr.msra.gmra.mrb[28].mxu0 %vm1293_vm3, %v2085_v48 }
 0xca3   : > { %4432 = vmatprep.mubr.msk.bf16.mxu0 %vm4838_vm1, %v4837_v0 }
 0xd75   : > { %v2146_v55 = vpop.f32.mrb[28].mxu0 }
 0xd76   : > { %v2147_v56 = vadd.f32 %v4121_v54, %v2146_v55  ;;  %v4414_v57 = vpop.f32.mrb[29].mxu0 }
 0xd77   : > { %v2149_v58 = vpop.f32.mrb[30].mxu0 }
 0xd78   : > { %v2153_v59 = vmul.f32 %v2147_v56, %v2147_v56  ;;  %v2150_v60 = vadd.f32 %v4121_v54, %v2149_v58  ;;  %v4415_v61 = vpop.f32.mrb[31].mxu0 }
 0xd7a   : > { %v2155_v62 = vmul.f32 %v2153_v59, %v2147_v56  ;;  %v2154_v63 = vmul.f32 %v2150_v60, %v2150_v60 }
 0xd7c   : > { %v2157_v50 = vmul.f32 0.044715, %v2155_v62  ;;  %v2156_v1 = vmul.f32 %v2154_v63, %v2150_v60 }
 0xd7e   : > { %v2159_v53 = vadd.f32 %v2157_v50, %v2147_v56  ;;  %v2158_v2 = vmul.f32 0.044715, %v2156_v1 }
 0xd80   : > { %v2161_v3 = vmul.f32 0.7978846, %v2159_v53  ;;  %v2160_v4 = vadd.f32 %v2158_v2, %v2150_v60  ;;  %v4669_v53 = vld [vmem:[%s5546_s18 + $0x10] sm:$0xff]   ;;  %v4670_v2 = vld [vmem:[%s5546_s18 + $0x20] sm:$0xff]  }
 0xd81   : > { %4429 = vmatpush3.bf16.msra.mxu0 %v4669_v53 }
 0xd82   : > { %4730 = vtanh.f32 %v2161_v3  ;;  %v2162_v5 = vmul.f32 0.7978846, %v2160_v4  ;;  %4430 = vmatprep.subr.bf16.mxu0 %v4837_v0  ;;  %v4671_v3 = vld [vmem:[%s5546_s18 + $0x18] sm:$0xff]   ;;  %v4672_v4 = vld [vmem:[%s5546_s18 + $0x28] sm:$0xff]  }
 0xd84   : > { %4732 = vtanh.f32 %v2162_v5 }
 0xd85   : > { %4431 = vmatpush3.bf16.msra.mxu0 %v4671_v3 }
 0xd86   : > { %4436 = vmatprep.subr.bf16.mxu0 %v4837_v0 }
 0xd8c   : > { %v4731_v6 = vpop.eup %4730 }
 0xd8d   : > { %v2165_v7 = vadd.f32 1.0, %v4731_v6 }
 0xd8e   : > { %v4733_v8 = vpop.eup %4732 }
 0xd8f   : > { %v2167_v9 = vmul.f32 0.5, %v2165_v7  ;;  %v2166_v10 = vadd.f32 1.0, %v4733_v8 }
 0xd91   : > { %v2168_v13 = vmul.f32 0.5, %v2166_v10  ;;  %v2169_v14 = vmul.f32 %v2167_v9, %v2147_v56 }
 0xd93   : > { %v2170_v15 = vmul.f32 %v2168_v13, %v2150_v60 }
 0xd95   : > { %v2171_v16 = vpack.c.bf16 %v2170_v15, %v2169_v14 }
 0xd97   : > { %4425 = vmatmul.mubr.msk.bf16.vlgmr.msra.gmra.mrb[28].mxu1 %vm2211_vm7, %v2171_v16 }
 0xd98   : > { %4448 = vmatprep.mubr.msk.bf16.mxu1 %vm4838_vm1, %v4837_v0  ;;  %4445 = vmatpush3.bf16.msra.mxu1 %v4670_v2 }
 0xd99   : > { %4446 = vmatprep.subr.bf16.mxu1 %v4837_v0 }
 0xd9c   : > { %4447 = vmatpush3.bf16.msra.mxu1 %v4672_v4 }
 0xd9d   : > { %4460 = vmatprep.subr.bf16.mxu1 %v4837_v0 }
 0xe6a   : > { %v2249_v18 = vpop.f32.mrb[28].mxu1 }
 0xe6b   : > { %v2250_v19 = vadd.f32 %v4125_v17, %v2249_v18  ;;  %v4426_v20 = vpop.f32.mrb[29].mxu1 }
 0xe6c   : > { %v2252_v21 = vpop.f32.mrb[30].mxu1 }
 0xe6d   : > { %v2253_v25 = vadd.f32 %v4125_v17, %v2252_v21  ;;  %v4427_v22 = vpop.f32.mrb[31].mxu1  ;;  %v2256_v23 = vadd.f32 %v2250_v19, %v2083_v33  ;;  %v4132_v33 = vld [vmem:[%s5545_s0] ss:$0 sm:$0xff]  ;;  %s5547_s0 = sld [smem:[#allocation5_spill]] }
 0xe6e   : > { %v4134_v19 = vld [vmem:[%s5548_s26] ss:$0 sm:$0xff]  ;;  %s5553_s26 = sld [smem:[#allocation9_spill]] }
 0xe6f   : > { %v2260_v26 = vsel %vm1293_vm3, %v2256_v23, 0.0  ;;  %v2257_v11 = vadd.f32 %v2253_v25, %v2084_v47  ;;  %v4659_v21 = vld [vmem:[%s5549_s16] sm:$0x3f]   ;;  %s5550_s16 = sld [smem:[#allocation11_spill]] }
 0xe70   : > { %2261 = vadd.xlane.f32.xlu1 %v2260_v26  ;;  %v4673_v26 = vld [vmem:[%s5546_s18] sm:$0xff]  }
 0xe71   : > { %v2263_v27 = vsel %vm1293_vm3, %v2257_v11, 0.0 }
 0xe72   : > { %2264 = vadd.xlane.f32.xlu0 %v2263_v27 }
 0xe73   : > { %v4133_v15 = vld [vmem:[%s5547_s0] ss:$0 sm:$0xff]  ;;  %s5552_s0 = sld [smem:[#allocation12_spill]] }
 0xefd   : > { %v2262_v28 = vpop.xlane.xlu1 %2261 }
 0xefe   : > { %v2266_v12 = vmul.f32 0.03125, %v2262_v28 }
 0xeff   : > { %v2265_v29 = vpop.xlane.xlu0 %2264 }
 0xf00   : > { %v2268_v30 = vsub.f32 %v2256_v23, %v2266_v12  ;;  %v2267_v32 = vmul.f32 0.03125, %v2265_v29  ;;  %v4674_v12 = vld [vmem:[%s5546_s18 + $0x8] sm:$0xff]   ;;  %v4675_v29 = vld [vmem:[%s5077_s28] sm:$0xff]   ;;  %s5551_s28 = sld [smem:[#allocation8_spill]] }
 0xf02   : > { %v2269_v34 = vsub.f32 %v2257_v11, %v2267_v32  ;;  %v2270_v35 = vmul.f32 %v2268_v30, %v2268_v30  ;;  %v2612_v11 = vsel %vm1222_vm0, %v4659_v21, 0  ;;  %v4677_v32 = vld [vmem:[%s5546_s18 + $0x38] sm:$0xff]  }
 0xf04   : > { %v2272_v36 = vsel %vm1293_vm3, %v2270_v35, 0.0  ;;  %v2271_v37 = vmul.f32 %v2269_v34, %v2269_v34  ;;  %v4678_v35 = vld [vmem:[%s5550_s16] sm:$0xff]  }
 0xf05   : > { %2273 = vadd.xlane.f32.xlu0 %v2272_v36  ;;  %v4679_v36 = vld [vmem:[%s5550_s16 + $0x8] sm:$0xff]  }
 0xf06   : > { %v2275_v38 = vsel %vm1293_vm3, %v2271_v37, 0.0 }
 0xf09   : > { %2276 = vadd.xlane.f32.xlu0 %v2275_v38 }
 0xf92   : > { %v2274_v39 = vpop.xlane.xlu0 %2273 }
 0xf93   : > { %v2278_v40 = vmul.f32 0.03125, %v2274_v39 }
 0xf95   : > { %v2280_v41 = vadd.f32 1e-05, %v2278_v40 }
 0xf96   : > { %v2277_v42 = vpop.xlane.xlu0 %2276 }
 0xf97   : > { %4734 = vrsqrt.f32 %v2280_v41  ;;  %v2279_v43 = vmul.f32 0.03125, %v2277_v42 }
 0xf99   : > { %v2281_v44 = vadd.f32 1e-05, %v2279_v43 }
 0xf9b   : > { %4736 = vrsqrt.f32 %v2281_v44 }
 0xfa1   : > { %v4735_v31 = vpop.eup %4734 }
 0xfa2   : > { %v2284_v46 = vmul.f32 %v4735_v31, %v2268_v30  ;;  %v4676_v30 = vld [vmem:[%s5546_s18 + $0x30] sm:$0xff]  }
 0xfa4   : > { %v2292_v47 = vmul.f32 %v4131_v45, %v2284_v46 }
 0xfa5   : > { %v4737_v48 = vpop.eup %4736 }
 0xfa6   : > { %v2300_v49 = vadd.f32 %v4132_v33, %v2292_v47  ;;  %v2285_v24 = vmul.f32 %v4737_v48, %v2269_v34 }
 0xfa8   : > { %v2304_v51 = vsel %vm1293_vm3, %v2300_v49, 0.0  ;;  %v2293_v52 = vmul.f32 %v4131_v45, %v2285_v24  ;;  %v2596_v45 = vld [vmem:[%s5551_s28] sm:$0xff] }
 0xfa9   : > { %2305 = vadd.xlane.f32.xlu0 %v2304_v51 }
 0xfaa   : > { %v2301_v54 = vadd.f32 %v4132_v33, %v2293_v52  ;;  %v2597_v33 = vld [vmem:[%s5551_s28 + $0x8] sm:$0xff] }
 0xfac   : > { %v2307_v55 = vsel %vm1293_vm3, %v2301_v54, 0.0 }
 0xfad   : > { %2308 = vadd.xlane.f32.xlu0 %v2307_v55 }
0x1036   : > { %v2306_v56 = vpop.xlane.xlu0 %2305 }
0x1037   : > { %v2310_v57 = vmul.f32 0.03125, %v2306_v56 }
0x1039   : > { %v2312_v58 = vsub.f32 %v2300_v49, %v2310_v57 }
0x103a   : > { %v2309_v59 = vpop.xlane.xlu0 %2308 }
0x103b   : > { %v2311_v60 = vmul.f32 0.03125, %v2309_v59  ;;  %v2314_v61 = vmul.f32 %v2312_v58, %v2312_v58 }
0x103d   : > { %v2313_v62 = vsub.f32 %v2301_v54, %v2311_v60  ;;  %v2316_v63 = vsel %vm1293_vm3, %v2314_v61, 0.0 }
0x103e   : > { %2317 = vadd.xlane.f32.xlu0 %v2316_v63 }
0x103f   : > { %v2315_v50 = vmul.f32 %v2313_v62, %v2313_v62 }
0x1041   : > { %v2319_v1 = vsel %vm1293_vm3, %v2315_v50, 0.0  ;;  %v4162_v50 = vld [vmem:[%s5552_s0] ss:$0 sm:$0xff]  ;;  %s5560_s0 = sld [smem:[#allocation14_spill]] }
0x1042   : > { %2320 = vadd.xlane.f32.xlu0 %v2319_v1 }
0x10cb   : > { %v2318_v5 = vpop.xlane.xlu0 %2317 }
0x10cc   : > { %v2322_v6 = vmul.f32 0.03125, %v2318_v5 }
0x10ce   : > { %v2324_v7 = vadd.f32 1e-05, %v2322_v6 }
0x10cf   : > { %v2321_v8 = vpop.xlane.xlu0 %2320 }
0x10d0   : > { %4738 = vrsqrt.f32 %v2324_v7  ;;  %v2323_v9 = vmul.f32 0.03125, %v2321_v8 }
0x10d2   : > { %v2325_v10 = vadd.f32 1e-05, %v2323_v9 }
0x10d4   : > { %4740 = vrsqrt.f32 %v2325_v10 }
0x10da   : > { %v4739_v13 = vpop.eup %4738 }
0x10db   : > { %v2328_v14 = vmul.f32 %v4739_v13, %v2312_v58 }
0x10dd   : > { %v2336_v17 = vmul.f32 %v4133_v15, %v2328_v14 }
0x10de   : > { %v4741_v16 = vpop.eup %4740 }
0x10df   : > { %v2329_v18 = vmul.f32 %v4741_v16, %v2313_v62  ;;  %v2344_v25 = vadd.f32 %v4134_v19, %v2336_v17  ;;  %v5337_v17 = vld [vmem:[%s5553_s26] sm:$0xff] }
0x10e1   : > { %v2337_v20 = vmul.f32 %v4133_v15, %v2329_v18 }
0x10e3   : > { %v2345_v22 = vadd.f32 %v4134_v19, %v2337_v20  ;;  %v5340_v19 = vld [vmem:[%s5553_s26 + $0x8] sm:$0xff] }
0x10e5   : > { %v2346_v23 = vpack.c.bf16 %v2345_v22, %v2344_v25 }
0x10e7   : > { %v2357_v27 = vrot.slane %v2346_v23, 2  ;;  %v2473_v28 = vrot.slane %v2346_v23, 4  ;;  %v2535_v34 = vrot.slane %v2346_v23, 6 }
0x10e9   : > { %4433 = vmatmul.mubr.msk.bf16.vlgmr.msra.gmra.mrb[32].mxu0 %vm1293_vm3, %v2357_v27  ;;  %4449 = vmatmul.mubr.msk.bf16.vlgmr.msra.gmra.mrb[32].mxu1 %vm1293_vm3, %v2473_v28 }
0x10ea   : > { %4437 = vmatpush3.bf16.msra.mxu0 %v4673_v26  ;;  %4461 = vmatpush3.bf16.msra.mxu1 %v2612_v11 }
0x10eb   : > { %4438 = vmatprep.subr.bf16.mxu0 %v4837_v0  ;;  %4440 = vmatprep.mubr.msk.bf16.mxu0 %vm4838_vm1, %v4837_v0 }
0x10ec   : > { %4462 = vmatprep.mubr.msk.bf16.mxu1 %vm4838_vm1, %v4837_v0  ;;  %4474 = vmatprep.subr.bf16.mxu1 %v4837_v0 }
0x10ee   : > { %4439 = vmatpush3.bf16.msra.mxu0 %v4674_v12 }
0x10ef   : > { %4452 = vmatprep.subr.bf16.mxu0 %v4837_v0 }
0x10f1   : > { %4441 = vmatmul.mubr.msk.bf16.vlgmr.msra.gmra.mrb[36].mxu0 %vm1293_vm3, %v2346_v23  ;;  %4463 = vmatmul.mubr.msk.bf16.vlgmr.msra.gmra.mrb[36].mxu1 %vm1218_vm2, %v4675_v29 }
0x10f2   : > { %4453 = vmatpush3.bf16.msra.mxu0 %v4676_v30  ;;  %4456 = vmatprep.mubr.msk.bf16.mxu0 %vm4838_vm1, %v4837_v0 }
0x10f3   : > { %4454 = vmatprep.subr.bf16.mxu0 %v4837_v0  ;;  %4476 = vmatprep.mubr.msk.bf16.mxu1 %vm4838_vm1, %v4837_v0 }
0x10f6   : > { %4455 = vmatpush3.bf16.msra.mxu0 %v4677_v32 }
0x10f7   : > { %4466 = vmatprep.subr.bf16.mxu0 %v4837_v0 }
0x10f9   : > { %4457 = vmatmul.mubr.msk.bf16.vlgmr.msra.gmra.mrb[40].mxu0 %vm1293_vm3, %v2535_v34 }
0x10fa   : > { %4470 = vmatprep.mubr.msk.bf16.mxu0 %vm4838_vm1, %v4837_v0  ;;  %4467 = vmatpush3.bf16.msra.mxu0 %v4678_v35 }
0x10fb   : > { %4468 = vmatprep.subr.bf16.mxu0 %v4837_v0 }
0x10fe   : > { %4469 = vmatpush3.bf16.msra.mxu0 %v4679_v36 }
0x10ff   : > { %4480 = vmatprep.subr.bf16.mxu0 %v4837_v0 }
0x11bc   : > { %v2407_v37 = vpop.f32.mrb[32].mxu0  ;;  %v2523_v38 = vpop.f32.mrb[32].mxu1 }
0x11bd   : > { %v4434_v39 = vpop.f32.mrb[33].mxu0  ;;  %v4450_v40 = vpop.f32.mrb[33].mxu1 }
0x11be   : > { %v2410_v41 = vpop.f32.mrb[34].mxu0  ;;  %v2526_v42 = vpop.f32.mrb[34].mxu1 }
0x11bf   : > { %v4435_v43 = vpop.f32.mrb[35].mxu0  ;;  %v4451_v44 = vpop.f32.mrb[35].mxu1 }
0x11c4   : > { %v2462_v31 = vpop.f32.mrb[36].mxu0  ;;  %v2648_v46 = vpop.f32.mrb[36].mxu1 }
0x11c5   : > { %v2463_v47 = vadd.f32 %v2462_v31, %v2407_v37  ;;  %v4442_v48 = vpop.f32.mrb[37].mxu0  ;;  %v4464_v49 = vpop.f32.mrb[37].mxu1  ;;  %v5303_v52 = vadd.f32 %v2648_v46, %v2596_v45 }
0x11c6   : > { %v2465_v24 = vpop.f32.mrb[38].mxu0  ;;  %v2651_v51 = vpop.f32.mrb[38].mxu1 }
0x11c7   : > { %v5305_v54 = vadd.f32 %v2651_v51, %v2597_v33  ;;  %v4443_v55 = vpop.f32.mrb[39].mxu0  ;;  %v4465_v56 = vpop.f32.mrb[39].mxu1  ;;  %v2529_v57 = vadd.f32 %v2523_v38, %v2463_v47 }
0x11c9   : > { %v2657_v58 = vpack.c.bf16 %v5305_v54, %v5303_v52 }
0x11cb   : > { %4471 = vmatmul.mubr.msk.bf16.vlgmr.msra.gmra.mrb[44].mxu0 %vm1293_vm3, %v2657_v58 }
0x11cc   : > { %v2585_v59 = vpop.f32.mrb[40].mxu0  ;;  %4482 = vmatprep.mubr.msk.bf16.mxu0 %vm4838_vm1, %v4837_v0 }
0x11cd   : > { %v5312_v60 = vadd.f32 %v2585_v59, %v2529_v57  ;;  %v4458_v61 = vpop.f32.mrb[41].mxu0 }
0x11ce   : > { %v2588_v62 = vpop.f32.mrb[42].mxu0 }
0x11cf   : > { %v4459_v63 = vpop.f32.mrb[43].mxu0 }
0x129e   : > { %v2718_v1 = vpop.f32.mrb[44].mxu0 }
0x129f   : > { %v2719_v53 = vadd.f32 %v4162_v50, %v2718_v1  ;;  %v4472_v2 = vpop.f32.mrb[45].mxu0 }
0x12a0   : > { %v2721_v3 = vpop.f32.mrb[46].mxu0 }
0x12a1   : > { %v2722_v4 = vadd.f32 %v4162_v50, %v2721_v3  ;;  %v4473_v5 = vpop.f32.mrb[47].mxu0  ;;  %v2725_v6 = vmul.f32 0.35355338, %v2719_v53 }
0x12a3   : > { %v2726_v7 = vmul.f32 0.35355338, %v2722_v4  ;;  %v5315_v8 = vpack.c.bf16 %v2722_v4, %v2719_v53 }
0x12a5   : > { %v5317_v9 = vpack.c.bf16 %v2726_v7, %v2725_v6  ;;  %2857 = vrot.lane.b32.xlu1 %v5315_v8, %s4841_s7  ;;  %2734 = vrot.lane.b32.xlu0 %v5315_v8, %s4839_s1  ;;  %s5554_s1 = smov 112   ;;  %s5556_s7 = smov 72  }
0x12a9   : > { %2855 = vrot.lane.b32.xlu0 %v5317_v9, %s4840_s2  ;;  %s5555_s2 = sld [smem:[#allocation13_spill]] }
0x1317   : > { %v2735_v10 = vpop.permute.xlu0 %2734  ;;  %v2858_v14 = vpop.permute.xlu1 %2857 }
0x1318   : > { %v2740_v13 = vsel %vm1349_vm4, %v2735_v10, 0  ;;  %v2863_v15 = vsel %vm1349_vm4, %v2858_v14, 0 }
0x1319   : > { %4475 = vmatpush3.bf16.xpose.msra.mxu1 %v2740_v13  ;;  %v2729_v13 = vld [vmem:[%s5555_s2] sm:$0xf] }
0x131a   : > { %4486 = vmatprep.subr.bf16.mxu1 %v4837_v0  ;;  %v3028_v14 = vsel %vm1595_vm6, %v2729_v13, 0 }
0x131b   : > { %v2856_v16 = vpop.permute.xlu0 %2855 }
0x1320   : > { %4477 = vmatmul.mubr.msk.bf16.vlgmr.msra.gmra.mrb[40].mxu1 %vm1349_vm4, %v5317_v9 }
0x1321   : > { %4487 = vmatpush3.bf16.xpose.msra.mxu1 %v2863_v15  ;;  %4488 = vmatprep.mubr.msk.bf16.mxu1 %vm4838_vm1, %v4837_v0  ;;  %v2730_v15 = vld [vmem:[%s5555_s2 + $0x4] sm:$0xf] }
0x1322   : > { %4498 = vmatprep.subr.bf16.mxu1 %v4837_v0 }
0x1328   : > { %4489 = vmatmul.mubr.msk.bf16.vlgmr.msra.gmra.mrb[44].mxu1 %vm1349_vm4, %v2856_v16  ;;  %v2981_v16 = vsel %vm1595_vm6, %v2730_v15, 0 }
0x1329   : > { %4500 = vmatprep.mubr.msk.bf16.mxu1 %vm4838_vm1, %v4837_v0  ;;  %4499 = vmatpush3.bf16.msra.mxu1 %v2981_v16 }
0x132a   : > { %4510 = vmatprep.subr.bf16.mxu1 %v4837_v0 }
0x13f3   : > { %v2776_v18 = vpop.f32.mrb[40].mxu1 }
0x13f4   : > { %v2777_v20 = vadd.f32 %v2776_v18, %v5337_v17  ;;  %v4478_v21 = vpop.f32.mrb[41].mxu1 }
0x13f5   : > { %v2779_v25 = vpop.f32.mrb[42].mxu1 }
0x13f6   : > { %v2780_v22 = vadd.f32 %v2779_v25, %v5340_v19  ;;  %v4479_v23 = vpop.f32.mrb[43].mxu1  ;;  %v2783_v26 = vsel %vm1397_vm5, %v2777_v20, -inf }
0x13f7   : > { %2784 = vmax.xlane.f32.xlu1 %v2783_v26 }
0x13f8   : > { %v2786_v11 = vsel %vm1397_vm5, %v2780_v22, -inf }
0x13f9   : > { %2787 = vmax.xlane.f32.xlu0 %v2786_v11 }
0x13fb   : > { %v2899_v27 = vpop.f32.mrb[44].mxu1 }
0x13fc   : > { %v2900_v28 = vadd.f32 %v2899_v27, %v5337_v17  ;;  %v4490_v12 = vpop.f32.mrb[45].mxu1 }
0x13fd   : > { %v2902_v29 = vpop.f32.mrb[46].mxu1 }
0x13fe   : > { %v2903_v30 = vadd.f32 %v2902_v29, %v5340_v19  ;;  %v4491_v32 = vpop.f32.mrb[47].mxu1  ;;  %v2906_v34 = vsel %vm1397_vm5, %v2900_v28, -inf }
0x13ff   : > { %2907 = vmax.xlane.f32.xlu0 %v2906_v34 }
0x1400   : > { %v2909_v35 = vsel %vm1397_vm5, %v2903_v30, -inf }
0x1401   : > { %2910 = vmax.xlane.f32.xlu1 %v2909_v35 }
0x1484   : > { %v2785_v36 = vpop.xlane.xlu1 %2784 }
0x1485   : > { %v2789_v37 = vsub.f32 %v2777_v20, %v2785_v36 }
0x1486   : > { %v2788_v38 = vpop.xlane.xlu0 %2787 }
0x1487   : > { %v2791_v39 = vmul.f32 1.442695, %v2789_v37  ;;  %v2790_v40 = vsub.f32 %v2780_v22, %v2788_v38 }
0x1489   : > { %4742 = vpow2.f32 %v2791_v39  ;;  %v2793_v41 = vmul.f32 1.442695, %v2790_v40 }
0x148b   : > { %4744 = vpow2.f32 %v2793_v41 }
0x148c   : > { %v2908_v42 = vpop.xlane.xlu0 %2907 }
0x148d   : > { %v2912_v43 = vsub.f32 %v2900_v28, %v2908_v42 }
0x148e   : > { %v2911_v44 = vpop.xlane.xlu1 %2910 }
0x148f   : > { %v2914_v31 = vmul.f32 1.442695, %v2912_v43  ;;  %v2913_v45 = vsub.f32 %v2903_v30, %v2911_v44 }
0x1491   : > { %4746 = vpow2.f32 %v2914_v31  ;;  %v2916_v46 = vmul.f32 1.442695, %v2913_v45 }
0x1493   : > { %v4743_v33 = vpop.eup %4742  ;;  %4748 = vpow2.f32 %v2916_v46 }
0x1494   : > { %v2795_v47 = vsel %vm1397_vm5, %v4743_v33, 0.0 }
0x1495   : > { %v4745_v48 = vpop.eup %4744  ;;  %2796 = vadd.xlane.f32.xlu0 %v2795_v47 }
0x1496   : > { %v2798_v49 = vsel %vm1397_vm5, %v4745_v48, 0.0 }
0x1497   : > { %2799 = vadd.xlane.f32.xlu1 %v2798_v49 }
0x149b   : > { %v4747_v24 = vpop.eup %4746 }
0x149c   : > { %v2918_v51 = vsel %vm1397_vm5, %v4747_v24, 0.0 }
0x149d   : > { %v4749_v55 = vpop.eup %4748  ;;  %2919 = vadd.xlane.f32.xlu0 %v2918_v51 }
0x149e   : > { %v2921_v56 = vsel %vm1397_vm5, %v4749_v55, 0.0 }
0x149f   : > { %2922 = vadd.xlane.f32.xlu1 %v2921_v56 }
0x14b0   : > { %2929 = vrot.lane.b32.xlu1 %v5315_v8, %s4842_s10  ;;  %s5557_s10 = smov 48  }
0x14b3   : > { %2806 = vrot.lane.b32.xlu0 %v5315_v8, %s4843_s11  ;;  %s5558_s11 = smov 104  }
0x14b4   : > { %3073 = vrot.lane.b32.xlu1 %v5315_v8, %s4844_s15  ;;  %s5559_s15 = smov 40  }
0x14b7   : > { %3071 = vrot.lane.b32.xlu0 %v5317_v9, %s5554_s1  ;;  %s5561_s1 = sld [smem:[#allocation17_spill]] }
0x1522   : > { %v2797_v57 = vpop.xlane.xlu0 %2796 }
0x1523   : > { %4750 = vrcp.f32 %v2797_v57 }
0x1524   : > { %v2800_v58 = vpop.xlane.xlu1 %2799 }
0x1525   : > { %4752 = vrcp.f32 %v2800_v58 }
0x152a   : > { %v2920_v59 = vpop.xlane.xlu0 %2919 }
0x152b   : > { %4754 = vrcp.f32 %v2920_v59 }
0x152c   : > { %v2923_v61 = vpop.xlane.xlu1 %2922 }
0x152d   : > { %v4751_v62 = vpop.eup %4750  ;;  %4756 = vrcp.f32 %v2923_v61 }
0x152e   : > { %v2807_v63 = vpop.permute.xlu0 %2806  ;;  %v2803_v1 = vmul.f32 %v4751_v62, %v4743_v33 }
0x152f   : > { %v4753_v50 = vpop.eup %4752  ;;  %4481 = vmatpush3.bf16.msra.mxu0 %v2807_v63 }
0x1530   : > { %v2804_v53 = vmul.f32 %v4753_v50, %v4745_v48  ;;  %4492 = vmatprep.subr.bf16.mxu0 %v4837_v0  ;;  %v2930_v3 = vpop.permute.xlu1 %2929 }
0x1532   : > { %v2805_v2 = vpack.c.bf16 %v2804_v53, %v2803_v1  ;;  %v3072_v30 = vpop.permute.xlu0 %3071 }
0x1534   : > { %4483 = vmatmul.mubr.msk.bf16.vlgmr.msra.gmra.mrb[48].mxu0 %vm1397_vm5, %v2805_v2  ;;  %v3074_v11 = vpop.permute.xlu1 %3073 }
0x1535   : > { %v4755_v4 = vpop.eup %4754  ;;  %4493 = vmatpush3.bf16.msra.mxu0 %v2930_v3  ;;  %4494 = vmatprep.mubr.msk.bf16.mxu0 %vm4838_vm1, %v4837_v0  ;;  %v3079_v29 = vsel %vm1349_vm4, %v3074_v11, 0 }
0x1536   : > { %4504 = vmatprep.subr.bf16.mxu0 %v4837_v0  ;;  %v2926_v6 = vmul.f32 %v4755_v4, %v4747_v24 }
0x1537   : > { %v4757_v5 = vpop.eup %4756 }
0x1538   : > { %v2927_v7 = vmul.f32 %v4757_v5, %v4749_v55 }
0x153a   : > { %v2928_v10 = vpack.c.bf16 %v2927_v7, %v2926_v6 }
0x153c   : > { %4495 = vmatmul.mubr.msk.bf16.vlgmr.msra.gmra.mrb[52].mxu0 %vm1397_vm5, %v2928_v10  ;;  %v2731_v10 = vld [vmem:[%s5555_s2 + $0x8] sm:$0xf] }
0x153d   : > { %4506 = vmatprep.mubr.msk.bf16.mxu0 %vm4838_vm1, %v4837_v0  ;;  %4505 = vmatpush3.bf16.msra.mxu0 %v3028_v14  ;;  %v3197_v13 = vsel %vm1595_vm6, %v2731_v10, 0 }
0x153e   : > { %4516 = vmatprep.subr.bf16.mxu0 %v4837_v0 }
0x1607   : > { %v2846_v18 = vpop.f32.mrb[48].mxu0 }
0x1608   : > { %v4484_v20 = vpop.f32.mrb[49].mxu0 }
0x1609   : > { %v2849_v21 = vpop.f32.mrb[50].mxu0 }
0x160a   : > { %v2853_v25 = vpack.c.bf16 %v2849_v21, %v2846_v18  ;;  %v4485_v22 = vpop.f32.mrb[51].mxu0 }
0x160c   : > { %4507 = vmatmul.mubr.msk.bf16.vlgmr.msra.gmra.mrb[56].mxu0 %vm1349_vm4, %v2853_v25 }
0x160d   : > { %4518 = vmatprep.mubr.msk.bf16.mxu0 %vm4838_vm1, %v4837_v0 }
0x160f   : > { %v2969_v23 = vpop.f32.mrb[52].mxu0 }
0x1610   : > { %v4496_v26 = vpop.f32.mrb[53].mxu0 }
0x1611   : > { %v2972_v27 = vpop.f32.mrb[54].mxu0 }
0x1612   : > { %v2976_v28 = vpack.c.bf16 %v2972_v27, %v2969_v23  ;;  %v4497_v12 = vpop.f32.mrb[55].mxu0 }
0x1614   : > { %4501 = vmatmul.mubr.msk.bf16.vlgmr.msra.gmra.mrb[48].mxu1 %vm1349_vm4, %v2976_v28 }
0x1615   : > { %4511 = vmatpush3.bf16.xpose.msra.mxu1 %v3079_v29  ;;  %4512 = vmatprep.mubr.msk.bf16.mxu1 %vm4838_vm1, %v4837_v0 }
0x1616   : > { %4522 = vmatprep.subr.bf16.mxu1 %v4837_v0 }
0x161c   : > { %4513 = vmatmul.mubr.msk.bf16.vlgmr.msra.gmra.mrb[52].mxu1 %vm1349_vm4, %v3072_v30 }
0x161d   : > { %4524 = vmatprep.mubr.msk.bf16.mxu1 %vm4838_vm1, %v4837_v0  ;;  %4523 = vmatpush3.bf16.msra.mxu1 %v3197_v13 }
0x161e   : > { %4534 = vmatprep.subr.bf16.mxu1 %v4837_v0 }
0x16df   : > { %v3064_v32 = vpop.f32.mrb[56].mxu0 }
0x16e0   : > { %v4508_v34 = vpop.f32.mrb[57].mxu0 }
0x16e1   : > { %v3067_v35 = vpop.f32.mrb[58].mxu0 }
0x16e2   : > { %v4509_v36 = vpop.f32.mrb[59].mxu0 }
0x16e7   : > { %v3017_v37 = vpop.f32.mrb[48].mxu1 }
0x16e8   : > { %v5387_v38 = vadd.f32 %v3064_v32, %v3017_v37  ;;  %v4502_v39 = vpop.f32.mrb[49].mxu1 }
0x16e9   : > { %v3020_v40 = vpop.f32.mrb[50].mxu1 }
0x16ea   : > { %v5389_v41 = vadd.f32 %v3067_v35, %v3020_v40  ;;  %v4503_v42 = vpop.f32.mrb[51].mxu1 }
0x16ef   : > { %v3115_v43 = vpop.f32.mrb[52].mxu1 }
0x16f0   : > { %v3116_v44 = vadd.f32 %v3115_v43, %v5337_v17  ;;  %v4514_v31 = vpop.f32.mrb[53].mxu1 }
0x16f1   : > { %v3118_v45 = vpop.f32.mrb[54].mxu1 }
0x16f2   : > { %v3119_v46 = vadd.f32 %v3118_v45, %v5340_v19  ;;  %v4515_v33 = vpop.f32.mrb[55].mxu1  ;;  %v3122_v47 = vsel %vm1397_vm5, %v3116_v44, -inf }
0x16f3   : > { %3123 = vmax.xlane.f32.xlu1 %v3122_v47 }
0x16f4   : > { %v3125_v48 = vsel %vm1397_vm5, %v3119_v46, -inf }
0x16f5   : > { %3126 = vmax.xlane.f32.xlu0 %v3125_v48 }
0x1780   : > { %v3124_v49 = vpop.xlane.xlu1 %3123 }
0x1781   : > { %v3128_v24 = vsub.f32 %v3116_v44, %v3124_v49 }
0x1782   : > { %v3127_v51 = vpop.xlane.xlu0 %3126 }
0x1783   : > { %v3130_v55 = vmul.f32 1.442695, %v3128_v24  ;;  %v3129_v56 = vsub.f32 %v3119_v46, %v3127_v51 }
0x1785   : > { %4758 = vpow2.f32 %v3130_v55  ;;  %v3132_v57 = vmul.f32 1.442695, %v3129_v56 }
0x1787   : > { %4760 = vpow2.f32 %v3132_v57 }
0x178f   : > { %v4759_v58 = vpop.eup %4758 }
0x1790   : > { %v3134_v59 = vsel %vm1397_vm5, %v4759_v58, 0.0 }
0x1791   : > { %v4761_v61 = vpop.eup %4760  ;;  %3135 = vadd.xlane.f32.xlu0 %v3134_v59 }
0x1792   : > { %v3137_v62 = vsel %vm1397_vm5, %v4761_v61, 0.0 }
0x1793   : > { %3138 = vadd.xlane.f32.xlu1 %v3137_v62 }
0x17a4   : > { %3244 = vrot.lane.b32.xlu1 %v5315_v8, %s5556_s7  ;;  %s5562_s7 = sld [smem:[#allocation15_spill]] }
0x17a7   : > { %3145 = vrot.lane.b32.xlu0 %v5315_v8, %s5557_s10  ;;  %s5563_s10 = sld [smem:[#allocation16_spill]] }
0x17a8   : > { %3242 = vrot.lane.b32.xlu1 %v5317_v9, %s5558_s11  ;;  %s5564_s11 = sld [smem:[#allocation19_spill]] }
0x181e   : > { %v3136_v63 = vpop.xlane.xlu0 %3135 }
0x181f   : > { %4762 = vrcp.f32 %v3136_v63 }
0x1820   : > { %v3139_v50 = vpop.xlane.xlu1 %3138 }
0x1821   : > { %4764 = vrcp.f32 %v3139_v50  ;;  %v4178_v50 = vld [vmem:[%s5560_s0] ss:$0 sm:$0xff]  ;;  %s5566_s0 = sld [smem:[#allocation20_spill]] }
0x1822   : > { %v3146_v1 = vpop.permute.xlu0 %3145 }
0x1823   : > { %4517 = vmatpush3.bf16.msra.mxu0 %v3146_v1 }
0x1824   : > { %4528 = vmatprep.subr.bf16.mxu0 %v4837_v0  ;;  %v3245_v5 = vpop.permute.xlu1 %3244 }
0x1825   : > { %v3250_v7 = vsel %vm1349_vm4, %v3245_v5, 0 }
0x1828   : > { %v3243_v9 = vpop.permute.xlu1 %3242 }
0x1829   : > { %v4763_v53 = vpop.eup %4762 }
0x182a   : > { %v3142_v3 = vmul.f32 %v4763_v53, %v4759_v58 }
0x182b   : > { %v4765_v2 = vpop.eup %4764 }
0x182c   : > { %v3143_v4 = vmul.f32 %v4765_v2, %v4761_v61 }
0x182e   : > { %v3144_v6 = vpack.c.bf16 %v3143_v4, %v3142_v3 }
0x1830   : > { %4519 = vmatmul.mubr.msk.bf16.vlgmr.msra.gmra.mrb[60].mxu0 %vm1397_vm5, %v3144_v6 }
0x1831   : > { %4529 = vmatpush3.bf16.xpose.msra.mxu0 %v3250_v7  ;;  %4530 = vmatprep.mubr.msk.bf16.mxu0 %vm4838_vm1, %v4837_v0 }
0x1832   : > { %4540 = vmatprep.subr.bf16.mxu0 %v4837_v0 }
0x1838   : > { %4531 = vmatmul.mubr.msk.bf16.vlgmr.msra.gmra.mrb[64].mxu0 %vm1349_vm4, %v3243_v9 }
0x1839   : > { %4542 = vmatprep.mubr.msk.bf16.mxu0 %vm4838_vm1, %v4837_v0 }
0x1903   : > { %v3185_v14 = vpop.f32.mrb[60].mxu0 }
0x1904   : > { %v4520_v15 = vpop.f32.mrb[61].mxu0 }
0x1905   : > { %v3188_v16 = vpop.f32.mrb[62].mxu0 }
0x1906   : > { %v3192_v18 = vpack.c.bf16 %v3188_v16, %v3185_v14  ;;  %v4521_v20 = vpop.f32.mrb[63].mxu0 }
0x1908   : > { %4525 = vmatmul.mubr.msk.bf16.vlgmr.msra.gmra.mrb[56].mxu1 %vm1349_vm4, %v3192_v18 }
0x1909   : > { %4536 = vmatprep.mubr.msk.bf16.mxu1 %vm4838_vm1, %v4837_v0 }
0x190b   : > { %v3286_v21 = vpop.f32.mrb[64].mxu0 }
0x190c   : > { %v3287_v25 = vadd.f32 %v3286_v21, %v5337_v17  ;;  %v4532_v22 = vpop.f32.mrb[65].mxu0  ;;  %v4680_v21 = vld [vmem:[%s5561_s1] sm:$0xff]  }
0x190d   : > { %v3289_v23 = vpop.f32.mrb[66].mxu0 }
0x190e   : > { %v3290_v26 = vadd.f32 %v3289_v23, %v5340_v19  ;;  %v4533_v11 = vpop.f32.mrb[67].mxu0  ;;  %v3293_v27 = vsel %vm1397_vm5, %v3287_v25, -inf }
0x190f   : > { %3294 = vmax.xlane.f32.xlu0 %v3293_v27 }
0x1910   : > { %v3296_v28 = vsel %vm1397_vm5, %v3290_v26, -inf }
0x1911   : > { %3297 = vmax.xlane.f32.xlu1 %v3296_v28 }
0x1922   : > { %3316 = vrot.lane.b32.xlu1 %v5315_v8, %s5559_s15  ;;  %s5565_s15 = sld [smem:[#allocation18_spill]] }
0x199c   : > { %v3295_v12 = vpop.xlane.xlu0 %3294 }
0x199d   : > { %v3299_v29 = vsub.f32 %v3287_v25, %v3295_v12  ;;  %v4681_v25 = vld [vmem:[%s5561_s1 + $0x8] sm:$0xff]  }
0x199e   : > { %v3298_v30 = vpop.xlane.xlu1 %3297 }
0x199f   : > { %v3301_v32 = vmul.f32 1.442695, %v3299_v29  ;;  %v3300_v34 = vsub.f32 %v3290_v26, %v3298_v30  ;;  %v4179_v30 = vld [vmem:[%s5562_s7] ss:$0 sm:$0xff]  ;;  %s5567_s7 = sld [smem:[#allocation21_spill]] }
0x19a1   : > { %4766 = vpow2.f32 %v3301_v32  ;;  %v3303_v17 = vmul.f32 1.442695, %v3300_v34 }
0x19a2   : > { %v3317_v35 = vpop.permute.xlu1 %3316 }
0x19a3   : > { %4768 = vpow2.f32 %v3303_v17  ;;  %4535 = vmatpush3.bf16.msra.mxu1 %v3317_v35  ;;  %v4180_v35 = vld [vmem:[%s5563_s10] ss:$0 sm:$0xff]  ;;  %s5568_s10 = sld [smem:[#allocation22_spill]] }
0x19a4   : > { %4546 = vmatprep.subr.bf16.mxu1 %v4837_v0 }
0x19ab   : > { %v4767_v19 = vpop.eup %4766 }
0x19ac   : > { %v3305_v36 = vsel %vm1397_vm5, %v4767_v19, 0.0 }
0x19ad   : > { %v4769_v37 = vpop.eup %4768  ;;  %3306 = vadd.xlane.f32.xlu0 %v3305_v36 }
0x19ae   : > { %v3308_v39 = vsel %vm1397_vm5, %v4769_v37, 0.0 }
0x19b1   : > { %3309 = vadd.xlane.f32.xlu0 %v3308_v39 }
0x19db   : > { %v3233_v8 = vpop.f32.mrb[56].mxu1 }
0x19dc   : > { %v3240_v40 = vadd.f32 %v3233_v8, %v5387_v38  ;;  %v4526_v42 = vpop.f32.mrb[57].mxu1  ;;  %v2732_v38 = vld [vmem:[%s5555_s2 + $0xc] sm:$0xf]  ;;  %v4682_v8 = vld [vmem:[%s5564_s11] sm:$0xff]  }
0x19dd   : > { %v3236_v43 = vpop.f32.mrb[58].mxu1  ;;  %v3368_v51 = vsel %vm1595_vm6, %v2732_v38, 0  ;;  %v4684_v42 = vld [vmem:[%s5564_s11 + $0x10] sm:$0xff]  }
0x19de   : > { %v3241_v44 = vadd.f32 %v3236_v43, %v5389_v41  ;;  %v4527_v31 = vpop.f32.mrb[59].mxu1  ;;  %4541 = vmatpush3.bf16.msra.mxu0 %v3368_v51  ;;  %v4685_v43 = vld [vmem:[%s5564_s11 + $0x18] sm:$0xff]  }
0x19df   : > { %4554 = vmatprep.subr.bf16.mxu0 %v4837_v0 }
0x1a3a   : > { %v3307_v45 = vpop.xlane.xlu0 %3306 }
0x1a3b   : > { %4770 = vrcp.f32 %v3307_v45 }
0x1a3e   : > { %v3310_v46 = vpop.xlane.xlu0 %3309 }
0x1a3f   : > { %4772 = vrcp.f32 %v3310_v46 }
0x1a45   : > { %v4771_v33 = vpop.eup %4770 }
0x1a46   : > { %v3313_v48 = vmul.f32 %v4771_v33, %v4767_v19 }
0x1a49   : > { %v4773_v47 = vpop.eup %4772 }
0x1a4a   : > { %v3314_v49 = vmul.f32 %v4773_v47, %v4769_v37 }
0x1a4c   : > { %v3315_v24 = vpack.c.bf16 %v3314_v49, %v3313_v48 }
0x1a4e   : > { %4537 = vmatmul.mubr.msk.bf16.vlgmr.msra.gmra.mrb[60].mxu1 %vm1397_vm5, %v3315_v24 }
0x1a4f   : > { %4550 = vmatprep.mubr.msk.bf16.mxu1 %vm4838_vm1, %v4837_v0  ;;  %4547 = vmatpush3.bf16.msra.mxu1 %v4680_v21 }
0x1a50   : > { %4548 = vmatprep.subr.bf16.mxu1 %v4837_v0 }
0x1a53   : > { %4549 = vmatpush3.bf16.msra.mxu1 %v4681_v25 }
0x1a54   : > { %4566 = vmatprep.subr.bf16.mxu1 %v4837_v0 }
0x1b21   : > { %v3356_v41 = vpop.f32.mrb[60].mxu1 }
0x1b22   : > { %v4538_v55 = vpop.f32.mrb[61].mxu1 }
0x1b23   : > { %v3359_v56 = vpop.f32.mrb[62].mxu1 }
0x1b24   : > { %v3363_v57 = vpack.c.bf16 %v3359_v56, %v3356_v41  ;;  %v4539_v58 = vpop.f32.mrb[63].mxu1 }
0x1b26   : > { %4543 = vmatmul.mubr.msk.bf16.vlgmr.msra.gmra.mrb[68].mxu0 %vm1349_vm4, %v3363_v57 }
0x1b27   : > { %4562 = vmatprep.mubr.msk.bf16.mxu0 %vm4838_vm1, %v4837_v0  ;;  %4555 = vmatpush3.bf16.msra.mxu0 %v4682_v8 }
0x1b28   : > { %4556 = vmatprep.subr.bf16.mxu0 %v4837_v0 }
0x1bf9   : > { %v3404_v59 = vpop.f32.mrb[68].mxu0 }
0x1bfa   : > { %v3411_v61 = vadd.f32 %v3404_v59, %v3240_v40  ;;  %v4544_v62 = vpop.f32.mrb[69].mxu0  ;;  %v4683_v40 = vld [vmem:[%s5564_s11 + $0x8] sm:$0xff]  }
0x1bfb   : > { %v3407_v63 = vpop.f32.mrb[70].mxu0  ;;  %4557 = vmatpush3.bf16.msra.mxu0 %v4683_v40 }
0x1bfc   : > { %v3413_v1 = vadd.f32 %v3411_v61, %v5303_v52  ;;  %v3412_v53 = vadd.f32 %v3407_v63, %v3241_v44  ;;  %v4545_v2 = vpop.f32.mrb[71].mxu0  ;;  %4558 = vmatprep.subr.bf16.mxu0 %v4837_v0  ;;  %v4181_v44 = vld [vmem:[%s5565_s15] ss:$0 sm:$0xff]  ;;  %s5569_s15 = sld [smem:[#allocation23_spill]] }
0x1bfe   : > { %v3414_v3 = vadd.f32 %v3412_v53, %v5305_v54  ;;  %v3422_v4 = vadd.f32 %v4178_v50, %v3413_v1 }
0x1bff   : > { %4559 = vmatpush3.bf16.msra.mxu0 %v4684_v42 }
0x1c00   : > { %v3426_v5 = vsel %vm1293_vm3, %v3422_v4, 0.0  ;;  %v3423_v6 = vadd.f32 %v4178_v50, %v3414_v3  ;;  %4560 = vmatprep.subr.bf16.mxu0 %v4837_v0 }
0x1c01   : > { %3427 = vadd.xlane.f32.xlu0 %v3426_v5  ;;  %v4185_v5 = vld [vmem:[%s5566_s0] ss:$0 sm:$0xff]  ;;  %s4098_s0 = sshll.u32 %s5571_s23, 2 }
0x1c02   : > { %v3429_v7 = vsel %vm1293_vm3, %v3423_v6, 0.0 }
0x1c03   : > { %4561 = vmatpush3.bf16.msra.mxu0 %v4685_v43 }
0x1c04   : > { %4582 = vmatprep.subr.bf16.mxu0 %v4837_v0 }
0x1c05   : > { %3430 = vadd.xlane.f32.xlu0 %v3429_v7 }
0x1c8e   : > { %v3428_v9 = vpop.xlane.xlu0 %3427 }
0x1c8f   : > { %v3432_v10 = vmul.f32 0.03125, %v3428_v9 }
0x1c91   : > { %v3434_v13 = vsub.f32 %v3422_v4, %v3432_v10 }
0x1c92   : > { %v3431_v14 = vpop.xlane.xlu0 %3430 }
0x1c93   : > { %v3433_v15 = vmul.f32 0.03125, %v3431_v14  ;;  %v3436_v52 = vmul.f32 %v3434_v13, %v3434_v13 }
0x1c95   : > { %v3435_v16 = vsub.f32 %v3423_v6, %v3433_v15  ;;  %v3438_v18 = vsel %vm1293_vm3, %v3436_v52, 0.0 }
0x1c96   : > { %3439 = vadd.xlane.f32.xlu0 %v3438_v18 }
0x1c97   : > { %v3437_v54 = vmul.f32 %v3435_v16, %v3435_v16 }
0x1c99   : > { %v3441_v20 = vsel %vm1293_vm3, %v3437_v54, 0.0 }
0x1c9a   : > { %3442 = vadd.xlane.f32.xlu0 %v3441_v20 }
0x1d23   : > { %v3440_v22 = vpop.xlane.xlu0 %3439 }
0x1d24   : > { %v3444_v23 = vmul.f32 0.03125, %v3440_v22 }
0x1d26   : > { %v3446_v26 = vadd.f32 1e-05, %v3444_v23 }
0x1d27   : > { %v3443_v11 = vpop.xlane.xlu0 %3442 }
0x1d28   : > { %4774 = vrsqrt.f32 %v3446_v26  ;;  %v3445_v27 = vmul.f32 0.03125, %v3443_v11 }
0x1d2a   : > { %v3447_v28 = vadd.f32 1e-05, %v3445_v27 }
0x1d2c   : > { %4776 = vrsqrt.f32 %v3447_v28 }
0x1d32   : > { %v4775_v12 = vpop.eup %4774 }
0x1d33   : > { %v3450_v29 = vmul.f32 %v4775_v12, %v3434_v13 }
0x1d35   : > { %v3458_v34 = vmul.f32 %v4179_v30, %v3450_v29 }
0x1d36   : > { %v4777_v32 = vpop.eup %4776 }
0x1d37   : > { %v3451_v17 = vmul.f32 %v4777_v32, %v3435_v16  ;;  %v3466_v36 = vadd.f32 %v4180_v35, %v3458_v34 }
0x1d39   : > { %v3459_v19 = vmul.f32 %v4179_v30, %v3451_v17 }
0x1d3b   : > { %v3467_v37 = vadd.f32 %v4180_v35, %v3459_v19  ;;  %v4191_v19 = vld [vmem:[%s5567_s7] ss:$0 sm:$0xff]  ;;  %s1200_s7 = scalar_lea.vmem %s5053_s6, %s4098_s0 }
0x1d3d   : > { %v3468_v39 = vpack.c.bf16 %v3467_v37, %v3466_v36 }
0x1d3f   : > { %4551 = vmatmul.mubr.msk.bf16.vlgmr.msra.gmra.mrb[64].mxu1 %vm1293_vm3, %v3468_v39 }
0x1d40   : > { %4570 = vmatprep.mubr.msk.bf16.mxu1 %vm4838_vm1, %v4837_v0 }
0x1e12   : > { %v3529_v31 = vpop.f32.mrb[64].mxu1 }
0x1e13   : > { %v3530_v45 = vadd.f32 %v4181_v44, %v3529_v31  ;;  %v4552_v46 = vpop.f32.mrb[65].mxu1 }
0x1e14   : > { %v3532_v33 = vpop.f32.mrb[66].mxu1 }
0x1e15   : > { %v3536_v47 = vmul.f32 %v3530_v45, %v3530_v45  ;;  %v3533_v48 = vadd.f32 %v4181_v44, %v3532_v33  ;;  %v4553_v49 = vpop.f32.mrb[67].mxu1 }
0x1e17   : > { %v3538_v24 = vmul.f32 %v3536_v47, %v3530_v45  ;;  %v3537_v38 = vmul.f32 %v3533_v48, %v3533_v48 }
0x1e19   : > { %v3540_v51 = vmul.f32 0.044715, %v3538_v24  ;;  %v3539_v41 = vmul.f32 %v3537_v38, %v3533_v48 }
0x1e1b   : > { %v3542_v55 = vadd.f32 %v3540_v51, %v3530_v45  ;;  %v3541_v56 = vmul.f32 0.044715, %v3539_v41 }
0x1e1d   : > { %v3544_v57 = vmul.f32 0.7978846, %v3542_v55  ;;  %v3543_v58 = vadd.f32 %v3541_v56, %v3533_v48  ;;  %v4686_v56 = vld [vmem:[%s5043_s4 + $0x10] sm:$0xff]  }
0x1e1e   : > { %4567 = vmatpush3.bf16.msra.mxu1 %v4686_v56 }
0x1e1f   : > { %4778 = vtanh.f32 %v3544_v57  ;;  %v3545_v59 = vmul.f32 0.7978846, %v3543_v58  ;;  %v4687_v57 = vld [vmem:[%s5043_s4 + $0x20] sm:$0xff]   ;;  %4568 = vmatprep.subr.bf16.mxu1 %v4837_v0  ;;  %v4688_v58 = vld [vmem:[%s5043_s4 + $0x18] sm:$0xff]  }
0x1e21   : > { %4780 = vtanh.f32 %v3545_v59  ;;  %v4689_v59 = vld [vmem:[%s5043_s4 + $0x28] sm:$0xff]  }
0x1e22   : > { %4569 = vmatpush3.bf16.msra.mxu1 %v4688_v58 }
0x1e23   : > { %4574 = vmatprep.subr.bf16.mxu1 %v4837_v0 }
0x1e29   : > { %v4779_v61 = vpop.eup %4778 }
0x1e2a   : > { %v3548_v62 = vadd.f32 1.0, %v4779_v61 }
0x1e2b   : > { %v4781_v63 = vpop.eup %4780 }
0x1e2c   : > { %v3550_v50 = vmul.f32 0.5, %v3548_v62  ;;  %v3549_v1 = vadd.f32 1.0, %v4781_v63 }
0x1e2e   : > { %v3551_v53 = vmul.f32 0.5, %v3549_v1  ;;  %v3552_v2 = vmul.f32 %v3550_v50, %v3530_v45 }
0x1e30   : > { %v3553_v3 = vmul.f32 %v3551_v53, %v3533_v48 }
0x1e32   : > { %v3554_v4 = vpack.c.bf16 %v3553_v3, %v3552_v2 }
0x1e34   : > { %4563 = vmatmul.mubr.msk.bf16.vlgmr.msra.gmra.mrb[72].mxu0 %vm2211_vm7, %v3554_v4  ;;  %v4193_v4 = vld [vmem:[%s5569_s15] ss:$0 sm:$0xff] }
0x1e35   : > { %4586 = vmatprep.mubr.msk.bf16.mxu0 %vm4838_vm1, %v4837_v0  ;;  %4583 = vmatpush3.bf16.msra.mxu0 %v4687_v57 }
0x1e36   : > { %4584 = vmatprep.subr.bf16.mxu0 %v4837_v0 }
0x1e39   : > { %4585 = vmatpush3.bf16.msra.mxu0 %v4689_v59 }
0x1f07   : > { %v3631_v6 = vpop.f32.mrb[72].mxu0 }
0x1f08   : > { %v3632_v7 = vadd.f32 %v4185_v5, %v3631_v6  ;;  %v4564_v9 = vpop.f32.mrb[73].mxu0 }
0x1f09   : > { %v3634_v10 = vpop.f32.mrb[74].mxu0  ;;  %v4194_v9 = vld [vmem:[%s5038_s27] ss:$0 sm:$0xff] }
0x1f0a   : > { %v3635_v13 = vadd.f32 %v4185_v5, %v3634_v10  ;;  %v4565_v14 = vpop.f32.mrb[75].mxu0  ;;  %v3638_v15 = vadd.f32 %v3632_v7, %v3466_v36 }
0x1f0c   : > { %v3642_v52 = vsel %vm1293_vm3, %v3638_v15, 0.0  ;;  %v3639_v16 = vadd.f32 %v3635_v13, %v3467_v37  ;;  %v4192_v37 = vld [vmem:[%s5568_s10] ss:$0 sm:$0xff] }
0x1f0d   : > { %3643 = vadd.xlane.f32.xlu1 %v3642_v52  ;;  %v4690_v52 = vld [vmem:[%s5043_s4] sm:$0xff]  }
0x1f0e   : > { %v3645_v18 = vsel %vm1293_vm3, %v3639_v16, 0.0 }
0x1f0f   : > { %3646 = vadd.xlane.f32.xlu0 %v3645_v18 }
0x1f9a   : > { %v3644_v54 = vpop.xlane.xlu1 %3643 }
0x1f9b   : > { %v3648_v20 = vmul.f32 0.03125, %v3644_v54  ;;  %v4691_v54 = vld [vmem:[%s5043_s4 + $0x8] sm:$0xff]  }
0x1f9c   : > { %v3647_v21 = vpop.xlane.xlu0 %3646 }
0x1f9d   : > { %v3650_v25 = vsub.f32 %v3638_v15, %v3648_v20  ;;  %v3649_v22 = vmul.f32 0.03125, %v3647_v21  ;;  %v4692_v20 = vld [vmem:[%s5043_s4 + $0x30] sm:$0xff]   ;;  %v4693_v21 = vld [vmem:[%s5043_s4 + $0x38] sm:$0xff]  }
0x1f9f   : > { %v3651_v23 = vsub.f32 %v3639_v16, %v3649_v22  ;;  %v3652_v26 = vmul.f32 %v3650_v25, %v3650_v25 }
0x1fa1   : > { %v3654_v11 = vsel %vm1293_vm3, %v3652_v26, 0.0  ;;  %v3653_v27 = vmul.f32 %v3651_v23, %v3651_v23 }
0x1fa2   : > { %3655 = vadd.xlane.f32.xlu0 %v3654_v11 }
0x1fa3   : > { %v3657_v28 = vsel %vm1293_vm3, %v3653_v27, 0.0 }
0x1fa6   : > { %3658 = vadd.xlane.f32.xlu0 %v3657_v28 }
0x202f   : > { %v3656_v12 = vpop.xlane.xlu0 %3655 }
0x2030   : > { %v3660_v29 = vmul.f32 0.03125, %v3656_v12 }
0x2032   : > { %v3662_v30 = vadd.f32 1e-05, %v3660_v29 }
0x2033   : > { %v3659_v32 = vpop.xlane.xlu0 %3658 }
0x2034   : > { %4782 = vrsqrt.f32 %v3662_v30  ;;  %v3661_v34 = vmul.f32 0.03125, %v3659_v32 }
0x2036   : > { %v3663_v17 = vadd.f32 1e-05, %v3661_v34 }
0x2038   : > { %4784 = vrsqrt.f32 %v3663_v17 }
0x203e   : > { %v4783_v35 = vpop.eup %4782 }
0x203f   : > { %v3666_v36 = vmul.f32 %v4783_v35, %v3650_v25 }
0x2041   : > { %v3674_v39 = vmul.f32 %v4191_v19, %v3666_v36 }
0x2042   : > { %v4785_v8 = vpop.eup %4784 }
0x2043   : > { %v3682_v40 = vadd.f32 %v4192_v37, %v3674_v39  ;;  %v3667_v42 = vmul.f32 %v4785_v8, %v3651_v23  ;;  %v4219_v39 = vld [vmem:[%s5048_s12] ss:$0 sm:$0xff] }
0x2045   : > { %v3686_v43 = vsel %vm1293_vm3, %v3682_v40, 0.0  ;;  %v3675_v44 = vmul.f32 %v4191_v19, %v3667_v42 }
0x2046   : > { %3687 = vadd.xlane.f32.xlu0 %v3686_v43 }
0x2047   : > { %v3683_v31 = vadd.f32 %v4192_v37, %v3675_v44 }
0x2049   : > { %v3689_v45 = vsel %vm1293_vm3, %v3683_v31, 0.0 }
0x204a   : > { %3690 = vadd.xlane.f32.xlu0 %v3689_v45 }
0x20d3   : > { %v3688_v46 = vpop.xlane.xlu0 %3687 }
0x20d4   : > { %v3692_v33 = vmul.f32 0.03125, %v3688_v46 }
0x20d6   : > { %v3694_v47 = vsub.f32 %v3682_v40, %v3692_v33 }
0x20d7   : > { %v3691_v48 = vpop.xlane.xlu0 %3690 }
0x20d8   : > { %v3693_v49 = vmul.f32 0.03125, %v3691_v48  ;;  %v3696_v24 = vmul.f32 %v3694_v47, %v3694_v47 }
0x20da   : > { %v3695_v38 = vsub.f32 %v3683_v31, %v3693_v49  ;;  %v3698_v51 = vsel %vm1293_vm3, %v3696_v24, 0.0 }
0x20db   : > { %3699 = vadd.xlane.f32.xlu0 %v3698_v51 }
0x20dc   : > { %v3697_v41 = vmul.f32 %v3695_v38, %v3695_v38 }
0x20de   : > { %v3701_v55 = vsel %vm1293_vm3, %v3697_v41, 0.0 }
0x20df   : > { %3702 = vadd.xlane.f32.xlu0 %v3701_v55 }
0x2168   : > { %v3700_v61 = vpop.xlane.xlu0 %3699 }
0x2169   : > { %v3704_v62 = vmul.f32 0.03125, %v3700_v61 }
0x216b   : > { %v3706_v63 = vadd.f32 1e-05, %v3704_v62 }
0x216c   : > { %v3703_v50 = vpop.xlane.xlu0 %3702 }
0x216d   : > { %4786 = vrsqrt.f32 %v3706_v63  ;;  %v3705_v1 = vmul.f32 0.03125, %v3703_v50 }
0x216f   : > { %v3707_v53 = vadd.f32 1e-05, %v3705_v1 }
0x2171   : > { %4788 = vrsqrt.f32 %v3707_v53 }
0x2177   : > { %v4787_v2 = vpop.eup %4786 }
0x2178   : > { %v3710_v3 = vmul.f32 %v4787_v2, %v3694_v47 }
0x217a   : > { %v3718_v6 = vmul.f32 %v4193_v4, %v3710_v3 }
0x217b   : > { %v4789_v5 = vpop.eup %4788 }
0x217c   : > { %v3711_v7 = vmul.f32 %v4789_v5, %v3695_v38  ;;  %v3726_v13 = vadd.f32 %v4194_v9, %v3718_v6 }
0x217e   : > { %v3719_v10 = vmul.f32 %v4193_v4, %v3711_v7 }
0x2180   : > { %v3727_v14 = vadd.f32 %v4194_v9, %v3719_v10 }
0x2182   : > { %v3728_v15 = vpack.c.bf16 %v3727_v14, %v3726_v13 }
0x2184   : > { %v3739_v16 = vrot.slane %v3728_v15, 2  ;;  %v3855_v18 = vrot.slane %v3728_v15, 4  ;;  %v3917_v25 = vrot.slane %v3728_v15, 6 }
0x2186   : > { %4571 = vmatmul.mubr.msk.bf16.vlgmr.msra.gmra.mrb[68].mxu1 %vm1293_vm3, %v3739_v16  ;;  %4587 = vmatmul.mubr.msk.bf16.vlgmr.msra.gmra.mrb[76].mxu0 %vm1293_vm3, %v3855_v18 }
0x2187   : > { %4575 = vmatpush3.bf16.msra.mxu1 %v4690_v52  ;;  %4578 = vmatprep.mubr.msk.bf16.mxu1 %vm4838_vm1, %v4837_v0 }
0x2188   : > { %4576 = vmatprep.subr.bf16.mxu1 %v4837_v0 }
0x218b   : > { %4577 = vmatpush3.bf16.msra.mxu1 %v4691_v54 }
0x218c   : > { %4590 = vmatprep.subr.bf16.mxu1 %v4837_v0 }
0x218e   : > { %4579 = vmatmul.mubr.msk.bf16.vlgmr.msra.gmra.mrb[72].mxu1 %vm1293_vm3, %v3728_v15 }
0x218f   : > { %4591 = vmatpush3.bf16.msra.mxu1 %v4692_v20  ;;  %4594 = vmatprep.mubr.msk.bf16.mxu1 %vm4838_vm1, %v4837_v0 }
0x2190   : > { %4592 = vmatprep.subr.bf16.mxu1 %v4837_v0 }
0x2193   : > { %4593 = vmatpush3.bf16.msra.mxu1 %v4693_v21 }
0x2196   : > { %4595 = vmatmul.mubr.msk.bf16.vlgmr.msra.gmra.mrb[76].mxu1 %vm1293_vm3, %v3917_v25 }
0x2259   : > { %v3789_v22 = vpop.f32.mrb[68].mxu1  ;;  %v3905_v23 = vpop.f32.mrb[76].mxu0 }
0x225a   : > { %v4572_v26 = vpop.f32.mrb[69].mxu1  ;;  %v4588_v11 = vpop.f32.mrb[77].mxu0 }
0x225b   : > { %v3792_v27 = vpop.f32.mrb[70].mxu1  ;;  %v3908_v28 = vpop.f32.mrb[78].mxu0 }
0x225c   : > { %v4573_v12 = vpop.f32.mrb[71].mxu1  ;;  %v4589_v29 = vpop.f32.mrb[79].mxu0 }
0x2261   : > { %v3844_v30 = vpop.f32.mrb[72].mxu1 }
0x2262   : > { %v3845_v32 = vadd.f32 %v3844_v30, %v3789_v22  ;;  %v4580_v34 = vpop.f32.mrb[73].mxu1 }
0x2263   : > { %v3847_v17 = vpop.f32.mrb[74].mxu1 }
0x2264   : > { %v4581_v0 = vpop.f32.mrb[75].mxu1  ;;  %v3911_v35 = vadd.f32 %v3905_v23, %v3845_v32 }
0x2269   : > { %v3967_v19 = vpop.f32.mrb[76].mxu1 }
0x226a   : > { %v3973_v36 = vadd.f32 %v3967_v19, %v3911_v35  ;;  %v4596_v37 = vpop.f32.mrb[77].mxu1 }
0x226b   : > { %v3970_v8 = vpop.f32.mrb[78].mxu1 }
0x226c   : > { %v3974_v40 = vadd.f32 %v3973_v36, %v5312_v60  ;;  %v4597_v42 = vpop.f32.mrb[79].mxu1 }
0x226e   : > { %v3982_v43 = vadd.f32 %v4219_v39, %v3974_v40 }
0x2270   : > { %3984 = vst.msk [vmem:[%s1200_s7] sm:$0xf] %vm3983_vm8, %v3982_v43 }
0x2271 PF: > { %s89_s22 = sadd.s32 1, %s4796_s22  }
0x2272   : > { %p86_p4 = scmp.ge.s32.totalorder %s89_s22, 4  }
0x2274   :  { %88 = sbr.rel (!%p86_p4) target bundleno = 68 (0x44), region = 254 }

</bundles_post_ra>
